<compile_context>
chip_gen: v5e
topology: v5e:2x2
jax: 0.10.0
libtpu: 0.0.40
codegen_flags: <defaults>
</compile_context>

<pallas_src>
import jax
import jax.numpy as jnp
from jax.experimental import pallas as pl
from jax.experimental.pallas import tpu as pltpu

# ----------------------------- hyperparameters -------------------------------
VOCAB_SIZE     = 100
EMB_DIM        = 32
POS_VOCAB_SIZE = 20
POS_EMB_DIM    = 16
HIDDEN_DIM     = 32
NUM_LAYERS     = 2
NUM_CLASSES    = 8

B, T   = 2, 8        # user-facing batch / sequence length
B_PAD  = 8           # batch padded to one full sublane tile inside the kernel
N_ROWS = T * B_PAD   # time-major row count inside the kernel (row = t*B_PAD + b)


# ------------------------------ Pallas kernel --------------------------------
def _lstm_cell(gates, c):
    """gates: (B_PAD, 4H) pre-activation (i,f,g,o); c: (B_PAD, H)."""
    H = HIDDEN_DIM
    sig = jax.nn.sigmoid(gates)        # one full-vreg EUP op
    tnh = jnp.tanh(gates)              # one full-vreg EUP op
    i_g = sig[:, 0 * H:1 * H]
    f_g = sig[:, 1 * H:2 * H]
    g_g = tnh[:, 2 * H:3 * H]
    o_g = sig[:, 3 * H:4 * H]
    c_new = f_g * c + i_g * g_g
    h_new = o_g * jnp.tanh(c_new)
    return h_new, c_new


def _bidir_lstm_layer(gates_f, gates_b, whh_f, whh_b):
    """Both directions of one BiLSTM layer, fully unrolled & interleaved.

    gates_f/gates_b : (N_ROWS, 4H) hoisted input projections (bias included),
                      time-major rows (row = t*B_PAD + b).
    whh_f/whh_b     : (H, 4H) pre-transposed recurrent weights.
    Returns (seq_f, seq_b), each (N_ROWS, H) in time-major row order.
    """
    H = HIDDEN_DIM
    zero = jnp.zeros((B_PAD, H), jnp.float32)
    h_f, c_f, h_b, c_b = zero, zero, zero, zero
    outs_f = [None] * T
    outs_b = [None] * T
    for t in range(T):                       # static unroll (T is small)
        rt = T - 1 - t                       # backward dir walks time reversed
        g_f = gates_f[t * B_PAD:(t + 1) * B_PAD, :] + jnp.dot(
            h_f, whh_f, preferred_element_type=jnp.float32)
        g_b = gates_b[rt * B_PAD:(rt + 1) * B_PAD, :] + jnp.dot(
            h_b, whh_b, preferred_element_type=jnp.float32)
        h_f, c_f = _lstm_cell(g_f, c_f)
        h_b, c_b = _lstm_cell(g_b, c_b)
        outs_f[t] = h_f
        outs_b[rt] = h_b
    return jnp.concatenate(outs_f, axis=0), jnp.concatenate(outs_b, axis=0)


def _fused_forward_kernel(emb_ref, pos_ref,
                          wih0f_ref, whh0f_ref, b0f_ref,
                          wih0b_ref, whh0b_ref, b0b_ref,
                          wih1f_ref, whh1f_ref, b1f_ref,
                          wih1b_ref, whh1b_ref, b1b_ref,
                          clsw_ref, clsb_ref,
                          out_ref):
    """Entire forward: 2 BiLSTM layers + classifier, all VMEM resident.

    emb_ref : (N_ROWS, EMB_DIM)      time-major word embeddings
    pos_ref : (N_ROWS, POS_EMB_DIM)  time-major POS embeddings
    wih*    : (Din, 4H)   pre-transposed W_ih
    whh*    : (H,   4H)   pre-transposed W_hh
    b*      : (1,   4H)   b_ih + b_hh
    clsw    : (2H,  C)    pre-transposed classifier weight; clsb: (1, C)
    out_ref : (N_ROWS, C) logits
    """
    H, E = HIDDEN_DIM, EMB_DIM
    f32 = jnp.float32

    emb = emb_ref[...]
    pos = pos_ref[...]

    # ---- layer 0: hoisted input projections (emb/pos concat folded into
    #      split matmuls -> one big matmul per direction, bias added once).
    w0f, w0b = wih0f_ref[...], wih0b_ref[...]
    g0f = (jnp.dot(emb, w0f[:E, :], preferred_element_type=f32)
           + jnp.dot(pos, w0f[E:, :], preferred_element_type=f32)
           + b0f_ref[...])
    g0b = (jnp.dot(emb, w0b[:E, :], preferred_element_type=f32)
           + jnp.dot(pos, w0b[E:, :], preferred_element_type=f32)
           + b0b_ref[...])
    s0f, s0b = _bidir_lstm_layer(g0f, g0b, whh0f_ref[...], whh0b_ref[...])

    # ---- layer 1: bidirectional concat folded into split matmuls.
    w1f, w1b = wih1f_ref[...], wih1b_ref[...]
    g1f = (jnp.dot(s0f, w1f[:H, :], preferred_element_type=f32)
           + jnp.dot(s0b, w1f[H:, :], preferred_element_type=f32)
           + b1f_ref[...])
    g1b = (jnp.dot(s0f, w1b[:H, :], preferred_element_type=f32)
           + jnp.dot(s0b, w1b[H:, :], preferred_element_type=f32)
           + b1b_ref[...])
    s1f, s1b = _bidir_lstm_layer(g1f, g1b, whh1f_ref[...], whh1b_ref[...])

    # ---- classifier (fused, concat folded into split matmul).
    cw = clsw_ref[...]
    logits = (jnp.dot(s1f, cw[:H, :], preferred_element_type=f32)
              + jnp.dot(s1b, cw[H:, :], preferred_element_type=f32)
              + clsb_ref[...])
    out_ref[...] = logits.astype(out_ref.dtype)


# ------------------------------ wrapper ---------------------------------------
def prepare_params(params):
    """One-time parameter prep: pre-transpose every weight to (in, out) layout
    so the kernel never transposes on the hot path."""
    mats = []
    for layer in range(NUM_LAYERS):
        lp = params['lstm'][layer]
        for d in ('f', 'b'):
            mats.append(jnp.asarray(lp[f'w_ih_{d}']).T)    # (Din, 4H)
            mats.append(jnp.asarray(lp[f'w_hh_{d}']).T)    # (H,   4H)
            mats.append(lp[f'b_{d}'].reshape(1, -1))       # (1,   4H)
    mats.append(jnp.asarray(params['cls_w']).T)            # (2H, C)
    mats.append(params['cls_b'].reshape(1, -1))            # (1,  C)
    return {'word_emb': params['word_emb'],
            'pos_emb':  params['pos_emb'],
            'mats':     tuple(mats)}


@jax.jit
def ner_forward(prepped, x, p):
    # Embedding gathers stay in XLA glue (tables are tiny); dropout = identity.
    emb = prepped['word_emb'][x]          # (B, T, EMB_DIM)
    pos = prepped['pos_emb'][p]           # (B, T, POS_EMB_DIM)

    def to_rows(a):   # (B,T,D) -> time-major, batch padded to B_PAD, 2-D rows
        a = jnp.transpose(a, (1, 0, 2))                     # (T, B, D)
        a = jnp.pad(a, ((0, 0), (0, B_PAD - B), (0, 0)))    # (T, B_PAD, D)
        return a.reshape(T * B_PAD, a.shape[-1])

    vmem = pl.BlockSpec(memory_space=pltpu.MemorySpace.VMEM)
    inputs = (to_rows(emb), to_rows(pos)) + prepped['mats']
    logits = pl.pallas_call(
        _fused_forward_kernel,
        out_shape=jax.ShapeDtypeStruct((N_ROWS, NUM_CLASSES), jnp.float32),
        in_specs=[vmem] * len(inputs),
        out_specs=vmem,
    )(*inputs)
    logits = logits.reshape(T, B_PAD, NUM_CLASSES)[:, :B, :]
    return jnp.transpose(logits, (1, 0, 2))                  # (B, T, C)


# ------------------------------ pure-JAX reference ---------------------------
def _ref_lstm_layer(x_tm, w_ih, w_hh, b):
    H = w_hh.shape[1]

    def step(carry, x_t):
        h, c = carry
        gates = x_t @ w_ih.T + h @ w_hh.T + b
        i = jax.nn.sigmoid(gates[:, :H])
        f = jax.nn.sigmoid(gates[:, H:2 * H])
        g = jnp.tanh(gates[:, 2 * H:3 * H])
        o = jax.nn.sigmoid(gates[:, 3 * H:])
        c = f * c + i * g
        h = o * jnp.tanh(c)
        return (h, c), h

    B_ = x_tm.shape[1]
    init = (jnp.zeros((B_, H), jnp.float32), jnp.zeros((B_, H), jnp.float32))
    _, hs = jax.lax.scan(step, init, x_tm)
    return hs


def ref_forward(params, x, p):
    emb = params['word_emb'][x]
    pos = params['pos_emb'][p]
    h = jnp.concatenate([emb, pos], axis=-1)
    for layer in range(NUM_LAYERS):
        lp = params['lstm'][layer]
        x_tm = jnp.transpose(h, (1, 0, 2))
        out_f = _ref_lstm_layer(x_tm, lp['w_ih_f'], lp['w_hh_f'], lp['b_f'])
        out_b = _ref_lstm_layer(x_tm[::-1], lp['w_ih_b'], lp['w_hh_b'], lp['b_b'])[::-1]
        h = jnp.transpose(jnp.concatenate([out_f, out_b], axis=-1), (1, 0, 2))
    flat = h.reshape(B * T, 2 * HIDDEN_DIM)
    return (flat @ params['cls_w'].T + params['cls_b']).reshape(B, T, NUM_CLASSES)


# ------------------------------ parameter init --------------------------------
def init_params(key):
    def w(k, shape):
        return 0.1 * jax.random.normal(k, shape, jnp.float32)

    ks = jax.random.split(key, 5)
    params = {
        'word_emb': w(ks[0], (VOCAB_SIZE, EMB_DIM)),
        'pos_emb':  w(ks[1], (POS_VOCAB_SIZE, POS_EMB_DIM)),
        'cls_w':    w(ks[3], (NUM_CLASSES, 2 * HIDDEN_DIM)),
        'cls_b':    w(ks[4], (NUM_CLASSES,)),
    }
    lstm_keys = jax.random.split(ks[2], NUM_LAYERS * 8)
    lstm_params = []
    for layer in range(NUM_LAYERS):
        d_in = (EMB_DIM + POS_EMB_DIM) if layer == 0 else 2 * HIDDEN_DIM
        kk = lstm_keys[layer * 8:(layer + 1) * 8]
        lstm_params.append({
            'w_ih_f': w(kk[0], (4 * HIDDEN_DIM, d_in)),
            'w_hh_f': w(kk[1], (4 * HIDDEN_DIM, HIDDEN_DIM)),
            'b_f':    w(kk[2], (4 * HIDDEN_DIM,)) + w(kk[3], (4 * HIDDEN_DIM,)),
            'w_ih_b': w(kk[4], (4 * HIDDEN_DIM, d_in)),
            'w_hh_b': w(kk[5], (4 * HIDDEN_DIM, HIDDEN_DIM)),
            'b_b':    w(kk[6], (4 * HIDDEN_DIM,)) + w(kk[7], (4 * HIDDEN_DIM,)),
        })
    params['lstm'] = lstm_params
    return params


# ------------------------------------ main ------------------------------------
if __name__ == "__main__":
    key = jax.random.PRNGKey(0)
    kp, kx, kpos = jax.random.split(key, 3)
    params = init_params(kp)
    prepped = prepare_params(params)
    x = jax.random.randint(kx, (B, T), 0, VOCAB_SIZE, dtype=jnp.int32)
    p = jax.random.randint(kpos, (B, T), 0, POS_VOCAB_SIZE, dtype=jnp.int32)

    out = jax.block_until_ready(ner_forward(prepped, x, p))
    assert out.shape == (B, T, NUM_CLASSES), out.shape

    ref = jax.block_until_ready(ref_forward(params, x, p))
    max_err = float(jnp.max(jnp.abs(out - ref)))
    assert max_err < 1e-4, f"mismatch vs reference: {max_err}"

    print("KERNEL_OK")
</pallas_src>

<mosaic_0001>
module attributes {stable_mosaic.version = 11 : i64} {
  func.func @_fused_forward_kernel(%arg0: memref<64x32xf32, #tpu.memory_space<vmem>>, %arg1: memref<64x16xf32, #tpu.memory_space<vmem>>, %arg2: memref<48x128xf32, #tpu.memory_space<vmem>>, %arg3: memref<32x128xf32, #tpu.memory_space<vmem>>, %arg4: memref<1x128xf32, #tpu.memory_space<vmem>>, %arg5: memref<48x128xf32, #tpu.memory_space<vmem>>, %arg6: memref<32x128xf32, #tpu.memory_space<vmem>>, %arg7: memref<1x128xf32, #tpu.memory_space<vmem>>, %arg8: memref<64x128xf32, #tpu.memory_space<vmem>>, %arg9: memref<32x128xf32, #tpu.memory_space<vmem>>, %arg10: memref<1x128xf32, #tpu.memory_space<vmem>>, %arg11: memref<64x128xf32, #tpu.memory_space<vmem>>, %arg12: memref<32x128xf32, #tpu.memory_space<vmem>>, %arg13: memref<1x128xf32, #tpu.memory_space<vmem>>, %arg14: memref<64x8xf32, #tpu.memory_space<vmem>>, %arg15: memref<1x8xf32, #tpu.memory_space<vmem>>, %arg16: memref<64x8xf32, #tpu.memory_space<vmem>>) attributes {dimension_semantics = [], scalar_prefetch = 0 : i64, scratch_operands = 0 : i64, tpu.core_type = #tpu.core_type<tc>} {
    %c0 = arith.constant 0 : index
    %c0_0 = arith.constant 0 : index
    %0 = vector.load %arg0[%c0, %c0_0] : memref<64x32xf32, #tpu.memory_space<vmem>>, vector<64x32xf32>
    %c0_1 = arith.constant 0 : index
    %c0_2 = arith.constant 0 : index
    %1 = vector.load %arg1[%c0_1, %c0_2] : memref<64x16xf32, #tpu.memory_space<vmem>>, vector<64x16xf32>
    %c0_3 = arith.constant 0 : index
    %c0_4 = arith.constant 0 : index
    %2 = vector.load %arg2[%c0_3, %c0_4] : memref<48x128xf32, #tpu.memory_space<vmem>>, vector<48x128xf32>
    %c0_5 = arith.constant 0 : index
    %c0_6 = arith.constant 0 : index
    %3 = vector.load %arg5[%c0_5, %c0_6] : memref<48x128xf32, #tpu.memory_space<vmem>>, vector<48x128xf32>
    %4 = vector.extract_strided_slice %2 {offsets = [0, 0], sizes = [32, 128], strides = [1, 1]} : vector<48x128xf32> to vector<32x128xf32>
    %cst = arith.constant dense<0.000000e+00> : vector<64x128xf32>
    %5 = tpu.matmul %0, %4, %cst {dimension_numbers = #tpu.dot_dimension_numbers<[1], [0], [0], [1], [0, 0, 1, 1], [], []>} : vector<64x32xf32>, vector<32x128xf32>, vector<64x128xf32> -> vector<64x128xf32>
    %6 = vector.extract_strided_slice %2 {offsets = [32, 0], sizes = [16, 128], strides = [1, 1]} : vector<48x128xf32> to vector<16x128xf32>
    %cst_7 = arith.constant dense<0.000000e+00> : vector<64x128xf32>
    %7 = tpu.matmul %1, %6, %cst_7 {dimension_numbers = #tpu.dot_dimension_numbers<[1], [0], [0], [1], [0, 0, 1, 1], [], []>} : vector<64x16xf32>, vector<16x128xf32>, vector<64x128xf32> -> vector<64x128xf32>
    %8 = arith.addf %5, %7 : vector<64x128xf32>
    %c0_8 = arith.constant 0 : index
    %c0_9 = arith.constant 0 : index
    %9 = vector.load %arg4[%c0_8, %c0_9] : memref<1x128xf32, #tpu.memory_space<vmem>>, vector<1x128xf32>
    %10 = vector.broadcast %9 : vector<1x128xf32> to vector<64x128xf32>
    %11 = arith.addf %8, %10 : vector<64x128xf32>
    %12 = vector.extract_strided_slice %3 {offsets = [0, 0], sizes = [32, 128], strides = [1, 1]} : vector<48x128xf32> to vector<32x128xf32>
    %cst_10 = arith.constant dense<0.000000e+00> : vector<64x128xf32>
    %13 = tpu.matmul %0, %12, %cst_10 {dimension_numbers = #tpu.dot_dimension_numbers<[1], [0], [0], [1], [0, 0, 1, 1], [], []>} : vector<64x32xf32>, vector<32x128xf32>, vector<64x128xf32> -> vector<64x128xf32>
    %14 = vector.extract_strided_slice %3 {offsets = [32, 0], sizes = [16, 128], strides = [1, 1]} : vector<48x128xf32> to vector<16x128xf32>
    %cst_11 = arith.constant dense<0.000000e+00> : vector<64x128xf32>
    %15 = tpu.matmul %1, %14, %cst_11 {dimension_numbers = #tpu.dot_dimension_numbers<[1], [0], [0], [1], [0, 0, 1, 1], [], []>} : vector<64x16xf32>, vector<16x128xf32>, vector<64x128xf32> -> vector<64x128xf32>
    %16 = arith.addf %13, %15 : vector<64x128xf32>
    %c0_12 = arith.constant 0 : index
    %c0_13 = arith.constant 0 : index
    %17 = vector.load %arg7[%c0_12, %c0_13] : memref<1x128xf32, #tpu.memory_space<vmem>>, vector<1x128xf32>
    %18 = vector.broadcast %17 : vector<1x128xf32> to vector<64x128xf32>
    %19 = arith.addf %16, %18 : vector<64x128xf32>
    %c0_14 = arith.constant 0 : index
    %c0_15 = arith.constant 0 : index
    %20 = vector.load %arg3[%c0_14, %c0_15] : memref<32x128xf32, #tpu.memory_space<vmem>>, vector<32x128xf32>
    %c0_16 = arith.constant 0 : index
    %c0_17 = arith.constant 0 : index
    %21 = vector.load %arg6[%c0_16, %c0_17] : memref<32x128xf32, #tpu.memory_space<vmem>>, vector<32x128xf32>
    %cst_18 = arith.constant 0.000000e+00 : f32
    %22 = vector.broadcast %cst_18 : f32 to vector<8x32xf32>
    %23 = vector.extract_strided_slice %11 {offsets = [0, 0], sizes = [8, 128], strides = [1, 1]} : vector<64x128xf32> to vector<8x128xf32>
    %cst_19 = arith.constant dense<0.000000e+00> : vector<8x128xf32>
    %24 = tpu.matmul %22, %20, %cst_19 {dimension_numbers = #tpu.dot_dimension_numbers<[1], [0], [0], [1], [0, 0, 1, 1], [], []>} : vector<8x32xf32>, vector<32x128xf32>, vector<8x128xf32> -> vector<8x128xf32>
    %25 = arith.addf %23, %24 : vector<8x128xf32>
    %26 = vector.extract_strided_slice %19 {offsets = [56, 0], sizes = [8, 128], strides = [1, 1]} : vector<64x128xf32> to vector<8x128xf32>
    %cst_20 = arith.constant dense<0.000000e+00> : vector<8x128xf32>
    %27 = tpu.matmul %22, %21, %cst_20 {dimension_numbers = #tpu.dot_dimension_numbers<[1], [0], [0], [1], [0, 0, 1, 1], [], []>} : vector<8x32xf32>, vector<32x128xf32>, vector<8x128xf32> -> vector<8x128xf32>
    %28 = arith.addf %26, %27 : vector<8x128xf32>
    %29 = arith.negf %25 : vector<8x128xf32>
    %30 = math.exp %29 : vector<8x128xf32>
    %cst_21 = arith.constant 1.000000e+00 : f32
    %31 = vector.broadcast %cst_21 : f32 to vector<8x128xf32>
    %32 = arith.addf %31, %30 : vector<8x128xf32>
    %33 = arith.divf %31, %32 : vector<8x128xf32>
    %34 = math.tanh %25 : vector<8x128xf32>
    %35 = vector.extract_strided_slice %33 {offsets = [0, 0], sizes = [8, 32], strides = [1, 1]} : vector<8x128xf32> to vector<8x32xf32>
    %36 = vector.extract_strided_slice %33 {offsets = [0, 32], sizes = [8, 32], strides = [1, 1]} : vector<8x128xf32> to vector<8x32xf32>
    %37 = vector.extract_strided_slice %34 {offsets = [0, 64], sizes = [8, 32], strides = [1, 1]} : vector<8x128xf32> to vector<8x32xf32>
    %38 = vector.extract_strided_slice %33 {offsets = [0, 96], sizes = [8, 32], strides = [1, 1]} : vector<8x128xf32> to vector<8x32xf32>
    %39 = arith.mulf %36, %22 : vector<8x32xf32>
    %40 = arith.mulf %35, %37 : vector<8x32xf32>
    %41 = arith.addf %39, %40 : vector<8x32xf32>
    %42 = math.tanh %41 : vector<8x32xf32>
    %43 = arith.mulf %38, %42 : vector<8x32xf32>
    %44 = arith.negf %28 : vector<8x128xf32>
    %45 = math.exp %44 : vector<8x128xf32>
    %cst_22 = arith.constant 1.000000e+00 : f32
    %46 = vector.broadcast %cst_22 : f32 to vector<8x128xf32>
    %47 = arith.addf %46, %45 : vector<8x128xf32>
    %48 = arith.divf %46, %47 : vector<8x128xf32>
    %49 = math.tanh %28 : vector<8x128xf32>
    %50 = vector.extract_strided_slice %48 {offsets = [0, 0], sizes = [8, 32], strides = [1, 1]} : vector<8x128xf32> to vector<8x32xf32>
    %51 = vector.extract_strided_slice %48 {offsets = [0, 32], sizes = [8, 32], strides = [1, 1]} : vector<8x128xf32> to vector<8x32xf32>
    %52 = vector.extract_strided_slice %49 {offsets = [0, 64], sizes = [8, 32], strides = [1, 1]} : vector<8x128xf32> to vector<8x32xf32>
    %53 = vector.extract_strided_slice %48 {offsets = [0, 96], sizes = [8, 32], strides = [1, 1]} : vector<8x128xf32> to vector<8x32xf32>
    %54 = arith.mulf %51, %22 : vector<8x32xf32>
    %55 = arith.mulf %50, %52 : vector<8x32xf32>
    %56 = arith.addf %54, %55 : vector<8x32xf32>
    %57 = math.tanh %56 : vector<8x32xf32>
    %58 = arith.mulf %53, %57 : vector<8x32xf32>
    %59 = vector.extract_strided_slice %11 {offsets = [8, 0], sizes = [8, 128], strides = [1, 1]} : vector<64x128xf32> to vector<8x128xf32>
    %cst_23 = arith.constant dense<0.000000e+00> : vector<8x128xf32>
    %60 = tpu.matmul %43, %20, %cst_23 {dimension_numbers = #tpu.dot_dimension_numbers<[1], [0], [0], [1], [0, 0, 1, 1], [], []>} : vector<8x32xf32>, vector<32x128xf32>, vector<8x128xf32> -> vector<8x128xf32>
    %61 = arith.addf %59, %60 : vector<8x128xf32>
    %62 = vector.extract_strided_slice %19 {offsets = [48, 0], sizes = [8, 128], strides = [1, 1]} : vector<64x128xf32> to vector<8x128xf32>
    %cst_24 = arith.constant dense<0.000000e+00> : vector<8x128xf32>
    %63 = tpu.matmul %58, %21, %cst_24 {dimension_numbers = #tpu.dot_dimension_numbers<[1], [0], [0], [1], [0, 0, 1, 1], [], []>} : vector<8x32xf32>, vector<32x128xf32>, vector<8x128xf32> -> vector<8x128xf32>
    %64 = arith.addf %62, %63 : vector<8x128xf32>
    %65 = arith.negf %61 : vector<8x128xf32>
    %66 = math.exp %65 : vector<8x128xf32>
    %cst_25 = arith.constant 1.000000e+00 : f32
    %67 = vector.broadcast %cst_25 : f32 to vector<8x128xf32>
    %68 = arith.addf %67, %66 : vector<8x128xf32>
    %69 = arith.divf %67, %68 : vector<8x128xf32>
    %70 = math.tanh %61 : vector<8x128xf32>
    %71 = vector.extract_strided_slice %69 {offsets = [0, 0], sizes = [8, 32], strides = [1, 1]} : vector<8x128xf32> to vector<8x32xf32>
    %72 = vector.extract_strided_slice %69 {offsets = [0, 32], sizes = [8, 32], strides = [1, 1]} : vector<8x128xf32> to vector<8x32xf32>
    %73 = vector.extract_strided_slice %70 {offsets = [0, 64], sizes = [8, 32], strides = [1, 1]} : vector<8x128xf32> to vector<8x32xf32>
    %74 = vector.extract_strided_slice %69 {offsets = [0, 96], sizes = [8, 32], strides = [1, 1]} : vector<8x128xf32> to vector<8x32xf32>
    %75 = arith.mulf %72, %41 : vector<8x32xf32>
    %76 = arith.mulf %71, %73 : vector<8x32xf32>
    %77 = arith.addf %75, %76 : vector<8x32xf32>
    %78 = math.tanh %77 : vector<8x32xf32>
    %79 = arith.mulf %74, %78 : vector<8x32xf32>
    %80 = arith.negf %64 : vector<8x128xf32>
    %81 = math.exp %80 : vector<8x128xf32>
    %cst_26 = arith.constant 1.000000e+00 : f32
    %82 = vector.broadcast %cst_26 : f32 to vector<8x128xf32>
    %83 = arith.addf %82, %81 : vector<8x128xf32>
    %84 = arith.divf %82, %83 : vector<8x128xf32>
    %85 = math.tanh %64 : vector<8x128xf32>
    %86 = vector.extract_strided_slice %84 {offsets = [0, 0], sizes = [8, 32], strides = [1, 1]} : vector<8x128xf32> to vector<8x32xf32>
    %87 = vector.extract_strided_slice %84 {offsets = [0, 32], sizes = [8, 32], strides = [1, 1]} : vector<8x128xf32> to vector<8x32xf32>
    %88 = vector.extract_strided_slice %85 {offsets = [0, 64], sizes = [8, 32], strides = [1, 1]} : vector<8x128xf32> to vector<8x32xf32>
    %89 = vector.extract_strided_slice %84 {offsets = [0, 96], sizes = [8, 32], strides = [1, 1]} : vector<8x128xf32> to vector<8x32xf32>
    %90 = arith.mulf %87, %56 : vector<8x32xf32>
    %91 = arith.mulf %86, %88 : vector<8x32xf32>
    %92 = arith.addf %90, %91 : vector<8x32xf32>
    %93 = math.tanh %92 : vector<8x32xf32>
    %94 = arith.mulf %89, %93 : vector<8x32xf32>
    %95 = vector.extract_strided_slice %11 {offsets = [16, 0], sizes = [8, 128], strides = [1, 1]} : vector<64x128xf32> to vector<8x128xf32>
    %cst_27 = arith.constant dense<0.000000e+00> : vector<8x128xf32>
    %96 = tpu.matmul %79, %20, %cst_27 {dimension_numbers = #tpu.dot_dimension_numbers<[1], [0], [0], [1], [0, 0, 1, 1], [], []>} : vector<8x32xf32>, vector<32x128xf32>, vector<8x128xf32> -> vector<8x128xf32>
    %97 = arith.addf %95, %96 : vector<8x128xf32>
    %98 = vector.extract_strided_slice %19 {offsets = [40, 0], sizes = [8, 128], strides = [1, 1]} : vector<64x128xf32> to vector<8x128xf32>
    %cst_28 = arith.constant dense<0.000000e+00> : vector<8x128xf32>
    %99 = tpu.matmul %94, %21, %cst_28 {dimension_numbers = #tpu.dot_dimension_numbers<[1], [0], [0], [1], [0, 0, 1, 1], [], []>} : vector<8x32xf32>, vector<32x128xf32>, vector<8x128xf32> -> vector<8x128xf32>
    %100 = arith.addf %98, %99 : vector<8x128xf32>
    %101 = arith.negf %97 : vector<8x128xf32>
    %102 = math.exp %101 : vector<8x128xf32>
    %cst_29 = arith.constant 1.000000e+00 : f32
    %103 = vector.broadcast %cst_29 : f32 to vector<8x128xf32>
    %104 = arith.addf %103, %102 : vector<8x128xf32>
    %105 = arith.divf %103, %104 : vector<8x128xf32>
    %106 = math.tanh %97 : vector<8x128xf32>
    %107 = vector.extract_strided_slice %105 {offsets = [0, 0], sizes = [8, 32], strides = [1, 1]} : vector<8x128xf32> to vector<8x32xf32>
    %108 = vector.extract_strided_slice %105 {offsets = [0, 32], sizes = [8, 32], strides = [1, 1]} : vector<8x128xf32> to vector<8x32xf32>
    %109 = vector.extract_strided_slice %106 {offsets = [0, 64], sizes = [8, 32], strides = [1, 1]} : vector<8x128xf32> to vector<8x32xf32>
    %110 = vector.extract_strided_slice %105 {offsets = [0, 96], sizes = [8, 32], strides = [1, 1]} : vector<8x128xf32> to vector<8x32xf32>
    %111 = arith.mulf %108, %77 : vector<8x32xf32>
    %112 = arith.mulf %107, %109 : vector<8x32xf32>
    %113 = arith.addf %111, %112 : vector<8x32xf32>
    %114 = math.tanh %113 : vector<8x32xf32>
    %115 = arith.mulf %110, %114 : vector<8x32xf32>
    %116 = arith.negf %100 : vector<8x128xf32>
    %117 = math.exp %116 : vector<8x128xf32>
    %cst_30 = arith.constant 1.000000e+00 : f32
    %118 = vector.broadcast %cst_30 : f32 to vector<8x128xf32>
    %119 = arith.addf %118, %117 : vector<8x128xf32>
    %120 = arith.divf %118, %119 : vector<8x128xf32>
    %121 = math.tanh %100 : vector<8x128xf32>
    %122 = vector.extract_strided_slice %120 {offsets = [0, 0], sizes = [8, 32], strides = [1, 1]} : vector<8x128xf32> to vector<8x32xf32>
    %123 = vector.extract_strided_slice %120 {offsets = [0, 32], sizes = [8, 32], strides = [1, 1]} : vector<8x128xf32> to vector<8x32xf32>
    %124 = vector.extract_strided_slice %121 {offsets = [0, 64], sizes = [8, 32], strides = [1, 1]} : vector<8x128xf32> to vector<8x32xf32>
    %125 = vector.extract_strided_slice %120 {offsets = [0, 96], sizes = [8, 32], strides = [1, 1]} : vector<8x128xf32> to vector<8x32xf32>
    %126 = arith.mulf %123, %92 : vector<8x32xf32>
    %127 = arith.mulf %122, %124 : vector<8x32xf32>
    %128 = arith.addf %126, %127 : vector<8x32xf32>
    %129 = math.tanh %128 : vector<8x32xf32>
    %130 = arith.mulf %125, %129 : vector<8x32xf32>
    %131 = vector.extract_strided_slice %11 {offsets = [24, 0], sizes = [8, 128], strides = [1, 1]} : vector<64x128xf32> to vector<8x128xf32>
    %cst_31 = arith.constant dense<0.000000e+00> : vector<8x128xf32>
    %132 = tpu.matmul %115, %20, %cst_31 {dimension_numbers = #tpu.dot_dimension_numbers<[1], [0], [0], [1], [0, 0, 1, 1], [], []>} : vector<8x32xf32>, vector<32x128xf32>, vector<8x128xf32> -> vector<8x128xf32>
    %133 = arith.addf %131, %132 : vector<8x128xf32>
    %134 = vector.extract_strided_slice %19 {offsets = [32, 0], sizes = [8, 128], strides = [1, 1]} : vector<64x128xf32> to vector<8x128xf32>
    %cst_32 = arith.constant dense<0.000000e+00> : vector<8x128xf32>
    %135 = tpu.matmul %130, %21, %cst_32 {dimension_numbers = #tpu.dot_dimension_numbers<[1], [0], [0], [1], [0, 0, 1, 1], [], []>} : vector<8x32xf32>, vector<32x128xf32>, vector<8x128xf32> -> vector<8x128xf32>
    %136 = arith.addf %134, %135 : vector<8x128xf32>
    %137 = arith.negf %133 : vector<8x128xf32>
    %138 = math.exp %137 : vector<8x128xf32>
    %cst_33 = arith.constant 1.000000e+00 : f32
    %139 = vector.broadcast %cst_33 : f32 to vector<8x128xf32>
    %140 = arith.addf %139, %138 : vector<8x128xf32>
    %141 = arith.divf %139, %140 : vector<8x128xf32>
    %142 = math.tanh %133 : vector<8x128xf32>
    %143 = vector.extract_strided_slice %141 {offsets = [0, 0], sizes = [8, 32], strides = [1, 1]} : vector<8x128xf32> to vector<8x32xf32>
    %144 = vector.extract_strided_slice %141 {offsets = [0, 32], sizes = [8, 32], strides = [1, 1]} : vector<8x128xf32> to vector<8x32xf32>
    %145 = vector.extract_strided_slice %142 {offsets = [0, 64], sizes = [8, 32], strides = [1, 1]} : vector<8x128xf32> to vector<8x32xf32>
    %146 = vector.extract_strided_slice %141 {offsets = [0, 96], sizes = [8, 32], strides = [1, 1]} : vector<8x128xf32> to vector<8x32xf32>
    %147 = arith.mulf %144, %113 : vector<8x32xf32>
    %148 = arith.mulf %143, %145 : vector<8x32xf32>
    %149 = arith.addf %147, %148 : vector<8x32xf32>
    %150 = math.tanh %149 : vector<8x32xf32>
    %151 = arith.mulf %146, %150 : vector<8x32xf32>
    %152 = arith.negf %136 : vector<8x128xf32>
    %153 = math.exp %152 : vector<8x128xf32>
    %cst_34 = arith.constant 1.000000e+00 : f32
    %154 = vector.broadcast %cst_34 : f32 to vector<8x128xf32>
    %155 = arith.addf %154, %153 : vector<8x128xf32>
    %156 = arith.divf %154, %155 : vector<8x128xf32>
    %157 = math.tanh %136 : vector<8x128xf32>
    %158 = vector.extract_strided_slice %156 {offsets = [0, 0], sizes = [8, 32], strides = [1, 1]} : vector<8x128xf32> to vector<8x32xf32>
    %159 = vector.extract_strided_slice %156 {offsets = [0, 32], sizes = [8, 32], strides = [1, 1]} : vector<8x128xf32> to vector<8x32xf32>
    %160 = vector.extract_strided_slice %157 {offsets = [0, 64], sizes = [8, 32], strides = [1, 1]} : vector<8x128xf32> to vector<8x32xf32>
    %161 = vector.extract_strided_slice %156 {offsets = [0, 96], sizes = [8, 32], strides = [1, 1]} : vector<8x128xf32> to vector<8x32xf32>
    %162 = arith.mulf %159, %128 : vector<8x32xf32>
    %163 = arith.mulf %158, %160 : vector<8x32xf32>
    %164 = arith.addf %162, %163 : vector<8x32xf32>
    %165 = math.tanh %164 : vector<8x32xf32>
    %166 = arith.mulf %161, %165 : vector<8x32xf32>
    %167 = vector.extract_strided_slice %11 {offsets = [32, 0], sizes = [8, 128], strides = [1, 1]} : vector<64x128xf32> to vector<8x128xf32>
    %cst_35 = arith.constant dense<0.000000e+00> : vector<8x128xf32>
    %168 = tpu.matmul %151, %20, %cst_35 {dimension_numbers = #tpu.dot_dimension_numbers<[1], [0], [0], [1], [0, 0, 1, 1], [], []>} : vector<8x32xf32>, vector<32x128xf32>, vector<8x128xf32> -> vector<8x128xf32>
    %169 = arith.addf %167, %168 : vector<8x128xf32>
    %170 = vector.extract_strided_slice %19 {offsets = [24, 0], sizes = [8, 128], strides = [1, 1]} : vector<64x128xf32> to vector<8x128xf32>
    %cst_36 = arith.constant dense<0.000000e+00> : vector<8x128xf32>
    %171 = tpu.matmul %166, %21, %cst_36 {dimension_numbers = #tpu.dot_dimension_numbers<[1], [0], [0], [1], [0, 0, 1, 1], [], []>} : vector<8x32xf32>, vector<32x128xf32>, vector<8x128xf32> -> vector<8x128xf32>
    %172 = arith.addf %170, %171 : vector<8x128xf32>
    %173 = arith.negf %169 : vector<8x128xf32>
    %174 = math.exp %173 : vector<8x128xf32>
    %cst_37 = arith.constant 1.000000e+00 : f32
    %175 = vector.broadcast %cst_37 : f32 to vector<8x128xf32>
    %176 = arith.addf %175, %174 : vector<8x128xf32>
    %177 = arith.divf %175, %176 : vector<8x128xf32>
    %178 = math.tanh %169 : vector<8x128xf32>
    %179 = vector.extract_strided_slice %177 {offsets = [0, 0], sizes = [8, 32], strides = [1, 1]} : vector<8x128xf32> to vector<8x32xf32>
    %180 = vector.extract_strided_slice %177 {offsets = [0, 32], sizes = [8, 32], strides = [1, 1]} : vector<8x128xf32> to vector<8x32xf32>
    %181 = vector.extract_strided_slice %178 {offsets = [0, 64], sizes = [8, 32], strides = [1, 1]} : vector<8x128xf32> to vector<8x32xf32>
    %182 = vector.extract_strided_slice %177 {offsets = [0, 96], sizes = [8, 32], strides = [1, 1]} : vector<8x128xf32> to vector<8x32xf32>
    %183 = arith.mulf %180, %149 : vector<8x32xf32>
    %184 = arith.mulf %179, %181 : vector<8x32xf32>
    %185 = arith.addf %183, %184 : vector<8x32xf32>
    %186 = math.tanh %185 : vector<8x32xf32>
    %187 = arith.mulf %182, %186 : vector<8x32xf32>
    %188 = arith.negf %172 : vector<8x128xf32>
    %189 = math.exp %188 : vector<8x128xf32>
    %cst_38 = arith.constant 1.000000e+00 : f32
    %190 = vector.broadcast %cst_38 : f32 to vector<8x128xf32>
    %191 = arith.addf %190, %189 : vector<8x128xf32>
    %192 = arith.divf %190, %191 : vector<8x128xf32>
    %193 = math.tanh %172 : vector<8x128xf32>
    %194 = vector.extract_strided_slice %192 {offsets = [0, 0], sizes = [8, 32], strides = [1, 1]} : vector<8x128xf32> to vector<8x32xf32>
    %195 = vector.extract_strided_slice %192 {offsets = [0, 32], sizes = [8, 32], strides = [1, 1]} : vector<8x128xf32> to vector<8x32xf32>
    %196 = vector.extract_strided_slice %193 {offsets = [0, 64], sizes = [8, 32], strides = [1, 1]} : vector<8x128xf32> to vector<8x32xf32>
    %197 = vector.extract_strided_slice %192 {offsets = [0, 96], sizes = [8, 32], strides = [1, 1]} : vector<8x128xf32> to vector<8x32xf32>
    %198 = arith.mulf %195, %164 : vector<8x32xf32>
    %199 = arith.mulf %194, %196 : vector<8x32xf32>
    %200 = arith.addf %198, %199 : vector<8x32xf32>
    %201 = math.tanh %200 : vector<8x32xf32>
    %202 = arith.mulf %197, %201 : vector<8x32xf32>
    %203 = vector.extract_strided_slice %11 {offsets = [40, 0], sizes = [8, 128], strides = [1, 1]} : vector<64x128xf32> to vector<8x128xf32>
    %cst_39 = arith.constant dense<0.000000e+00> : vector<8x128xf32>
    %204 = tpu.matmul %187, %20, %cst_39 {dimension_numbers = #tpu.dot_dimension_numbers<[1], [0], [0], [1], [0, 0, 1, 1], [], []>} : vector<8x32xf32>, vector<32x128xf32>, vector<8x128xf32> -> vector<8x128xf32>
    %205 = arith.addf %203, %204 : vector<8x128xf32>
    %206 = vector.extract_strided_slice %19 {offsets = [16, 0], sizes = [8, 128], strides = [1, 1]} : vector<64x128xf32> to vector<8x128xf32>
    %cst_40 = arith.constant dense<0.000000e+00> : vector<8x128xf32>
    %207 = tpu.matmul %202, %21, %cst_40 {dimension_numbers = #tpu.dot_dimension_numbers<[1], [0], [0], [1], [0, 0, 1, 1], [], []>} : vector<8x32xf32>, vector<32x128xf32>, vector<8x128xf32> -> vector<8x128xf32>
    %208 = arith.addf %206, %207 : vector<8x128xf32>
    %209 = arith.negf %205 : vector<8x128xf32>
    %210 = math.exp %209 : vector<8x128xf32>
    %cst_41 = arith.constant 1.000000e+00 : f32
    %211 = vector.broadcast %cst_41 : f32 to vector<8x128xf32>
    %212 = arith.addf %211, %210 : vector<8x128xf32>
    %213 = arith.divf %211, %212 : vector<8x128xf32>
    %214 = math.tanh %205 : vector<8x128xf32>
    %215 = vector.extract_strided_slice %213 {offsets = [0, 0], sizes = [8, 32], strides = [1, 1]} : vector<8x128xf32> to vector<8x32xf32>
    %216 = vector.extract_strided_slice %213 {offsets = [0, 32], sizes = [8, 32], strides = [1, 1]} : vector<8x128xf32> to vector<8x32xf32>
    %217 = vector.extract_strided_slice %214 {offsets = [0, 64], sizes = [8, 32], strides = [1, 1]} : vector<8x128xf32> to vector<8x32xf32>
    %218 = vector.extract_strided_slice %213 {offsets = [0, 96], sizes = [8, 32], strides = [1, 1]} : vector<8x128xf32> to vector<8x32xf32>
    %219 = arith.mulf %216, %185 : vector<8x32xf32>
    %220 = arith.mulf %215, %217 : vector<8x32xf32>
    %221 = arith.addf %219, %220 : vector<8x32xf32>
    %222 = math.tanh %221 : vector<8x32xf32>
    %223 = arith.mulf %218, %222 : vector<8x32xf32>
    %224 = arith.negf %208 : vector<8x128xf32>
    %225 = math.exp %224 : vector<8x128xf32>
    %cst_42 = arith.constant 1.000000e+00 : f32
    %226 = vector.broadcast %cst_42 : f32 to vector<8x128xf32>
    %227 = arith.addf %226, %225 : vector<8x128xf32>
    %228 = arith.divf %226, %227 : vector<8x128xf32>
    %229 = math.tanh %208 : vector<8x128xf32>
    %230 = vector.extract_strided_slice %228 {offsets = [0, 0], sizes = [8, 32], strides = [1, 1]} : vector<8x128xf32> to vector<8x32xf32>
    %231 = vector.extract_strided_slice %228 {offsets = [0, 32], sizes = [8, 32], strides = [1, 1]} : vector<8x128xf32> to vector<8x32xf32>
    %232 = vector.extract_strided_slice %229 {offsets = [0, 64], sizes = [8, 32], strides = [1, 1]} : vector<8x128xf32> to vector<8x32xf32>
    %233 = vector.extract_strided_slice %228 {offsets = [0, 96], sizes = [8, 32], strides = [1, 1]} : vector<8x128xf32> to vector<8x32xf32>
    %234 = arith.mulf %231, %200 : vector<8x32xf32>
    %235 = arith.mulf %230, %232 : vector<8x32xf32>
    %236 = arith.addf %234, %235 : vector<8x32xf32>
    %237 = math.tanh %236 : vector<8x32xf32>
    %238 = arith.mulf %233, %237 : vector<8x32xf32>
    %239 = vector.extract_strided_slice %11 {offsets = [48, 0], sizes = [8, 128], strides = [1, 1]} : vector<64x128xf32> to vector<8x128xf32>
    %cst_43 = arith.constant dense<0.000000e+00> : vector<8x128xf32>
    %240 = tpu.matmul %223, %20, %cst_43 {dimension_numbers = #tpu.dot_dimension_numbers<[1], [0], [0], [1], [0, 0, 1, 1], [], []>} : vector<8x32xf32>, vector<32x128xf32>, vector<8x128xf32> -> vector<8x128xf32>
    %241 = arith.addf %239, %240 : vector<8x128xf32>
    %242 = vector.extract_strided_slice %19 {offsets = [8, 0], sizes = [8, 128], strides = [1, 1]} : vector<64x128xf32> to vector<8x128xf32>
    %cst_44 = arith.constant dense<0.000000e+00> : vector<8x128xf32>
    %243 = tpu.matmul %238, %21, %cst_44 {dimension_numbers = #tpu.dot_dimension_numbers<[1], [0], [0], [1], [0, 0, 1, 1], [], []>} : vector<8x32xf32>, vector<32x128xf32>, vector<8x128xf32> -> vector<8x128xf32>
    %244 = arith.addf %242, %243 : vector<8x128xf32>
    %245 = arith.negf %241 : vector<8x128xf32>
    %246 = math.exp %245 : vector<8x128xf32>
    %cst_45 = arith.constant 1.000000e+00 : f32
    %247 = vector.broadcast %cst_45 : f32 to vector<8x128xf32>
    %248 = arith.addf %247, %246 : vector<8x128xf32>
    %249 = arith.divf %247, %248 : vector<8x128xf32>
    %250 = math.tanh %241 : vector<8x128xf32>
    %251 = vector.extract_strided_slice %249 {offsets = [0, 0], sizes = [8, 32], strides = [1, 1]} : vector<8x128xf32> to vector<8x32xf32>
    %252 = vector.extract_strided_slice %249 {offsets = [0, 32], sizes = [8, 32], strides = [1, 1]} : vector<8x128xf32> to vector<8x32xf32>
    %253 = vector.extract_strided_slice %250 {offsets = [0, 64], sizes = [8, 32], strides = [1, 1]} : vector<8x128xf32> to vector<8x32xf32>
    %254 = vector.extract_strided_slice %249 {offsets = [0, 96], sizes = [8, 32], strides = [1, 1]} : vector<8x128xf32> to vector<8x32xf32>
    %255 = arith.mulf %252, %221 : vector<8x32xf32>
    %256 = arith.mulf %251, %253 : vector<8x32xf32>
    %257 = arith.addf %255, %256 : vector<8x32xf32>
    %258 = math.tanh %257 : vector<8x32xf32>
    %259 = arith.mulf %254, %258 : vector<8x32xf32>
    %260 = arith.negf %244 : vector<8x128xf32>
    %261 = math.exp %260 : vector<8x128xf32>
    %cst_46 = arith.constant 1.000000e+00 : f32
    %262 = vector.broadcast %cst_46 : f32 to vector<8x128xf32>
    %263 = arith.addf %262, %261 : vector<8x128xf32>
    %264 = arith.divf %262, %263 : vector<8x128xf32>
    %265 = math.tanh %244 : vector<8x128xf32>
    %266 = vector.extract_strided_slice %264 {offsets = [0, 0], sizes = [8, 32], strides = [1, 1]} : vector<8x128xf32> to vector<8x32xf32>
    %267 = vector.extract_strided_slice %264 {offsets = [0, 32], sizes = [8, 32], strides = [1, 1]} : vector<8x128xf32> to vector<8x32xf32>
    %268 = vector.extract_strided_slice %265 {offsets = [0, 64], sizes = [8, 32], strides = [1, 1]} : vector<8x128xf32> to vector<8x32xf32>
    %269 = vector.extract_strided_slice %264 {offsets = [0, 96], sizes = [8, 32], strides = [1, 1]} : vector<8x128xf32> to vector<8x32xf32>
    %270 = arith.mulf %267, %236 : vector<8x32xf32>
    %271 = arith.mulf %266, %268 : vector<8x32xf32>
    %272 = arith.addf %270, %271 : vector<8x32xf32>
    %273 = math.tanh %272 : vector<8x32xf32>
    %274 = arith.mulf %269, %273 : vector<8x32xf32>
    %275 = vector.extract_strided_slice %11 {offsets = [56, 0], sizes = [8, 128], strides = [1, 1]} : vector<64x128xf32> to vector<8x128xf32>
    %cst_47 = arith.constant dense<0.000000e+00> : vector<8x128xf32>
    %276 = tpu.matmul %259, %20, %cst_47 {dimension_numbers = #tpu.dot_dimension_numbers<[1], [0], [0], [1], [0, 0, 1, 1], [], []>} : vector<8x32xf32>, vector<32x128xf32>, vector<8x128xf32> -> vector<8x128xf32>
    %277 = arith.addf %275, %276 : vector<8x128xf32>
    %278 = vector.extract_strided_slice %19 {offsets = [0, 0], sizes = [8, 128], strides = [1, 1]} : vector<64x128xf32> to vector<8x128xf32>
    %cst_48 = arith.constant dense<0.000000e+00> : vector<8x128xf32>
    %279 = tpu.matmul %274, %21, %cst_48 {dimension_numbers = #tpu.dot_dimension_numbers<[1], [0], [0], [1], [0, 0, 1, 1], [], []>} : vector<8x32xf32>, vector<32x128xf32>, vector<8x128xf32> -> vector<8x128xf32>
    %280 = arith.addf %278, %279 : vector<8x128xf32>
    %281 = arith.negf %277 : vector<8x128xf32>
    %282 = math.exp %281 : vector<8x128xf32>
    %cst_49 = arith.constant 1.000000e+00 : f32
    %283 = vector.broadcast %cst_49 : f32 to vector<8x128xf32>
    %284 = arith.addf %283, %282 : vector<8x128xf32>
    %285 = arith.divf %283, %284 : vector<8x128xf32>
    %286 = math.tanh %277 : vector<8x128xf32>
    %287 = vector.extract_strided_slice %285 {offsets = [0, 0], sizes = [8, 32], strides = [1, 1]} : vector<8x128xf32> to vector<8x32xf32>
    %288 = vector.extract_strided_slice %285 {offsets = [0, 32], sizes = [8, 32], strides = [1, 1]} : vector<8x128xf32> to vector<8x32xf32>
    %289 = vector.extract_strided_slice %286 {offsets = [0, 64], sizes = [8, 32], strides = [1, 1]} : vector<8x128xf32> to vector<8x32xf32>
    %290 = vector.extract_strided_slice %285 {offsets = [0, 96], sizes = [8, 32], strides = [1, 1]} : vector<8x128xf32> to vector<8x32xf32>
    %291 = arith.mulf %288, %257 : vector<8x32xf32>
    %292 = arith.mulf %287, %289 : vector<8x32xf32>
    %293 = arith.addf %291, %292 : vector<8x32xf32>
    %294 = math.tanh %293 : vector<8x32xf32>
    %295 = arith.mulf %290, %294 : vector<8x32xf32>
    %296 = arith.negf %280 : vector<8x128xf32>
    %297 = math.exp %296 : vector<8x128xf32>
    %cst_50 = arith.constant 1.000000e+00 : f32
    %298 = vector.broadcast %cst_50 : f32 to vector<8x128xf32>
    %299 = arith.addf %298, %297 : vector<8x128xf32>
    %300 = arith.divf %298, %299 : vector<8x128xf32>
    %301 = math.tanh %280 : vector<8x128xf32>
    %302 = vector.extract_strided_slice %300 {offsets = [0, 0], sizes = [8, 32], strides = [1, 1]} : vector<8x128xf32> to vector<8x32xf32>
    %303 = vector.extract_strided_slice %300 {offsets = [0, 32], sizes = [8, 32], strides = [1, 1]} : vector<8x128xf32> to vector<8x32xf32>
    %304 = vector.extract_strided_slice %301 {offsets = [0, 64], sizes = [8, 32], strides = [1, 1]} : vector<8x128xf32> to vector<8x32xf32>
    %305 = vector.extract_strided_slice %300 {offsets = [0, 96], sizes = [8, 32], strides = [1, 1]} : vector<8x128xf32> to vector<8x32xf32>
    %306 = arith.mulf %303, %272 : vector<8x32xf32>
    %307 = arith.mulf %302, %304 : vector<8x32xf32>
    %308 = arith.addf %306, %307 : vector<8x32xf32>
    %309 = math.tanh %308 : vector<8x32xf32>
    %310 = arith.mulf %305, %309 : vector<8x32xf32>
    %311 = tpu.concatenate %43, %79, %115, %151, %187, %223, %259, %295 in 0 : vector<8x32xf32>, vector<8x32xf32>, vector<8x32xf32>, vector<8x32xf32>, vector<8x32xf32>, vector<8x32xf32>, vector<8x32xf32>, vector<8x32xf32> -> vector<64x32xf32>
    %312 = tpu.concatenate %310, %274, %238, %202, %166, %130, %94, %58 in 0 : vector<8x32xf32>, vector<8x32xf32>, vector<8x32xf32>, vector<8x32xf32>, vector<8x32xf32>, vector<8x32xf32>, vector<8x32xf32>, vector<8x32xf32> -> vector<64x32xf32>
    %c0_51 = arith.constant 0 : index
    %c0_52 = arith.constant 0 : index
    %313 = vector.load %arg8[%c0_51, %c0_52] : memref<64x128xf32, #tpu.memory_space<vmem>>, vector<64x128xf32>
    %c0_53 = arith.constant 0 : index
    %c0_54 = arith.constant 0 : index
    %314 = vector.load %arg11[%c0_53, %c0_54] : memref<64x128xf32, #tpu.memory_space<vmem>>, vector<64x128xf32>
    %315 = vector.extract_strided_slice %313 {offsets = [0, 0], sizes = [32, 128], strides = [1, 1]} : vector<64x128xf32> to vector<32x128xf32>
    %cst_55 = arith.constant dense<0.000000e+00> : vector<64x128xf32>
    %316 = tpu.matmul %311, %315, %cst_55 {dimension_numbers = #tpu.dot_dimension_numbers<[1], [0], [0], [1], [0, 0, 1, 1], [], []>} : vector<64x32xf32>, vector<32x128xf32>, vector<64x128xf32> -> vector<64x128xf32>
    %317 = vector.extract_strided_slice %313 {offsets = [32, 0], sizes = [32, 128], strides = [1, 1]} : vector<64x128xf32> to vector<32x128xf32>
    %cst_56 = arith.constant dense<0.000000e+00> : vector<64x128xf32>
    %318 = tpu.matmul %312, %317, %cst_56 {dimension_numbers = #tpu.dot_dimension_numbers<[1], [0], [0], [1], [0, 0, 1, 1], [], []>} : vector<64x32xf32>, vector<32x128xf32>, vector<64x128xf32> -> vector<64x128xf32>
    %319 = arith.addf %316, %318 : vector<64x128xf32>
    %c0_57 = arith.constant 0 : index
    %c0_58 = arith.constant 0 : index
    %320 = vector.load %arg10[%c0_57, %c0_58] : memref<1x128xf32, #tpu.memory_space<vmem>>, vector<1x128xf32>
    %321 = vector.broadcast %320 : vector<1x128xf32> to vector<64x128xf32>
    %322 = arith.addf %319, %321 : vector<64x128xf32>
    %323 = vector.extract_strided_slice %314 {offsets = [0, 0], sizes = [32, 128], strides = [1, 1]} : vector<64x128xf32> to vector<32x128xf32>
    %cst_59 = arith.constant dense<0.000000e+00> : vector<64x128xf32>
    %324 = tpu.matmul %311, %323, %cst_59 {dimension_numbers = #tpu.dot_dimension_numbers<[1], [0], [0], [1], [0, 0, 1, 1], [], []>} : vector<64x32xf32>, vector<32x128xf32>, vector<64x128xf32> -> vector<64x128xf32>
    %325 = vector.extract_strided_slice %314 {offsets = [32, 0], sizes = [32, 128], strides = [1, 1]} : vector<64x128xf32> to vector<32x128xf32>
    %cst_60 = arith.constant dense<0.000000e+00> : vector<64x128xf32>
    %326 = tpu.matmul %312, %325, %cst_60 {dimension_numbers = #tpu.dot_dimension_numbers<[1], [0], [0], [1], [0, 0, 1, 1], [], []>} : vector<64x32xf32>, vector<32x128xf32>, vector<64x128xf32> -> vector<64x128xf32>
    %327 = arith.addf %324, %326 : vector<64x128xf32>
    %c0_61 = arith.constant 0 : index
    %c0_62 = arith.constant 0 : index
    %328 = vector.load %arg13[%c0_61, %c0_62] : memref<1x128xf32, #tpu.memory_space<vmem>>, vector<1x128xf32>
    %329 = vector.broadcast %328 : vector<1x128xf32> to vector<64x128xf32>
    %330 = arith.addf %327, %329 : vector<64x128xf32>
    %c0_63 = arith.constant 0 : index
    %c0_64 = arith.constant 0 : index
    %331 = vector.load %arg9[%c0_63, %c0_64] : memref<32x128xf32, #tpu.memory_space<vmem>>, vector<32x128xf32>
    %c0_65 = arith.constant 0 : index
    %c0_66 = arith.constant 0 : index
    %332 = vector.load %arg12[%c0_65, %c0_66] : memref<32x128xf32, #tpu.memory_space<vmem>>, vector<32x128xf32>
    %cst_67 = arith.constant 0.000000e+00 : f32
    %333 = vector.broadcast %cst_67 : f32 to vector<8x32xf32>
    %334 = vector.extract_strided_slice %322 {offsets = [0, 0], sizes = [8, 128], strides = [1, 1]} : vector<64x128xf32> to vector<8x128xf32>
    %cst_68 = arith.constant dense<0.000000e+00> : vector<8x128xf32>
    %335 = tpu.matmul %333, %331, %cst_68 {dimension_numbers = #tpu.dot_dimension_numbers<[1], [0], [0], [1], [0, 0, 1, 1], [], []>} : vector<8x32xf32>, vector<32x128xf32>, vector<8x128xf32> -> vector<8x128xf32>
    %336 = arith.addf %334, %335 : vector<8x128xf32>
    %337 = vector.extract_strided_slice %330 {offsets = [56, 0], sizes = [8, 128], strides = [1, 1]} : vector<64x128xf32> to vector<8x128xf32>
    %cst_69 = arith.constant dense<0.000000e+00> : vector<8x128xf32>
    %338 = tpu.matmul %333, %332, %cst_69 {dimension_numbers = #tpu.dot_dimension_numbers<[1], [0], [0], [1], [0, 0, 1, 1], [], []>} : vector<8x32xf32>, vector<32x128xf32>, vector<8x128xf32> -> vector<8x128xf32>
    %339 = arith.addf %337, %338 : vector<8x128xf32>
    %340 = arith.negf %336 : vector<8x128xf32>
    %341 = math.exp %340 : vector<8x128xf32>
    %cst_70 = arith.constant 1.000000e+00 : f32
    %342 = vector.broadcast %cst_70 : f32 to vector<8x128xf32>
    %343 = arith.addf %342, %341 : vector<8x128xf32>
    %344 = arith.divf %342, %343 : vector<8x128xf32>
    %345 = math.tanh %336 : vector<8x128xf32>
    %346 = vector.extract_strided_slice %344 {offsets = [0, 0], sizes = [8, 32], strides = [1, 1]} : vector<8x128xf32> to vector<8x32xf32>
    %347 = vector.extract_strided_slice %344 {offsets = [0, 32], sizes = [8, 32], strides = [1, 1]} : vector<8x128xf32> to vector<8x32xf32>
    %348 = vector.extract_strided_slice %345 {offsets = [0, 64], sizes = [8, 32], strides = [1, 1]} : vector<8x128xf32> to vector<8x32xf32>
    %349 = vector.extract_strided_slice %344 {offsets = [0, 96], sizes = [8, 32], strides = [1, 1]} : vector<8x128xf32> to vector<8x32xf32>
    %350 = arith.mulf %347, %333 : vector<8x32xf32>
    %351 = arith.mulf %346, %348 : vector<8x32xf32>
    %352 = arith.addf %350, %351 : vector<8x32xf32>
    %353 = math.tanh %352 : vector<8x32xf32>
    %354 = arith.mulf %349, %353 : vector<8x32xf32>
    %355 = arith.negf %339 : vector<8x128xf32>
    %356 = math.exp %355 : vector<8x128xf32>
    %cst_71 = arith.constant 1.000000e+00 : f32
    %357 = vector.broadcast %cst_71 : f32 to vector<8x128xf32>
    %358 = arith.addf %357, %356 : vector<8x128xf32>
    %359 = arith.divf %357, %358 : vector<8x128xf32>
    %360 = math.tanh %339 : vector<8x128xf32>
    %361 = vector.extract_strided_slice %359 {offsets = [0, 0], sizes = [8, 32], strides = [1, 1]} : vector<8x128xf32> to vector<8x32xf32>
    %362 = vector.extract_strided_slice %359 {offsets = [0, 32], sizes = [8, 32], strides = [1, 1]} : vector<8x128xf32> to vector<8x32xf32>
    %363 = vector.extract_strided_slice %360 {offsets = [0, 64], sizes = [8, 32], strides = [1, 1]} : vector<8x128xf32> to vector<8x32xf32>
    %364 = vector.extract_strided_slice %359 {offsets = [0, 96], sizes = [8, 32], strides = [1, 1]} : vector<8x128xf32> to vector<8x32xf32>
    %365 = arith.mulf %362, %333 : vector<8x32xf32>
    %366 = arith.mulf %361, %363 : vector<8x32xf32>
    %367 = arith.addf %365, %366 : vector<8x32xf32>
    %368 = math.tanh %367 : vector<8x32xf32>
    %369 = arith.mulf %364, %368 : vector<8x32xf32>
    %370 = vector.extract_strided_slice %322 {offsets = [8, 0], sizes = [8, 128], strides = [1, 1]} : vector<64x128xf32> to vector<8x128xf32>
    %cst_72 = arith.constant dense<0.000000e+00> : vector<8x128xf32>
    %371 = tpu.matmul %354, %331, %cst_72 {dimension_numbers = #tpu.dot_dimension_numbers<[1], [0], [0], [1], [0, 0, 1, 1], [], []>} : vector<8x32xf32>, vector<32x128xf32>, vector<8x128xf32> -> vector<8x128xf32>
    %372 = arith.addf %370, %371 : vector<8x128xf32>
    %373 = vector.extract_strided_slice %330 {offsets = [48, 0], sizes = [8, 128], strides = [1, 1]} : vector<64x128xf32> to vector<8x128xf32>
    %cst_73 = arith.constant dense<0.000000e+00> : vector<8x128xf32>
    %374 = tpu.matmul %369, %332, %cst_73 {dimension_numbers = #tpu.dot_dimension_numbers<[1], [0], [0], [1], [0, 0, 1, 1], [], []>} : vector<8x32xf32>, vector<32x128xf32>, vector<8x128xf32> -> vector<8x128xf32>
    %375 = arith.addf %373, %374 : vector<8x128xf32>
    %376 = arith.negf %372 : vector<8x128xf32>
    %377 = math.exp %376 : vector<8x128xf32>
    %cst_74 = arith.constant 1.000000e+00 : f32
    %378 = vector.broadcast %cst_74 : f32 to vector<8x128xf32>
    %379 = arith.addf %378, %377 : vector<8x128xf32>
    %380 = arith.divf %378, %379 : vector<8x128xf32>
    %381 = math.tanh %372 : vector<8x128xf32>
    %382 = vector.extract_strided_slice %380 {offsets = [0, 0], sizes = [8, 32], strides = [1, 1]} : vector<8x128xf32> to vector<8x32xf32>
    %383 = vector.extract_strided_slice %380 {offsets = [0, 32], sizes = [8, 32], strides = [1, 1]} : vector<8x128xf32> to vector<8x32xf32>
    %384 = vector.extract_strided_slice %381 {offsets = [0, 64], sizes = [8, 32], strides = [1, 1]} : vector<8x128xf32> to vector<8x32xf32>
    %385 = vector.extract_strided_slice %380 {offsets = [0, 96], sizes = [8, 32], strides = [1, 1]} : vector<8x128xf32> to vector<8x32xf32>
    %386 = arith.mulf %383, %352 : vector<8x32xf32>
    %387 = arith.mulf %382, %384 : vector<8x32xf32>
    %388 = arith.addf %386, %387 : vector<8x32xf32>
    %389 = math.tanh %388 : vector<8x32xf32>
    %390 = arith.mulf %385, %389 : vector<8x32xf32>
    %391 = arith.negf %375 : vector<8x128xf32>
    %392 = math.exp %391 : vector<8x128xf32>
    %cst_75 = arith.constant 1.000000e+00 : f32
    %393 = vector.broadcast %cst_75 : f32 to vector<8x128xf32>
    %394 = arith.addf %393, %392 : vector<8x128xf32>
    %395 = arith.divf %393, %394 : vector<8x128xf32>
    %396 = math.tanh %375 : vector<8x128xf32>
    %397 = vector.extract_strided_slice %395 {offsets = [0, 0], sizes = [8, 32], strides = [1, 1]} : vector<8x128xf32> to vector<8x32xf32>
    %398 = vector.extract_strided_slice %395 {offsets = [0, 32], sizes = [8, 32], strides = [1, 1]} : vector<8x128xf32> to vector<8x32xf32>
    %399 = vector.extract_strided_slice %396 {offsets = [0, 64], sizes = [8, 32], strides = [1, 1]} : vector<8x128xf32> to vector<8x32xf32>
    %400 = vector.extract_strided_slice %395 {offsets = [0, 96], sizes = [8, 32], strides = [1, 1]} : vector<8x128xf32> to vector<8x32xf32>
    %401 = arith.mulf %398, %367 : vector<8x32xf32>
    %402 = arith.mulf %397, %399 : vector<8x32xf32>
    %403 = arith.addf %401, %402 : vector<8x32xf32>
    %404 = math.tanh %403 : vector<8x32xf32>
    %405 = arith.mulf %400, %404 : vector<8x32xf32>
    %406 = vector.extract_strided_slice %322 {offsets = [16, 0], sizes = [8, 128], strides = [1, 1]} : vector<64x128xf32> to vector<8x128xf32>
    %cst_76 = arith.constant dense<0.000000e+00> : vector<8x128xf32>
    %407 = tpu.matmul %390, %331, %cst_76 {dimension_numbers = #tpu.dot_dimension_numbers<[1], [0], [0], [1], [0, 0, 1, 1], [], []>} : vector<8x32xf32>, vector<32x128xf32>, vector<8x128xf32> -> vector<8x128xf32>
    %408 = arith.addf %406, %407 : vector<8x128xf32>
    %409 = vector.extract_strided_slice %330 {offsets = [40, 0], sizes = [8, 128], strides = [1, 1]} : vector<64x128xf32> to vector<8x128xf32>
    %cst_77 = arith.constant dense<0.000000e+00> : vector<8x128xf32>
    %410 = tpu.matmul %405, %332, %cst_77 {dimension_numbers = #tpu.dot_dimension_numbers<[1], [0], [0], [1], [0, 0, 1, 1], [], []>} : vector<8x32xf32>, vector<32x128xf32>, vector<8x128xf32> -> vector<8x128xf32>
    %411 = arith.addf %409, %410 : vector<8x128xf32>
    %412 = arith.negf %408 : vector<8x128xf32>
    %413 = math.exp %412 : vector<8x128xf32>
    %cst_78 = arith.constant 1.000000e+00 : f32
    %414 = vector.broadcast %cst_78 : f32 to vector<8x128xf32>
    %415 = arith.addf %414, %413 : vector<8x128xf32>
    %416 = arith.divf %414, %415 : vector<8x128xf32>
    %417 = math.tanh %408 : vector<8x128xf32>
    %418 = vector.extract_strided_slice %416 {offsets = [0, 0], sizes = [8, 32], strides = [1, 1]} : vector<8x128xf32> to vector<8x32xf32>
    %419 = vector.extract_strided_slice %416 {offsets = [0, 32], sizes = [8, 32], strides = [1, 1]} : vector<8x128xf32> to vector<8x32xf32>
    %420 = vector.extract_strided_slice %417 {offsets = [0, 64], sizes = [8, 32], strides = [1, 1]} : vector<8x128xf32> to vector<8x32xf32>
    %421 = vector.extract_strided_slice %416 {offsets = [0, 96], sizes = [8, 32], strides = [1, 1]} : vector<8x128xf32> to vector<8x32xf32>
    %422 = arith.mulf %419, %388 : vector<8x32xf32>
    %423 = arith.mulf %418, %420 : vector<8x32xf32>
    %424 = arith.addf %422, %423 : vector<8x32xf32>
    %425 = math.tanh %424 : vector<8x32xf32>
    %426 = arith.mulf %421, %425 : vector<8x32xf32>
    %427 = arith.negf %411 : vector<8x128xf32>
    %428 = math.exp %427 : vector<8x128xf32>
    %cst_79 = arith.constant 1.000000e+00 : f32
    %429 = vector.broadcast %cst_79 : f32 to vector<8x128xf32>
    %430 = arith.addf %429, %428 : vector<8x128xf32>
    %431 = arith.divf %429, %430 : vector<8x128xf32>
    %432 = math.tanh %411 : vector<8x128xf32>
    %433 = vector.extract_strided_slice %431 {offsets = [0, 0], sizes = [8, 32], strides = [1, 1]} : vector<8x128xf32> to vector<8x32xf32>
    %434 = vector.extract_strided_slice %431 {offsets = [0, 32], sizes = [8, 32], strides = [1, 1]} : vector<8x128xf32> to vector<8x32xf32>
    %435 = vector.extract_strided_slice %432 {offsets = [0, 64], sizes = [8, 32], strides = [1, 1]} : vector<8x128xf32> to vector<8x32xf32>
    %436 = vector.extract_strided_slice %431 {offsets = [0, 96], sizes = [8, 32], strides = [1, 1]} : vector<8x128xf32> to vector<8x32xf32>
    %437 = arith.mulf %434, %403 : vector<8x32xf32>
    %438 = arith.mulf %433, %435 : vector<8x32xf32>
    %439 = arith.addf %437, %438 : vector<8x32xf32>
    %440 = math.tanh %439 : vector<8x32xf32>
    %441 = arith.mulf %436, %440 : vector<8x32xf32>
    %442 = vector.extract_strided_slice %322 {offsets = [24, 0], sizes = [8, 128], strides = [1, 1]} : vector<64x128xf32> to vector<8x128xf32>
    %cst_80 = arith.constant dense<0.000000e+00> : vector<8x128xf32>
    %443 = tpu.matmul %426, %331, %cst_80 {dimension_numbers = #tpu.dot_dimension_numbers<[1], [0], [0], [1], [0, 0, 1, 1], [], []>} : vector<8x32xf32>, vector<32x128xf32>, vector<8x128xf32> -> vector<8x128xf32>
    %444 = arith.addf %442, %443 : vector<8x128xf32>
    %445 = vector.extract_strided_slice %330 {offsets = [32, 0], sizes = [8, 128], strides = [1, 1]} : vector<64x128xf32> to vector<8x128xf32>
    %cst_81 = arith.constant dense<0.000000e+00> : vector<8x128xf32>
    %446 = tpu.matmul %441, %332, %cst_81 {dimension_numbers = #tpu.dot_dimension_numbers<[1], [0], [0], [1], [0, 0, 1, 1], [], []>} : vector<8x32xf32>, vector<32x128xf32>, vector<8x128xf32> -> vector<8x128xf32>
    %447 = arith.addf %445, %446 : vector<8x128xf32>
    %448 = arith.negf %444 : vector<8x128xf32>
    %449 = math.exp %448 : vector<8x128xf32>
    %cst_82 = arith.constant 1.000000e+00 : f32
    %450 = vector.broadcast %cst_82 : f32 to vector<8x128xf32>
    %451 = arith.addf %450, %449 : vector<8x128xf32>
    %452 = arith.divf %450, %451 : vector<8x128xf32>
    %453 = math.tanh %444 : vector<8x128xf32>
    %454 = vector.extract_strided_slice %452 {offsets = [0, 0], sizes = [8, 32], strides = [1, 1]} : vector<8x128xf32> to vector<8x32xf32>
    %455 = vector.extract_strided_slice %452 {offsets = [0, 32], sizes = [8, 32], strides = [1, 1]} : vector<8x128xf32> to vector<8x32xf32>
    %456 = vector.extract_strided_slice %453 {offsets = [0, 64], sizes = [8, 32], strides = [1, 1]} : vector<8x128xf32> to vector<8x32xf32>
    %457 = vector.extract_strided_slice %452 {offsets = [0, 96], sizes = [8, 32], strides = [1, 1]} : vector<8x128xf32> to vector<8x32xf32>
    %458 = arith.mulf %455, %424 : vector<8x32xf32>
    %459 = arith.mulf %454, %456 : vector<8x32xf32>
    %460 = arith.addf %458, %459 : vector<8x32xf32>
    %461 = math.tanh %460 : vector<8x32xf32>
    %462 = arith.mulf %457, %461 : vector<8x32xf32>
    %463 = arith.negf %447 : vector<8x128xf32>
    %464 = math.exp %463 : vector<8x128xf32>
    %cst_83 = arith.constant 1.000000e+00 : f32
    %465 = vector.broadcast %cst_83 : f32 to vector<8x128xf32>
    %466 = arith.addf %465, %464 : vector<8x128xf32>
    %467 = arith.divf %465, %466 : vector<8x128xf32>
    %468 = math.tanh %447 : vector<8x128xf32>
    %469 = vector.extract_strided_slice %467 {offsets = [0, 0], sizes = [8, 32], strides = [1, 1]} : vector<8x128xf32> to vector<8x32xf32>
    %470 = vector.extract_strided_slice %467 {offsets = [0, 32], sizes = [8, 32], strides = [1, 1]} : vector<8x128xf32> to vector<8x32xf32>
    %471 = vector.extract_strided_slice %468 {offsets = [0, 64], sizes = [8, 32], strides = [1, 1]} : vector<8x128xf32> to vector<8x32xf32>
    %472 = vector.extract_strided_slice %467 {offsets = [0, 96], sizes = [8, 32], strides = [1, 1]} : vector<8x128xf32> to vector<8x32xf32>
    %473 = arith.mulf %470, %439 : vector<8x32xf32>
    %474 = arith.mulf %469, %471 : vector<8x32xf32>
    %475 = arith.addf %473, %474 : vector<8x32xf32>
    %476 = math.tanh %475 : vector<8x32xf32>
    %477 = arith.mulf %472, %476 : vector<8x32xf32>
    %478 = vector.extract_strided_slice %322 {offsets = [32, 0], sizes = [8, 128], strides = [1, 1]} : vector<64x128xf32> to vector<8x128xf32>
    %cst_84 = arith.constant dense<0.000000e+00> : vector<8x128xf32>
    %479 = tpu.matmul %462, %331, %cst_84 {dimension_numbers = #tpu.dot_dimension_numbers<[1], [0], [0], [1], [0, 0, 1, 1], [], []>} : vector<8x32xf32>, vector<32x128xf32>, vector<8x128xf32> -> vector<8x128xf32>
    %480 = arith.addf %478, %479 : vector<8x128xf32>
    %481 = vector.extract_strided_slice %330 {offsets = [24, 0], sizes = [8, 128], strides = [1, 1]} : vector<64x128xf32> to vector<8x128xf32>
    %cst_85 = arith.constant dense<0.000000e+00> : vector<8x128xf32>
    %482 = tpu.matmul %477, %332, %cst_85 {dimension_numbers = #tpu.dot_dimension_numbers<[1], [0], [0], [1], [0, 0, 1, 1], [], []>} : vector<8x32xf32>, vector<32x128xf32>, vector<8x128xf32> -> vector<8x128xf32>
    %483 = arith.addf %481, %482 : vector<8x128xf32>
    %484 = arith.negf %480 : vector<8x128xf32>
    %485 = math.exp %484 : vector<8x128xf32>
    %cst_86 = arith.constant 1.000000e+00 : f32
    %486 = vector.broadcast %cst_86 : f32 to vector<8x128xf32>
    %487 = arith.addf %486, %485 : vector<8x128xf32>
    %488 = arith.divf %486, %487 : vector<8x128xf32>
    %489 = math.tanh %480 : vector<8x128xf32>
    %490 = vector.extract_strided_slice %488 {offsets = [0, 0], sizes = [8, 32], strides = [1, 1]} : vector<8x128xf32> to vector<8x32xf32>
    %491 = vector.extract_strided_slice %488 {offsets = [0, 32], sizes = [8, 32], strides = [1, 1]} : vector<8x128xf32> to vector<8x32xf32>
    %492 = vector.extract_strided_slice %489 {offsets = [0, 64], sizes = [8, 32], strides = [1, 1]} : vector<8x128xf32> to vector<8x32xf32>
    %493 = vector.extract_strided_slice %488 {offsets = [0, 96], sizes = [8, 32], strides = [1, 1]} : vector<8x128xf32> to vector<8x32xf32>
    %494 = arith.mulf %491, %460 : vector<8x32xf32>
    %495 = arith.mulf %490, %492 : vector<8x32xf32>
    %496 = arith.addf %494, %495 : vector<8x32xf32>
    %497 = math.tanh %496 : vector<8x32xf32>
    %498 = arith.mulf %493, %497 : vector<8x32xf32>
    %499 = arith.negf %483 : vector<8x128xf32>
    %500 = math.exp %499 : vector<8x128xf32>
    %cst_87 = arith.constant 1.000000e+00 : f32
    %501 = vector.broadcast %cst_87 : f32 to vector<8x128xf32>
    %502 = arith.addf %501, %500 : vector<8x128xf32>
    %503 = arith.divf %501, %502 : vector<8x128xf32>
    %504 = math.tanh %483 : vector<8x128xf32>
    %505 = vector.extract_strided_slice %503 {offsets = [0, 0], sizes = [8, 32], strides = [1, 1]} : vector<8x128xf32> to vector<8x32xf32>
    %506 = vector.extract_strided_slice %503 {offsets = [0, 32], sizes = [8, 32], strides = [1, 1]} : vector<8x128xf32> to vector<8x32xf32>
    %507 = vector.extract_strided_slice %504 {offsets = [0, 64], sizes = [8, 32], strides = [1, 1]} : vector<8x128xf32> to vector<8x32xf32>
    %508 = vector.extract_strided_slice %503 {offsets = [0, 96], sizes = [8, 32], strides = [1, 1]} : vector<8x128xf32> to vector<8x32xf32>
    %509 = arith.mulf %506, %475 : vector<8x32xf32>
    %510 = arith.mulf %505, %507 : vector<8x32xf32>
    %511 = arith.addf %509, %510 : vector<8x32xf32>
    %512 = math.tanh %511 : vector<8x32xf32>
    %513 = arith.mulf %508, %512 : vector<8x32xf32>
    %514 = vector.extract_strided_slice %322 {offsets = [40, 0], sizes = [8, 128], strides = [1, 1]} : vector<64x128xf32> to vector<8x128xf32>
    %cst_88 = arith.constant dense<0.000000e+00> : vector<8x128xf32>
    %515 = tpu.matmul %498, %331, %cst_88 {dimension_numbers = #tpu.dot_dimension_numbers<[1], [0], [0], [1], [0, 0, 1, 1], [], []>} : vector<8x32xf32>, vector<32x128xf32>, vector<8x128xf32> -> vector<8x128xf32>
    %516 = arith.addf %514, %515 : vector<8x128xf32>
    %517 = vector.extract_strided_slice %330 {offsets = [16, 0], sizes = [8, 128], strides = [1, 1]} : vector<64x128xf32> to vector<8x128xf32>
    %cst_89 = arith.constant dense<0.000000e+00> : vector<8x128xf32>
    %518 = tpu.matmul %513, %332, %cst_89 {dimension_numbers = #tpu.dot_dimension_numbers<[1], [0], [0], [1], [0, 0, 1, 1], [], []>} : vector<8x32xf32>, vector<32x128xf32>, vector<8x128xf32> -> vector<8x128xf32>
    %519 = arith.addf %517, %518 : vector<8x128xf32>
    %520 = arith.negf %516 : vector<8x128xf32>
    %521 = math.exp %520 : vector<8x128xf32>
    %cst_90 = arith.constant 1.000000e+00 : f32
    %522 = vector.broadcast %cst_90 : f32 to vector<8x128xf32>
    %523 = arith.addf %522, %521 : vector<8x128xf32>
    %524 = arith.divf %522, %523 : vector<8x128xf32>
    %525 = math.tanh %516 : vector<8x128xf32>
    %526 = vector.extract_strided_slice %524 {offsets = [0, 0], sizes = [8, 32], strides = [1, 1]} : vector<8x128xf32> to vector<8x32xf32>
    %527 = vector.extract_strided_slice %524 {offsets = [0, 32], sizes = [8, 32], strides = [1, 1]} : vector<8x128xf32> to vector<8x32xf32>
    %528 = vector.extract_strided_slice %525 {offsets = [0, 64], sizes = [8, 32], strides = [1, 1]} : vector<8x128xf32> to vector<8x32xf32>
    %529 = vector.extract_strided_slice %524 {offsets = [0, 96], sizes = [8, 32], strides = [1, 1]} : vector<8x128xf32> to vector<8x32xf32>
    %530 = arith.mulf %527, %496 : vector<8x32xf32>
    %531 = arith.mulf %526, %528 : vector<8x32xf32>
    %532 = arith.addf %530, %531 : vector<8x32xf32>
    %533 = math.tanh %532 : vector<8x32xf32>
    %534 = arith.mulf %529, %533 : vector<8x32xf32>
    %535 = arith.negf %519 : vector<8x128xf32>
    %536 = math.exp %535 : vector<8x128xf32>
    %cst_91 = arith.constant 1.000000e+00 : f32
    %537 = vector.broadcast %cst_91 : f32 to vector<8x128xf32>
    %538 = arith.addf %537, %536 : vector<8x128xf32>
    %539 = arith.divf %537, %538 : vector<8x128xf32>
    %540 = math.tanh %519 : vector<8x128xf32>
    %541 = vector.extract_strided_slice %539 {offsets = [0, 0], sizes = [8, 32], strides = [1, 1]} : vector<8x128xf32> to vector<8x32xf32>
    %542 = vector.extract_strided_slice %539 {offsets = [0, 32], sizes = [8, 32], strides = [1, 1]} : vector<8x128xf32> to vector<8x32xf32>
    %543 = vector.extract_strided_slice %540 {offsets = [0, 64], sizes = [8, 32], strides = [1, 1]} : vector<8x128xf32> to vector<8x32xf32>
    %544 = vector.extract_strided_slice %539 {offsets = [0, 96], sizes = [8, 32], strides = [1, 1]} : vector<8x128xf32> to vector<8x32xf32>
    %545 = arith.mulf %542, %511 : vector<8x32xf32>
    %546 = arith.mulf %541, %543 : vector<8x32xf32>
    %547 = arith.addf %545, %546 : vector<8x32xf32>
    %548 = math.tanh %547 : vector<8x32xf32>
    %549 = arith.mulf %544, %548 : vector<8x32xf32>
    %550 = vector.extract_strided_slice %322 {offsets = [48, 0], sizes = [8, 128], strides = [1, 1]} : vector<64x128xf32> to vector<8x128xf32>
    %cst_92 = arith.constant dense<0.000000e+00> : vector<8x128xf32>
    %551 = tpu.matmul %534, %331, %cst_92 {dimension_numbers = #tpu.dot_dimension_numbers<[1], [0], [0], [1], [0, 0, 1, 1], [], []>} : vector<8x32xf32>, vector<32x128xf32>, vector<8x128xf32> -> vector<8x128xf32>
    %552 = arith.addf %550, %551 : vector<8x128xf32>
    %553 = vector.extract_strided_slice %330 {offsets = [8, 0], sizes = [8, 128], strides = [1, 1]} : vector<64x128xf32> to vector<8x128xf32>
    %cst_93 = arith.constant dense<0.000000e+00> : vector<8x128xf32>
    %554 = tpu.matmul %549, %332, %cst_93 {dimension_numbers = #tpu.dot_dimension_numbers<[1], [0], [0], [1], [0, 0, 1, 1], [], []>} : vector<8x32xf32>, vector<32x128xf32>, vector<8x128xf32> -> vector<8x128xf32>
    %555 = arith.addf %553, %554 : vector<8x128xf32>
    %556 = arith.negf %552 : vector<8x128xf32>
    %557 = math.exp %556 : vector<8x128xf32>
    %cst_94 = arith.constant 1.000000e+00 : f32
    %558 = vector.broadcast %cst_94 : f32 to vector<8x128xf32>
    %559 = arith.addf %558, %557 : vector<8x128xf32>
    %560 = arith.divf %558, %559 : vector<8x128xf32>
    %561 = math.tanh %552 : vector<8x128xf32>
    %562 = vector.extract_strided_slice %560 {offsets = [0, 0], sizes = [8, 32], strides = [1, 1]} : vector<8x128xf32> to vector<8x32xf32>
    %563 = vector.extract_strided_slice %560 {offsets = [0, 32], sizes = [8, 32], strides = [1, 1]} : vector<8x128xf32> to vector<8x32xf32>
    %564 = vector.extract_strided_slice %561 {offsets = [0, 64], sizes = [8, 32], strides = [1, 1]} : vector<8x128xf32> to vector<8x32xf32>
    %565 = vector.extract_strided_slice %560 {offsets = [0, 96], sizes = [8, 32], strides = [1, 1]} : vector<8x128xf32> to vector<8x32xf32>
    %566 = arith.mulf %563, %532 : vector<8x32xf32>
    %567 = arith.mulf %562, %564 : vector<8x32xf32>
    %568 = arith.addf %566, %567 : vector<8x32xf32>
    %569 = math.tanh %568 : vector<8x32xf32>
    %570 = arith.mulf %565, %569 : vector<8x32xf32>
    %571 = arith.negf %555 : vector<8x128xf32>
    %572 = math.exp %571 : vector<8x128xf32>
    %cst_95 = arith.constant 1.000000e+00 : f32
    %573 = vector.broadcast %cst_95 : f32 to vector<8x128xf32>
    %574 = arith.addf %573, %572 : vector<8x128xf32>
    %575 = arith.divf %573, %574 : vector<8x128xf32>
    %576 = math.tanh %555 : vector<8x128xf32>
    %577 = vector.extract_strided_slice %575 {offsets = [0, 0], sizes = [8, 32], strides = [1, 1]} : vector<8x128xf32> to vector<8x32xf32>
    %578 = vector.extract_strided_slice %575 {offsets = [0, 32], sizes = [8, 32], strides = [1, 1]} : vector<8x128xf32> to vector<8x32xf32>
    %579 = vector.extract_strided_slice %576 {offsets = [0, 64], sizes = [8, 32], strides = [1, 1]} : vector<8x128xf32> to vector<8x32xf32>
    %580 = vector.extract_strided_slice %575 {offsets = [0, 96], sizes = [8, 32], strides = [1, 1]} : vector<8x128xf32> to vector<8x32xf32>
    %581 = arith.mulf %578, %547 : vector<8x32xf32>
    %582 = arith.mulf %577, %579 : vector<8x32xf32>
    %583 = arith.addf %581, %582 : vector<8x32xf32>
    %584 = math.tanh %583 : vector<8x32xf32>
    %585 = arith.mulf %580, %584 : vector<8x32xf32>
    %586 = vector.extract_strided_slice %322 {offsets = [56, 0], sizes = [8, 128], strides = [1, 1]} : vector<64x128xf32> to vector<8x128xf32>
    %cst_96 = arith.constant dense<0.000000e+00> : vector<8x128xf32>
    %587 = tpu.matmul %570, %331, %cst_96 {dimension_numbers = #tpu.dot_dimension_numbers<[1], [0], [0], [1], [0, 0, 1, 1], [], []>} : vector<8x32xf32>, vector<32x128xf32>, vector<8x128xf32> -> vector<8x128xf32>
    %588 = arith.addf %586, %587 : vector<8x128xf32>
    %589 = vector.extract_strided_slice %330 {offsets = [0, 0], sizes = [8, 128], strides = [1, 1]} : vector<64x128xf32> to vector<8x128xf32>
    %cst_97 = arith.constant dense<0.000000e+00> : vector<8x128xf32>
    %590 = tpu.matmul %585, %332, %cst_97 {dimension_numbers = #tpu.dot_dimension_numbers<[1], [0], [0], [1], [0, 0, 1, 1], [], []>} : vector<8x32xf32>, vector<32x128xf32>, vector<8x128xf32> -> vector<8x128xf32>
    %591 = arith.addf %589, %590 : vector<8x128xf32>
    %592 = arith.negf %588 : vector<8x128xf32>
    %593 = math.exp %592 : vector<8x128xf32>
    %cst_98 = arith.constant 1.000000e+00 : f32
    %594 = vector.broadcast %cst_98 : f32 to vector<8x128xf32>
    %595 = arith.addf %594, %593 : vector<8x128xf32>
    %596 = arith.divf %594, %595 : vector<8x128xf32>
    %597 = math.tanh %588 : vector<8x128xf32>
    %598 = vector.extract_strided_slice %596 {offsets = [0, 0], sizes = [8, 32], strides = [1, 1]} : vector<8x128xf32> to vector<8x32xf32>
    %599 = vector.extract_strided_slice %596 {offsets = [0, 32], sizes = [8, 32], strides = [1, 1]} : vector<8x128xf32> to vector<8x32xf32>
    %600 = vector.extract_strided_slice %597 {offsets = [0, 64], sizes = [8, 32], strides = [1, 1]} : vector<8x128xf32> to vector<8x32xf32>
    %601 = vector.extract_strided_slice %596 {offsets = [0, 96], sizes = [8, 32], strides = [1, 1]} : vector<8x128xf32> to vector<8x32xf32>
    %602 = arith.mulf %599, %568 : vector<8x32xf32>
    %603 = arith.mulf %598, %600 : vector<8x32xf32>
    %604 = arith.addf %602, %603 : vector<8x32xf32>
    %605 = math.tanh %604 : vector<8x32xf32>
    %606 = arith.mulf %601, %605 : vector<8x32xf32>
    %607 = arith.negf %591 : vector<8x128xf32>
    %608 = math.exp %607 : vector<8x128xf32>
    %cst_99 = arith.constant 1.000000e+00 : f32
    %609 = vector.broadcast %cst_99 : f32 to vector<8x128xf32>
    %610 = arith.addf %609, %608 : vector<8x128xf32>
    %611 = arith.divf %609, %610 : vector<8x128xf32>
    %612 = math.tanh %591 : vector<8x128xf32>
    %613 = vector.extract_strided_slice %611 {offsets = [0, 0], sizes = [8, 32], strides = [1, 1]} : vector<8x128xf32> to vector<8x32xf32>
    %614 = vector.extract_strided_slice %611 {offsets = [0, 32], sizes = [8, 32], strides = [1, 1]} : vector<8x128xf32> to vector<8x32xf32>
    %615 = vector.extract_strided_slice %612 {offsets = [0, 64], sizes = [8, 32], strides = [1, 1]} : vector<8x128xf32> to vector<8x32xf32>
    %616 = vector.extract_strided_slice %611 {offsets = [0, 96], sizes = [8, 32], strides = [1, 1]} : vector<8x128xf32> to vector<8x32xf32>
    %617 = arith.mulf %614, %583 : vector<8x32xf32>
    %618 = arith.mulf %613, %615 : vector<8x32xf32>
    %619 = arith.addf %617, %618 : vector<8x32xf32>
    %620 = math.tanh %619 : vector<8x32xf32>
    %621 = arith.mulf %616, %620 : vector<8x32xf32>
    %622 = tpu.concatenate %354, %390, %426, %462, %498, %534, %570, %606 in 0 : vector<8x32xf32>, vector<8x32xf32>, vector<8x32xf32>, vector<8x32xf32>, vector<8x32xf32>, vector<8x32xf32>, vector<8x32xf32>, vector<8x32xf32> -> vector<64x32xf32>
    %623 = tpu.concatenate %621, %585, %549, %513, %477, %441, %405, %369 in 0 : vector<8x32xf32>, vector<8x32xf32>, vector<8x32xf32>, vector<8x32xf32>, vector<8x32xf32>, vector<8x32xf32>, vector<8x32xf32>, vector<8x32xf32> -> vector<64x32xf32>
    %c0_100 = arith.constant 0 : index
    %c0_101 = arith.constant 0 : index
    %624 = vector.load %arg14[%c0_100, %c0_101] : memref<64x8xf32, #tpu.memory_space<vmem>>, vector<64x8xf32>
    %625 = vector.extract_strided_slice %624 {offsets = [0, 0], sizes = [32, 8], strides = [1, 1]} : vector<64x8xf32> to vector<32x8xf32>
    %cst_102 = arith.constant dense<0.000000e+00> : vector<64x8xf32>
    %626 = tpu.matmul %622, %625, %cst_102 {dimension_numbers = #tpu.dot_dimension_numbers<[1], [0], [0], [1], [0, 0, 1, 1], [], []>} : vector<64x32xf32>, vector<32x8xf32>, vector<64x8xf32> -> vector<64x8xf32>
    %627 = vector.extract_strided_slice %624 {offsets = [32, 0], sizes = [32, 8], strides = [1, 1]} : vector<64x8xf32> to vector<32x8xf32>
    %cst_103 = arith.constant dense<0.000000e+00> : vector<64x8xf32>
    %628 = tpu.matmul %623, %627, %cst_103 {dimension_numbers = #tpu.dot_dimension_numbers<[1], [0], [0], [1], [0, 0, 1, 1], [], []>} : vector<64x32xf32>, vector<32x8xf32>, vector<64x8xf32> -> vector<64x8xf32>
    %629 = arith.addf %626, %628 : vector<64x8xf32>
    %c0_104 = arith.constant 0 : index
    %c0_105 = arith.constant 0 : index
    %630 = vector.load %arg15[%c0_104, %c0_105] : memref<1x8xf32, #tpu.memory_space<vmem>>, vector<1x8xf32>
    %631 = vector.broadcast %630 : vector<1x8xf32> to vector<64x8xf32>
    %632 = arith.addf %629, %631 : vector<64x8xf32>
    %c0_106 = arith.constant 0 : index
    %c0_107 = arith.constant 0 : index
    %633 = vector.load %arg16[%c0_106, %c0_107] : memref<64x8xf32, #tpu.memory_space<vmem>>, vector<64x8xf32>
    tpu.vector_store %arg16[%c0_106, %c0_107], %632 {strides = array<i32>} : memref<64x8xf32, #tpu.memory_space<vmem>>, vector<64x8xf32>,
    return
  }
}

</mosaic_0001>

<bundles_post_ra>
// kernel: ner_forward.1
= control target key start
LH: loop header
LB: loop body
LE: loop exit
PB: predicated region body
PF: predicated region fallthrough
CT: control target
= control target key end

     0   :  { %vm81_vm0 = vcmask 130048   ;;  %vm147_vm1 = vcmask 261120   ;;  %v3082_v27 = vmov 0.0   ;;  %s4162_s2 = inlined_call_operand.vmem [shape: f32[48,128], index: 2, kind: input, shape index: {}]   ;;  %s4163_s5 = inlined_call_operand.vmem [shape: f32[48,128], index: 5, kind: input, shape index: {}]   ;;  %s4164_s1 = inlined_call_operand.vmem [shape: f32[64,16], index: 1, kind: input, shape index: {}]   ;;  %s4165_s3 = inlined_call_operand.vmem [shape: f32[32,128], index: 3, kind: input, shape index: {}]   ;;  %s4166_s6 = inlined_call_operand.vmem [shape: f32[32,128], index: 6, kind: input, shape index: {}]   ;;  %s4167_s0 = inlined_call_operand.vmem [shape: f32[64,32], index: 0, kind: input, shape index: {}]   ;;  %s4168_s4 = inlined_call_operand.vmem [shape: f32[1,128], index: 4, kind: input, shape index: {}]   ;;  %s4169_s7 = inlined_call_operand.vmem [shape: f32[1,128], index: 7, kind: input, shape index: {}]   ;;  %s4170_s8 = inlined_call_operand.vmem [shape: f32[64,128], index: 8, kind: input, shape index: {}]   ;;  %s4171_s11 = inlined_call_operand.vmem [shape: f32[64,128], index: 11, kind: input, shape index: {}]   ;;  %s4172_s12 = inlined_call_operand.vmem [shape: f32[32,128], index: 12, kind: input, shape index: {}]   ;;  %s4173_s13 = inlined_call_operand.vmem [shape: f32[1,128], index: 13, kind: input, shape index: {}]   ;;  %s4174_s10 = inlined_call_operand.vmem [shape: f32[1,128], index: 10, kind: input, shape index: {}]   ;;  %s4175_s9 = inlined_call_operand.vmem [shape: f32[32,128], index: 9, kind: input, shape index: {}]   ;;  %s4176_s14 = inlined_call_operand.vmem [shape: f32[64,8], index: 14, kind: input, shape index: {}]   ;;  %s4177_s15 = inlined_call_operand.vmem [shape: f32[1,8], index: 15, kind: input, shape index: {}]   ;;  %s4178_s16 = inlined_call_operand.vmem [shape: f32[64,8], index: 16, kind: output, shape index: {}]  }
   0x1   :  { %4180 = sst [smem:[#allocation2_spill]] %s4162_s2  ;;  %v80_v1 = vld [vmem:[%s4163_s5 + $0x28] sm:$0xff]  ;;  %v79_v3 = vld [vmem:[%s4163_s5 + $0x20] sm:$0xff]  ;;  %v78_v5 = vld [vmem:[%s4163_s5 + $0x18] sm:$0xff]  ;;  %s3083_s2 = smov 64  }
   0x2   :  { %s4181_s23 = sld [smem:[#allocation2_spill]]  ;;  %2815 = vmatpush.msra.mxu3 %v80_v1  ;;  %v65_v4 = vld [vmem:[%s4164_s1 + $0x20] sm:$0xff]  ;;  %239 = vmatpush.msra.mxu2 %v80_v1  ;;  %v77_v7 = vld [vmem:[%s4163_s5 + $0x10] sm:$0xff]  ;;  %v76_v10 = vld [vmem:[%s4163_s5 + $0x8] sm:$0xff] }
   0x3   :  { %v61_v6 = vld [vmem:[%s4164_s1] sm:$0xff]  ;;  %v3209_v11 = vld [vmem:[%s4165_s3 + $0x18] sm:$0xff]  ;;  %v3218_v13 = vld [vmem:[%s4165_s3 + $0x10] sm:$0xff] }
   0x4   :  { %2816 = vmatpush.msra.mxu3 %v79_v3  ;;  %v75_v14 = vld [vmem:[%s4163_s5] sm:$0xff]  ;;  %240 = vmatpush.msra.mxu2 %v79_v3  ;;  %v3226_v15 = vld [vmem:[%s4165_s3 + $0x8] sm:$0xff]  ;;  %v67_v20 = vld [vmem:[%s4164_s1 + $0x30] sm:$0xff] }
   0x5   :  { %2693 = vmatmul.msk.f32.vlgmr.msra.gmra.mxu3 %vm81_vm0, %v65_v4  ;;  %v66_v16 = vld [vmem:[%s4164_s1 + $0x28] sm:$0xff]  ;;  %2689 = vmatmul.msk.f32.vlgmr.msra.gmra.mxu2 %vm81_vm0, %v61_v6  ;;  %v3239_v18 = vld [vmem:[%s4165_s3] sm:$0xff]  ;;  %v63_v21 = vld [vmem:[%s4164_s1 + $0x10] sm:$0xff] }
   0x6   :  { %278 = vmatpush.msrb.mxu3 %v78_v5  ;;  %v62_v19 = vld [vmem:[%s4164_s1 + $0x8] sm:$0xff]  ;;  %v68_v22 = vld [vmem:[%s4164_s1 + $0x38] sm:$0xff]  ;;  %v53_v25 = vld [vmem:[%s4167_s0] sm:$0xff] }
   0x7   :  { %v64_v23 = vld [vmem:[%s4164_s1 + $0x18] sm:$0xff]  ;;  %v3293_v26 = vld [vmem:[%s4166_s6 + $0x10] sm:$0xff]  ;;  %v54_v28 = vld [vmem:[%s4167_s0 + $0x8] sm:$0xff] }
   0x8   :  { %v74_v0 = vld [vmem:[%s4181_s23 + $0x28] sm:$0xff]  ;;  %v73_v2 = vld [vmem:[%s4181_s23 + $0x20] sm:$0xff]  ;;  %v72_v8 = vld [vmem:[%s4181_s23 + $0x18] sm:$0xff]  ;;  %279 = vmatpush.msrb.mxu3 %v77_v7 }
   0x9   :  { %2813 = vmatpush.msra.mxu1 %v74_v0  ;;  %120 = vmatpush.msra.mxu0 %v74_v0  ;;  %v71_v9 = vld [vmem:[%s4181_s23 + $0x10] sm:$0xff]  ;;  %v70_v12 = vld [vmem:[%s4181_s23 + $0x8] sm:$0xff]  ;;  %v69_v17 = vld [vmem:[%s4181_s23] sm:$0xff] }
   0xa   :  { %280 = vmatpush.msrb.mxu3 %v76_v10  ;;  %v3279_v24 = vld [vmem:[%s4166_s6 + $0x18] sm:$0xff]  ;;  %v3311_v29 = vld [vmem:[%s4166_s6 + $0x8] sm:$0xff]  ;;  %v55_v30 = vld [vmem:[%s4167_s0 + $0x10] sm:$0xff] }
   0xb   :  { %2814 = vmatpush.msra.mxu1 %v73_v2  ;;  %121 = vmatpush.msra.mxu0 %v73_v2  ;;  %v3325_v31 = vld [vmem:[%s4166_s6] sm:$0xff]  ;;  %v56_v32 = vld [vmem:[%s4167_s0 + $0x18] sm:$0xff]  ;;  %v58_v34 = vld [vmem:[%s4167_s0 + $0x28] sm:$0xff] }
   0xc   :  { %2677 = vmatmul.msk.f32.vlgmr.msra.gmra.mxu1 %vm81_vm0, %v65_v4  ;;  %2673 = vmatmul.msk.f32.vlgmr.msra.gmra.mxu0 %vm81_vm0, %v61_v6  ;;  %v57_v33 = vld [vmem:[%s4167_s0 + $0x20] sm:$0xff]  ;;  %v59_v35 = vld [vmem:[%s4167_s0 + $0x30] sm:$0xff]  ;;  %v60_v36 = vld [vmem:[%s4167_s0 + $0x38] sm:$0xff] }
   0xd   :  { %184 = vmatpush.msrb.mxu1 %v72_v8  ;;  %342 = vmatpush.msrb.mxu0 %v3209_v11  ;;  %v3385_v50 = vld [vmem:[%s4168_s4] ss:$0 sm:$0xff] }
   0xe   :  { %281 = vmatpush.msrb.mxu3 %v75_v14  ;;  %2690 = vmatmul.msk.f32.gmra.mxu2 %vm81_vm0, %v62_v19  ;;  %v2821_v56 = vld [vmem:[%s4169_s7] ss:$0 sm:$0xff]  ;;  %s3084_s7 = smov 32  }
   0xf   :  { %185 = vmatpush.msrb.mxu1 %v71_v9  ;;  %343 = vmatpush.msrb.mxu0 %v3218_v13 }
  0x10   :  { %2694 = vmatmul.msk.f32.gmra.mxu3 %vm81_vm0, %v66_v16  ;;  %363 = vmatpush.msrb.mxu2 %v3279_v24 }
  0x11   :  { %186 = vmatpush.msrb.mxu1 %v70_v12  ;;  %344 = vmatpush.msrb.mxu0 %v3226_v15 }
  0x12   :  { %489 = vmatpush.msra.mxu3 %v3279_v24  ;;  %364 = vmatpush.msrb.mxu2 %v3293_v26 }
  0x13   :  { %187 = vmatpush.msrb.mxu1 %v69_v17  ;;  %345 = vmatpush.msrb.mxu0 %v3239_v18 }
  0x14   :  { %2678 = vmatmul.msk.f32.gmra.mxu1 %vm81_vm0, %v66_v16  ;;  %2674 = vmatmul.msk.f32.gmra.mxu0 %vm81_vm0, %v62_v19 }
  0x15   :  { %463 = vmatpush.msra.mxu1 %v3209_v11  ;;  %589 = vmatpush.msra.mxu0 %v3209_v11 }
  0x16   :  { %2691 = vmatmul.msk.f32.gmra.mxu2 %vm81_vm0, %v63_v21  ;;  %490 = vmatpush.msra.mxu3 %v3293_v26 }
  0x17   :  { %464 = vmatpush.msra.mxu1 %v3218_v13  ;;  %590 = vmatpush.msra.mxu0 %v3218_v13 }
  0x18   :  { %2695 = vmatmul.msk.f32.gmra.mxu3 %vm81_vm0, %v67_v20  ;;  %365 = vmatpush.msrb.mxu2 %v3311_v29 }
  0x19   :  { %465 = vmatpush.msra.mxu1 %v3226_v15  ;;  %591 = vmatpush.msra.mxu0 %v3226_v15 }
  0x1a   :  { %491 = vmatpush.msra.mxu3 %v3311_v29  ;;  %366 = vmatpush.msrb.mxu2 %v3325_v31 }
  0x1b   :  { %466 = vmatpush.msra.mxu1 %v3239_v18  ;;  %592 = vmatpush.msra.mxu0 %v3239_v18 }
  0x1c   :  { %2679 = vmatmul.msk.f32.gmra.mxu1 %vm81_vm0, %v67_v20  ;;  %2675 = vmatmul.msk.f32.gmra.mxu0 %vm81_vm0, %v63_v21 }
  0x1d   :  { %492 = vmatpush.msra.mxu3 %v3325_v31  ;;  %615 = vmatpush.msra.mxu2 %v3279_v24 }
  0x1e   :  { %2692 = vmatmul.msk.f32.gmra.mxu2 %vm81_vm0, %v64_v23 }
  0x1f   :  { %616 = vmatpush.msra.mxu2 %v3293_v26 }
  0x20   :  { %2696 = vmatmul.msk.f32.gmra.mxu3 %vm81_vm0, %v68_v22 }
  0x21   :  { %617 = vmatpush.msra.mxu2 %v3311_v29 }
  0x23   :  { %618 = vmatpush.msra.mxu2 %v3325_v31 }
  0x24   :  { %2680 = vmatmul.msk.f32.gmra.mxu1 %vm81_vm0, %v68_v22  ;;  %2676 = vmatmul.msk.f32.gmra.mxu0 %vm81_vm0, %v64_v23 }
  0x26   :  { %367 = vmatmul.f32.vlgmr.msrb.gmra.mxu2 %v3082_v27 }
  0x27   :  { %867 = vmatpush.msrb.mxu2 %v3279_v24 }
  0x28   :  { %2697 = vmatmul.msk.f32.vlgmr.msrb.gmra.mxu3 %vm147_vm1, %v53_v25 }
  0x29   :  { %741 = vmatpush.msrb.mxu3 %v3279_v24  ;;  %868 = vmatpush.msrb.mxu2 %v3293_v26 }
  0x2b   :  { %742 = vmatpush.msrb.mxu3 %v3293_v26  ;;  %869 = vmatpush.msrb.mxu2 %v3311_v29 }
  0x2c   :  { %2681 = vmatmul.msk.f32.vlgmr.msrb.gmra.mxu1 %vm147_vm1, %v53_v25  ;;  %346 = vmatmul.f32.vlgmr.msrb.gmra.mxu0 %v3082_v27 }
  0x2d   :  { %715 = vmatpush.msrb.mxu1 %v3209_v11  ;;  %841 = vmatpush.msrb.mxu0 %v3209_v11 }
  0x2e   :  { %743 = vmatpush.msrb.mxu3 %v3311_v29  ;;  %870 = vmatpush.msrb.mxu2 %v3325_v31 }
  0x2f   :  { %716 = vmatpush.msrb.mxu1 %v3218_v13  ;;  %842 = vmatpush.msrb.mxu0 %v3218_v13 }
  0x30   :  { %2698 = vmatmul.msk.f32.gmra.mxu3 %vm147_vm1, %v54_v28 }
  0x31   :  { %717 = vmatpush.msrb.mxu1 %v3226_v15  ;;  %843 = vmatpush.msrb.mxu0 %v3226_v15 }
  0x32   :  { %744 = vmatpush.msrb.mxu3 %v3325_v31 }
  0x33   :  { %718 = vmatpush.msrb.mxu1 %v3239_v18  ;;  %844 = vmatpush.msrb.mxu0 %v3239_v18 }
  0x34   :  { %2682 = vmatmul.msk.f32.gmra.mxu1 %vm147_vm1, %v54_v28 }
  0x38   :  { %2699 = vmatmul.msk.f32.gmra.mxu3 %vm147_vm1, %v55_v30 }
  0x3c   :  { %2683 = vmatmul.msk.f32.gmra.mxu1 %vm147_vm1, %v55_v30 }
  0x40   :  { %2700 = vmatmul.msk.f32.gmra.mxu3 %vm147_vm1, %v56_v32 }
  0x44   :  { %2684 = vmatmul.msk.f32.gmra.mxu1 %vm147_vm1, %v56_v32 }
  0x48   :  { %2701 = vmatmul.msk.f32.gmra.mxu3 %vm147_vm1, %v57_v33 }
  0x4c   :  { %2685 = vmatmul.msk.f32.gmra.mxu1 %vm147_vm1, %v57_v33 }
  0x50   :  { %2702 = vmatmul.msk.f32.gmra.mxu3 %vm147_vm1, %v58_v34 }
  0x54   :  { %2686 = vmatmul.msk.f32.gmra.mxu1 %vm147_vm1, %v58_v34 }
  0x58   :  { %2703 = vmatmul.msk.f32.gmra.mxu3 %vm147_vm1, %v59_v35 }
  0x5c   :  { %2687 = vmatmul.msk.f32.gmra.mxu1 %vm147_vm1, %v59_v35 }
  0x60   :  { %2704 = vmatmul.msk.f32.gmra.mxu3 %vm147_vm1, %v60_v36 }
  0x64   :  { %2688 = vmatmul.msk.f32.gmra.mxu1 %vm147_vm1, %v60_v36 }
  0x88   :  { %v254_v39 = vpop.f32.mrf.mxu3  ;;  %v242_v49 = vpop.f32.mrf.mxu2 }
  0x89   :  { %v3368_v37 = vpop.f32.mrf.mxu1  ;;  %v123_v38 = vpop.f32.mrf.mxu0 }
  0x91   :  { %v3370_v40 = vpop.f32.mrf.mxu1  ;;  %v3372_v41 = vpop.f32.mrf.mxu0 }
  0x92   :  { %v245_v59 = vpop.f32.mrf.mxu2 }
  0x93   :  { %v257_v42 = vpop.f32.mrf.mxu3 }
  0x99   :  { %v3374_v43 = vpop.f32.mrf.mxu1  ;;  %v3376_v44 = vpop.f32.mrf.mxu0 }
  0x9a   :  { %v248_v1 = vpop.f32.mrf.mxu2 }
  0x9b   :  { %v260_v45 = vpop.f32.mrf.mxu3 }
  0xa1   :  { %v3378_v46 = vpop.f32.mrf.mxu1  ;;  %v3380_v47 = vpop.f32.mrf.mxu0 }
  0xa2   :  { %v251_v5 = vpop.f32.mrf.mxu2 }
  0xa3   :  { %v263_v48 = vpop.f32.mrf.mxu3 }
  0xa9   :  { %v189_v51 = vpop.f32.mrf.mxu1  ;;  %v347_v53 = vpop.f32.mrf.mxu0 }
  0xaa   :  { %v190_v52 = vadd.f32 %v189_v51, %v123_v38  ;;  %v368_v25 = vpop.f32.mrf.mxu2 }
  0xab   :  { %v283_v57 = vpop.f32.mrf.mxu3 }
  0xac   :  { %v217_v54 = vadd.f32 %v3385_v50, %v190_v52  ;;  %v284_v58 = vadd.f32 %v283_v57, %v242_v49 }
  0xae   :  { %v350_v55 = vadd.f32 %v347_v53, %v217_v54  ;;  %v3391_v60 = vadd.f32 %v2821_v56, %v284_v58 }
  0xb0   :  { %2825 = vtanh.f32 %v350_v55  ;;  %v2705_v33 = vmul.f32 -1.442695, %v350_v55 }
  0xb3   :  { %v286_v62 = vpop.f32.mrf.mxu3 }
  0xb4   :  { %v287_v63 = vadd.f32 %v286_v62, %v245_v59 }
  0xb6   :  { %v2826_v61 = vpop.eup %2825  ;;  %v3394_v0 = vadd.f32 %v2821_v56, %v287_v63 }
  0xb7   :  { %394 = vrot.lane.b32.xlu1 %v2826_v61, %s3083_s2 }
  0xbb   :  { %v289_v2 = vpop.f32.mrf.mxu3 }
  0xbc   :  { %v290_v3 = vadd.f32 %v289_v2, %v248_v1 }
  0xbe   :  { %v3396_v4 = vadd.f32 %v2821_v56, %v290_v3 }
  0xc3   :  { %v292_v6 = vpop.f32.mrf.mxu3 }
  0xc4   :  { %v293_v7 = vadd.f32 %v292_v6, %v251_v5 }
  0xc6   :  { %v3398_v8 = vadd.f32 %v2821_v56, %v293_v7 }
  0xcb   :  { %v295_v9 = vpop.f32.mrf.mxu3 }
  0xcc   :  { %v296_v10 = vadd.f32 %v295_v9, %v254_v39 }
  0xce   :  { %v3400_v12 = vadd.f32 %v2821_v56, %v296_v10 }
  0xd3   :  { %v298_v14 = vpop.f32.mrf.mxu3 }
  0xd4   :  { %v299_v16 = vadd.f32 %v298_v14, %v257_v42 }
  0xd6   :  { %v3402_v17 = vadd.f32 %v2821_v56, %v299_v16 }
  0xdb   :  { %v301_v19 = vpop.f32.mrf.mxu3 }
  0xdc   :  { %v302_v20 = vadd.f32 %v301_v19, %v260_v45 }
  0xde   :  { %v3404_v21 = vadd.f32 %v2821_v56, %v302_v20 }
  0xe3   :  { %v304_v22 = vpop.f32.mrf.mxu3 }
  0xe4   :  { %v305_v23 = vadd.f32 %v304_v22, %v263_v48 }
  0xe6   :  { %v318_v28 = vadd.f32 %v2821_v56, %v305_v23 }
  0xe8   :  { %v371_v30 = vadd.f32 %v368_v25, %v318_v28 }
  0xea   :  { %2827 = vtanh.f32 %v371_v30  ;;  %v2706_v56 = vmul.f32 -1.442695, %v371_v30 }
  0xeb   :  { %2829 = vpow2.f32 %v2705_v33 }
  0xf0   :  { %v2828_v32 = vpop.eup %2827 }
  0xf1   :  { %431 = vrot.lane.b32.xlu0 %v2828_v32, %s3083_s2  ;;  %v2830_v34 = vpop.eup %2829 }
  0xf2   :  { %v375_v35 = vadd.f32 1.0, %v2830_v34 }
  0xf4   :  { %2831 = vrcp.f32 %v375_v35  ;;  %vm381_vm2 = vweird.f32 %v375_v35  ;;  %v387_v45 = vand.u32 2147483648, %v375_v35  ;;  %v385_v49 = vand.u32 2147483647, %v375_v35 }
  0xf5   :  { %2833 = vpow2.f32 %v2706_v56 }
  0xf6   :  { %v388_v51 = vor.u32 1.1754944e-38, %v387_v45  ;;  %vm386_vm5 = vcmp.eq.f32.partialorder %v385_v49, 8.507059e+37 }
  0xfa   :  { %v2832_v36 = vpop.eup %2831 }
  0xfb   :  { %v377_v38 = vmul.f32 %v2832_v36, %v375_v35  ;;  %vm382_vm3 = vweird.f32 %v2832_v36  ;;  %v2834_v57 = vpop.eup %2833 }
  0xfc   :  { %vm383_vm4 = vmor %vm381_vm2, %vm382_vm3  ;;  %v412_v58 = vadd.f32 1.0, %v2834_v57 }
  0xfd   :  { %v378_v39 = vsub.f32 1.0, %v377_v38 }
  0xfe   :  { %2835 = vrcp.f32 %v412_v58  ;;  %v424_v2 = vand.u32 2147483648, %v412_v58  ;;  %vm418_vm7 = vweird.f32 %v412_v58  ;;  %v422_v3 = vand.u32 2147483647, %v412_v58 }
  0xff   :  { %v379_v42 = vmul.f32 %v2832_v36, %v378_v39 }
 0x100   :  { %v425_v6 = vor.u32 1.1754944e-38, %v424_v2  ;;  %vm423_vm9 = vcmp.eq.f32.partialorder %v422_v3, 8.507059e+37 }
 0x101   :  { %v380_v48 = vadd.f32 %v2832_v36, %v379_v42 }
 0x103   :  { %v384_v52 = vsel %vm383_vm4, %v2832_v36, %v380_v48  ;;  %v192_v36 = vpop.f32.mrf.mxu1 }
 0x104   :  { %v389_v53 = vsel %vm386_vm5, %v388_v51, %v384_v52  ;;  %v2836_v59 = vpop.eup %2835  ;;  %v193_v52 = vadd.f32 %v192_v36, %v3372_v41 }
 0x105   :  { %v414_v61 = vmul.f32 %v2836_v59, %v412_v58  ;;  %vm419_vm6 = vweird.f32 %v2836_v59  ;;  %v392_v14 = vmul.f32 0.0, %v389_v53 }
 0x106   :  { %vm420_vm8 = vmor %vm418_vm7, %vm419_vm6 }
 0x107   :  { %v415_v62 = vsub.f32 1.0, %v414_v61 }
 0x109   :  { %v416_v63 = vmul.f32 %v2836_v59, %v415_v62 }
 0x10b   :  { %v417_v1 = vadd.f32 %v2836_v59, %v416_v63  ;;  %v3433_v39 = vpop.f32.mrf.mxu1 }
 0x10d   :  { %v421_v5 = vsel %vm420_vm8, %v2836_v59, %v417_v1 }
 0x10e   :  { %v426_v9 = vsel %vm423_vm9, %v425_v6, %v421_v5 }
 0x10f   :  { %v429_v22 = vmul.f32 0.0, %v426_v9 }
 0x113   :  { %v3437_v42 = vpop.f32.mrf.mxu1 }
 0x11b   :  { %v3439_v45 = vpop.f32.mrf.mxu1 }
 0x123   :  { %v3441_v48 = vpop.f32.mrf.mxu1 }
 0x129   :  { %v395_v54 = vpop.permute.xlu1 %394 }
 0x12a   :  { %v397_v55 = vmul.f32 %v395_v54, %v389_v53 }
 0x12b   :  { %v3443_v49 = vpop.f32.mrf.mxu1 }
 0x12c   :  { %399 = vrot.lane.b32.xlu2 %v397_v55, %s3084_s7 }
 0x133   :  { %v3445_v51 = vpop.f32.mrf.mxu1 }
 0x163   :  { %v432_v7 = vpop.permute.xlu0 %431 }
 0x164   :  { %v434_v10 = vmul.f32 %v432_v7, %v426_v9 }
 0x166   :  { %436 = vrot.lane.b32.xlu0 %v434_v10, %s3084_s7 }
 0x186   :  { %v400_v16 = vpop.permute.xlu2 %399 }
 0x187   :  { %v3409_v19 = vadd.f32 %v400_v16, %v392_v14 }
 0x189   :  { %2837 = vtanh.f32 %v3409_v19 }
 0x18f   :  { %v2838_v20 = vpop.eup %2837 }
 0x190   :  { %405 = vrot.lane.b32.xlu0 %v2838_v20, %s3083_s2 }
 0x1d8   :  { %v437_v23 = vpop.permute.xlu0 %436 }
 0x1d9   :  { %v3413_v25 = vadd.f32 %v437_v23, %v429_v22 }
 0x1db   :  { %2839 = vtanh.f32 %v3413_v25 }
 0x1e1   :  { %v2840_v28 = vpop.eup %2839 }
 0x1e2   :  { %442 = vrot.lane.b32.xlu1 %v2840_v28, %s3083_s2 }
 0x202   :  { %v406_v30 = vpop.permute.xlu0 %405 }
 0x203   :  { %v408_v32 = vmul.f32 %v406_v30, %v389_v53  ;;  %v218_v53 = vadd.f32 %v3385_v50, %v193_v52 }
 0x205   :  { %447 = vrot.lane.b32.xlu1 %v408_v32, %s3084_s7 }
 0x254   :  { %v443_v33 = vpop.permute.xlu1 %442 }
 0x255   :  { %v445_v34 = vmul.f32 %v443_v33, %v426_v9 }
 0x257   :  { %473 = vrot.lane.b32.xlu2 %v445_v34, %s3084_s7 }
 0x277   :  { %v3419_v35 = vpop.permute.xlu1 %447 }
 0x278   :  { %2707 = vmatmul.msk.f32.vlgmr.msra.gmra.mxu1 %vm147_vm1, %v3419_v35 }
 0x279   :  { %967 = vmatpush.msra.mxu1 %v3209_v11 }
 0x27b   :  { %968 = vmatpush.msra.mxu1 %v3218_v13 }
 0x27d   :  { %969 = vmatpush.msra.mxu1 %v3226_v15 }
 0x27f   :  { %970 = vmatpush.msra.mxu1 %v3239_v18 }
 0x2b1   :  { %v3427_v38 = vpop.permute.xlu2 %473 }
 0x2b2   :  { %2708 = vmatmul.msk.f32.vlgmr.msra.gmra.mxu3 %vm147_vm1, %v3427_v38 }
 0x2b3   :  { %993 = vmatpush.msra.mxu3 %v3279_v24 }
 0x2b5   :  { %994 = vmatpush.msra.mxu3 %v3293_v26 }
 0x2b7   :  { %995 = vmatpush.msra.mxu3 %v3311_v29 }
 0x2b9   :  { %996 = vmatpush.msra.mxu3 %v3325_v31 }
 0x2f5   :  { %v468_v54 = vpop.f32.mrf.mxu1 }
 0x2f6   :  { %v471_v55 = vadd.f32 %v468_v54, %v218_v53 }
 0x2f8   :  { %2841 = vtanh.f32 %v471_v55  ;;  %v2709_v62 = vmul.f32 -1.442695, %v471_v55 }
 0x2fe   :  { %v2842_v56 = vpop.eup %2841 }
 0x2ff   :  { %520 = vrot.lane.b32.xlu1 %v2842_v56, %s3083_s2 }
 0x335   :  { %v494_v57 = vpop.f32.mrf.mxu3 }
 0x336   :  { %v497_v58 = vadd.f32 %v494_v57, %v3404_v21 }
 0x338   :  { %2843 = vtanh.f32 %v497_v58  ;;  %v2710_v61 = vmul.f32 -1.442695, %v497_v58 }
 0x33a   :  { %2845 = vpow2.f32 %v2710_v61 }
 0x33b   :  { %2847 = vpow2.f32 %v2709_v62 }
 0x33e   :  { %v2844_v59 = vpop.eup %2843 }
 0x33f   :  { %557 = vrot.lane.b32.xlu2 %v2844_v59, %s3083_s2 }
 0x340   :  { %v2846_v63 = vpop.eup %2845 }
 0x341   :  { %v538_v41 = vadd.f32 1.0, %v2846_v63  ;;  %v2848_v1 = vpop.eup %2847 }
 0x342   :  { %v501_v2 = vadd.f32 1.0, %v2848_v1 }
 0x343   :  { %2849 = vrcp.f32 %v538_v41  ;;  %v550_v16 = vand.u32 2147483648, %v538_v41  ;;  %vm544_vm11 = vweird.f32 %v538_v41  ;;  %v548_v20 = vand.u32 2147483647, %v538_v41 }
 0x344   :  { %2851 = vrcp.f32 %v501_v2  ;;  %v513_v36 = vand.u32 2147483648, %v501_v2  ;;  %vm507_vm15 = vweird.f32 %v501_v2  ;;  %v511_v52 = vand.u32 2147483647, %v501_v2 }
 0x345   :  { %v551_v28 = vor.u32 1.1754944e-38, %v550_v16  ;;  %vm549_vm13 = vcmp.eq.f32.partialorder %v548_v20, 8.507059e+37 }
 0x346   :  { %v514_v55 = vor.u32 1.1754944e-38, %v513_v36  ;;  %vm512_vm2 = vcmp.eq.f32.partialorder %v511_v52, 8.507059e+37 }
 0x349   :  { %v2850_v3 = vpop.eup %2849 }
 0x34a   :  { %v540_v5 = vmul.f32 %v2850_v3, %v538_v41  ;;  %v2852_v7 = vpop.eup %2851  ;;  %vm545_vm10 = vweird.f32 %v2850_v3 }
 0x34b   :  { %v503_v9 = vmul.f32 %v2852_v7, %v501_v2  ;;  %vm546_vm12 = vmor %vm544_vm11, %vm545_vm10  ;;  %vm508_vm14 = vweird.f32 %v2852_v7 }
 0x34c   :  { %v541_v6 = vsub.f32 1.0, %v540_v5  ;;  %vm509_vm0 = vmor %vm507_vm15, %vm508_vm14 }
 0x34d   :  { %v504_v10 = vsub.f32 1.0, %v503_v9  ;;  %v196_v9 = vadd.f32 %v3433_v39, %v3376_v44 }
 0x34e   :  { %v542_v21 = vmul.f32 %v2850_v3, %v541_v6 }
 0x34f   :  { %v505_v22 = vmul.f32 %v2852_v7, %v504_v10 }
 0x350   :  { %v543_v14 = vadd.f32 %v2850_v3, %v542_v21 }
 0x351   :  { %v506_v33 = vadd.f32 %v2852_v7, %v505_v22 }
 0x352   :  { %v547_v23 = vsel %vm546_vm12, %v2850_v3, %v543_v14  ;;  %v219_v14 = vadd.f32 %v3385_v50, %v196_v9 }
 0x353   :  { %v552_v32 = vsel %vm549_vm13, %v551_v28, %v547_v23  ;;  %v510_v53 = vsel %vm509_vm0, %v2852_v7, %v506_v33 }
 0x354   :  { %v515_v56 = vsel %vm512_vm2, %v514_v55, %v510_v53  ;;  %v555_v58 = vmul.f32 %v552_v32, %v3413_v25 }
 0x355   :  { %v518_v62 = vmul.f32 %v515_v56, %v3409_v19 }
 0x371   :  { %v521_v54 = vpop.permute.xlu1 %520 }
 0x372   :  { %v523_v57 = vmul.f32 %v521_v54, %v515_v56 }
 0x399   :  { %v558_v30 = vpop.permute.xlu2 %557 }
 0x39a   :  { %v560_v34 = vmul.f32 %v558_v30, %v552_v32 }
 0x39c   :  { %562 = vrot.lane.b32.xlu0 %v560_v34, %s3084_s7 }
 0x3a4   :  { %525 = vrot.lane.b32.xlu0 %v523_v57, %s3084_s7 }
 0x40e   :  { %v563_v59 = vpop.permute.xlu0 %562 }
 0x40f   :  { %v3455_v61 = vadd.f32 %v563_v59, %v555_v58 }
 0x411   :  { %2853 = vtanh.f32 %v3455_v61 }
 0x416   :  { %v526_v63 = vpop.permute.xlu0 %525 }
 0x417   :  { %v2854_v41 = vpop.eup %2853  ;;  %v3459_v1 = vadd.f32 %v526_v63, %v518_v62 }
 0x418   :  { %568 = vrot.lane.b32.xlu2 %v2854_v41, %s3083_s2 }
 0x419   :  { %2855 = vtanh.f32 %v3459_v1 }
 0x41f   :  { %v2856_v2 = vpop.eup %2855 }
 0x420   :  { %531 = vrot.lane.b32.xlu2 %v2856_v2, %s3083_s2 }
 0x472   :  { %v569_v3 = vpop.permute.xlu2 %568 }
 0x473   :  { %v571_v25 = vmul.f32 %v569_v3, %v552_v32 }
 0x475   :  { %599 = vrot.lane.b32.xlu1 %v571_v25, %s3084_s7 }
 0x47a   :  { %v532_v5 = vpop.permute.xlu2 %531 }
 0x47b   :  { %v534_v6 = vmul.f32 %v532_v5, %v515_v56 }
 0x47d   :  { %573 = vrot.lane.b32.xlu0 %v534_v6, %s3084_s7 }
 0x4e7   :  { %v3466_v19 = vpop.permute.xlu1 %599 }
 0x4e8   :  { %2712 = vmatmul.msk.f32.vlgmr.msra.gmra.mxu2 %vm147_vm1, %v3466_v19 }
 0x4e9   :  { %1119 = vmatpush.msra.mxu2 %v3279_v24 }
 0x4eb   :  { %1120 = vmatpush.msra.mxu2 %v3293_v26 }
 0x4ed   :  { %1121 = vmatpush.msra.mxu2 %v3311_v29 }
 0x4ef   :  { %v3473_v7 = vpop.permute.xlu0 %573  ;;  %1122 = vmatpush.msra.mxu2 %v3325_v31 }
 0x4f0   :  { %2711 = vmatmul.msk.f32.vlgmr.msra.gmra.mxu0 %vm147_vm1, %v3473_v7 }
 0x4f1   :  { %1093 = vmatpush.msra.mxu0 %v3209_v11 }
 0x4f3   :  { %1094 = vmatpush.msra.mxu0 %v3218_v13 }
 0x4f5   :  { %1095 = vmatpush.msra.mxu0 %v3226_v15 }
 0x4f7   :  { %1096 = vmatpush.msra.mxu0 %v3239_v18 }
 0x56b   :  { %v620_v21 = vpop.f32.mrf.mxu2 }
 0x56c   :  { %v623_v10 = vadd.f32 %v620_v21, %v3402_v17 }
 0x56d   :  { %v594_v16 = vpop.f32.mrf.mxu0 }
 0x56e   :  { %2857 = vtanh.f32 %v623_v10  ;;  %v597_v20 = vadd.f32 %v594_v16, %v219_v14  ;;  %v2714_v28 = vmul.f32 -1.442695, %v623_v10 }
 0x570   :  { %2859 = vtanh.f32 %v597_v20  ;;  %v2713_v30 = vmul.f32 -1.442695, %v597_v20 }
 0x571   :  { %2861 = vpow2.f32 %v2714_v28 }
 0x572   :  { %2863 = vpow2.f32 %v2713_v30 }
 0x574   :  { %v2858_v22 = vpop.eup %2857 }
 0x575   :  { %683 = vrot.lane.b32.xlu1 %v2858_v22, %s3083_s2 }
 0x576   :  { %v2860_v23 = vpop.eup %2859 }
 0x577   :  { %646 = vrot.lane.b32.xlu0 %v2860_v23, %s3083_s2  ;;  %v2862_v32 = vpop.eup %2861 }
 0x578   :  { %v664_v44 = vadd.f32 1.0, %v2862_v32  ;;  %v2864_v17 = vpop.eup %2863 }
 0x579   :  { %v627_v39 = vadd.f32 1.0, %v2864_v17 }
 0x57a   :  { %2865 = vrcp.f32 %v664_v44  ;;  %v676_v57 = vand.u32 2147483648, %v664_v44  ;;  %vm670_vm4 = vweird.f32 %v664_v44  ;;  %v674_v58 = vand.u32 2147483647, %v664_v44 }
 0x57b   :  { %2867 = vrcp.f32 %v627_v39  ;;  %v639_v5 = vand.u32 2147483648, %v627_v39  ;;  %vm633_vm8 = vweird.f32 %v627_v39  ;;  %v637_v6 = vand.u32 2147483647, %v627_v39 }
 0x57c   :  { %v677_v63 = vor.u32 1.1754944e-38, %v676_v57  ;;  %vm675_vm6 = vcmp.eq.f32.partialorder %v674_v58, 8.507059e+37 }
 0x57d   :  { %v640_v10 = vor.u32 1.1754944e-38, %v639_v5  ;;  %vm638_vm10 = vcmp.eq.f32.partialorder %v637_v6, 8.507059e+37 }
 0x580   :  { %v2866_v33 = vpop.eup %2865 }
 0x581   :  { %v666_v34 = vmul.f32 %v2866_v33, %v664_v44  ;;  %v2868_v52 = vpop.eup %2867  ;;  %vm671_vm3 = vweird.f32 %v2866_v33 }
 0x582   :  { %v629_v54 = vmul.f32 %v2868_v52, %v627_v39  ;;  %vm672_vm5 = vmor %vm670_vm4, %vm671_vm3  ;;  %vm634_vm7 = vweird.f32 %v2868_v52 }
 0x583   :  { %v667_v36 = vsub.f32 1.0, %v666_v34  ;;  %vm635_vm9 = vmor %vm633_vm8, %vm634_vm7 }
 0x584   :  { %v630_v56 = vsub.f32 1.0, %v629_v54 }
 0x585   :  { %v668_v53 = vmul.f32 %v2866_v33, %v667_v36 }
 0x586   :  { %v631_v62 = vmul.f32 %v2868_v52, %v630_v56 }
 0x587   :  { %v669_v55 = vadd.f32 %v2866_v33, %v668_v53 }
 0x588   :  { %v632_v25 = vadd.f32 %v2868_v52, %v631_v62 }
 0x589   :  { %v673_v59 = vsel %vm672_vm5, %v2866_v33, %v669_v55 }
 0x58a   :  { %v678_v2 = vsel %vm675_vm6, %v677_v63, %v673_v59  ;;  %v636_v9 = vsel %vm635_vm9, %v2868_v52, %v632_v25 }
 0x58b   :  { %v641_v14 = vsel %vm638_vm10, %v640_v10, %v636_v9  ;;  %v681_v20 = vmul.f32 %v678_v2, %v3455_v61 }
 0x58c   :  { %v644_v28 = vmul.f32 %v641_v14, %v3459_v1 }
 0x5e7   :  { %v684_v41 = vpop.permute.xlu1 %683 }
 0x5e8   :  { %v686_v3 = vmul.f32 %v684_v41, %v678_v2 }
 0x5e9   :  { %v647_v21 = vpop.permute.xlu0 %646 }
 0x5ea   :  { %688 = vrot.lane.b32.xlu2 %v686_v3, %s3084_s7  ;;  %v649_v16 = vmul.f32 %v647_v21, %v641_v14 }
 0x5f2   :  { %651 = vrot.lane.b32.xlu2 %v649_v16, %s3084_s7 }
 0x644   :  { %v689_v22 = vpop.permute.xlu2 %688 }
 0x645   :  { %v3491_v23 = vadd.f32 %v689_v22, %v681_v20 }
 0x647   :  { %2869 = vtanh.f32 %v3491_v23 }
 0x64c   :  { %v652_v30 = vpop.permute.xlu2 %651 }
 0x64d   :  { %v2870_v32 = vpop.eup %2869  ;;  %v3495_v44 = vadd.f32 %v652_v30, %v644_v28 }
 0x64e   :  { %694 = vrot.lane.b32.xlu1 %v2870_v32, %s3083_s2 }
 0x64f   :  { %2871 = vtanh.f32 %v3495_v44 }
 0x655   :  { %v2872_v17 = vpop.eup %2871 }
 0x656   :  { %657 = vrot.lane.b32.xlu1 %v2872_v17, %s3083_s2 }
 0x6c0   :  { %v695_v39 = vpop.permute.xlu1 %694 }
 0x6c1   :  { %v697_v61 = vmul.f32 %v695_v39, %v678_v2 }
 0x6c3   :  { %725 = vrot.lane.b32.xlu0 %v697_v61, %s3084_s7 }
 0x6c8   :  { %v658_v33 = vpop.permute.xlu1 %657 }
 0x6c9   :  { %v660_v34 = vmul.f32 %v658_v33, %v641_v14 }
 0x6cb   :  { %699 = vrot.lane.b32.xlu2 %v660_v34, %s3084_s7 }
 0x725   :  { %v3502_v1 = vpop.permute.xlu2 %699 }
 0x726   :  { %2715 = vmatmul.msk.f32.vlgmr.msrb.gmra.mxu1 %vm147_vm1, %v3502_v1 }
 0x727   :  { %1219 = vmatpush.msrb.mxu1 %v3209_v11  ;;  %v199_v11 = vadd.f32 %v3437_v42, %v3380_v47 }
 0x729   :  { %1220 = vmatpush.msrb.mxu1 %v3218_v13  ;;  %v220_v13 = vadd.f32 %v3385_v50, %v199_v11 }
 0x72b   :  { %1221 = vmatpush.msrb.mxu1 %v3226_v15 }
 0x72d   :  { %1222 = vmatpush.msrb.mxu1 %v3239_v18 }
 0x735   :  { %v3510_v36 = vpop.permute.xlu0 %725 }
 0x736   :  { %2716 = vmatmul.msk.f32.vlgmr.msrb.gmra.mxu3 %vm147_vm1, %v3510_v36 }
 0x737   :  { %1245 = vmatpush.msrb.mxu3 %v3279_v24 }
 0x739   :  { %1246 = vmatpush.msrb.mxu3 %v3293_v26 }
 0x73b   :  { %1247 = vmatpush.msrb.mxu3 %v3311_v29 }
 0x73d   :  { %1248 = vmatpush.msrb.mxu3 %v3325_v31 }
 0x7a3   :  { %v720_v15 = vpop.f32.mrf.mxu1 }
 0x7a4   :  { %v723_v18 = vadd.f32 %v720_v15, %v220_v13 }
 0x7a6   :  { %2873 = vtanh.f32 %v723_v18  ;;  %v2717_v31 = vmul.f32 -1.442695, %v723_v18 }
 0x7ac   :  { %v2874_v52 = vpop.eup %2873 }
 0x7ad   :  { %772 = vrot.lane.b32.xlu2 %v2874_v52, %s3083_s2 }
 0x7b9   :  { %v746_v53 = vpop.f32.mrf.mxu3 }
 0x7ba   :  { %v749_v24 = vadd.f32 %v746_v53, %v3400_v12 }
 0x7bc   :  { %2875 = vtanh.f32 %v749_v24  ;;  %v2718_v29 = vmul.f32 -1.442695, %v749_v24 }
 0x7be   :  { %2877 = vpow2.f32 %v2718_v29 }
 0x7bf   :  { %2879 = vpow2.f32 %v2717_v31 }
 0x7c2   :  { %v2876_v26 = vpop.eup %2875 }
 0x7c3   :  { %809 = vrot.lane.b32.xlu0 %v2876_v26, %s3083_s2 }
 0x7c4   :  { %v2878_v54 = vpop.eup %2877 }
 0x7c5   :  { %v790_v47 = vadd.f32 1.0, %v2878_v54  ;;  %v2880_v42 = vpop.eup %2879 }
 0x7c6   :  { %v753_v55 = vadd.f32 1.0, %v2880_v42 }
 0x7c7   :  { %2881 = vrcp.f32 %v790_v47  ;;  %v802_v2 = vand.u32 2147483648, %v790_v47  ;;  %vm796_vm12 = vweird.f32 %v790_v47  ;;  %v800_v3 = vand.u32 2147483647, %v790_v47 }
 0x7c8   :  { %2883 = vrcp.f32 %v753_v55  ;;  %v765_v16 = vand.u32 2147483648, %v753_v55  ;;  %vm759_vm0 = vweird.f32 %v753_v55  ;;  %v763_v20 = vand.u32 2147483647, %v753_v55 }
 0x7c9   :  { %v803_v6 = vor.u32 1.1754944e-38, %v802_v2  ;;  %vm801_vm14 = vcmp.eq.f32.partialorder %v800_v3, 8.507059e+37 }
 0x7ca   :  { %v766_v30 = vor.u32 1.1754944e-38, %v765_v16  ;;  %vm764_vm3 = vcmp.eq.f32.partialorder %v763_v20, 8.507059e+37 }
 0x7cd   :  { %v2882_v56 = vpop.eup %2881 }
 0x7ce   :  { %v792_v57 = vmul.f32 %v2882_v56, %v790_v47  ;;  %v2884_v59 = vpop.eup %2883  ;;  %vm797_vm11 = vweird.f32 %v2882_v56  ;;  %v202_v47 = vadd.f32 %v3439_v45, %v3368_v37 }
 0x7cf   :  { %v755_v62 = vmul.f32 %v2884_v59, %v753_v55  ;;  %vm798_vm13 = vmor %vm796_vm12, %vm797_vm11  ;;  %vm760_vm15 = vweird.f32 %v2884_v59 }
 0x7d0   :  { %v793_v58 = vsub.f32 1.0, %v792_v57  ;;  %vm761_vm2 = vmor %vm759_vm0, %vm760_vm15  ;;  %v221_v42 = vadd.f32 %v3385_v50, %v202_v47 }
 0x7d1   :  { %v756_v63 = vsub.f32 1.0, %v755_v62 }
 0x7d2   :  { %v794_v12 = vmul.f32 %v2882_v56, %v793_v58 }
 0x7d3   :  { %v757_v25 = vmul.f32 %v2884_v59, %v756_v63 }
 0x7d4   :  { %v795_v41 = vadd.f32 %v2882_v56, %v794_v12 }
 0x7d5   :  { %v758_v10 = vadd.f32 %v2884_v59, %v757_v25 }
 0x7d6   :  { %v799_v5 = vsel %vm798_vm13, %v2882_v56, %v795_v41 }
 0x7d7   :  { %v804_v21 = vsel %vm801_vm14, %v803_v6, %v799_v5  ;;  %v762_v22 = vsel %vm761_vm2, %v2884_v59, %v758_v10 }
 0x7d8   :  { %v767_v32 = vsel %vm764_vm3, %v766_v30, %v762_v22  ;;  %v807_v39 = vmul.f32 %v804_v21, %v3491_v23 }
 0x7d9   :  { %v770_v34 = vmul.f32 %v767_v32, %v3495_v44 }
 0x807   :  { %v773_v28 = vpop.permute.xlu2 %772 }
 0x808   :  { %v775_v17 = vmul.f32 %v773_v28, %v767_v32 }
 0x835   :  { %v810_v9 = vpop.permute.xlu0 %809 }
 0x836   :  { %v812_v14 = vmul.f32 %v810_v9, %v804_v21 }
 0x838   :  { %814 = vrot.lane.b32.xlu1 %v812_v14, %s3084_s7 }
 0x840   :  { %777 = vrot.lane.b32.xlu1 %v775_v17, %s3084_s7 }
 0x8aa   :  { %v815_v61 = vpop.permute.xlu1 %814 }
 0x8ab   :  { %v3527_v33 = vadd.f32 %v815_v61, %v807_v39 }
 0x8ad   :  { %2885 = vtanh.f32 %v3527_v33 }
 0x8b2   :  { %v778_v11 = vpop.permute.xlu1 %777 }
 0x8b3   :  { %v2886_v13 = vpop.eup %2885  ;;  %v3531_v15 = vadd.f32 %v778_v11, %v770_v34 }
 0x8b4   :  { %820 = vrot.lane.b32.xlu0 %v2886_v13, %s3083_s2 }
 0x8b5   :  { %2887 = vtanh.f32 %v3531_v15 }
 0x8bb   :  { %v2888_v18 = vpop.eup %2887 }
 0x8bc   :  { %783 = vrot.lane.b32.xlu0 %v2888_v18, %s3083_s2 }
 0x926   :  { %v821_v52 = vpop.permute.xlu0 %820 }
 0x927   :  { %v823_v23 = vmul.f32 %v821_v52, %v804_v21 }
 0x929   :  { %851 = vrot.lane.b32.xlu2 %v823_v23, %s3084_s7 }
 0x92e   :  { %v784_v53 = vpop.permute.xlu0 %783 }
 0x92f   :  { %v786_v24 = vmul.f32 %v784_v53, %v767_v32 }
 0x931   :  { %825 = vrot.lane.b32.xlu1 %v786_v24, %s3084_s7 }
 0x983   :  { %v3538_v44 = vpop.permute.xlu2 %851 }
 0x984   :  { %2720 = vmatmul.msk.f32.vlgmr.msrb.gmra.mxu2 %vm147_vm1, %v3538_v44 }
 0x9a3   :  { %v3542_v26 = vpop.permute.xlu1 %825 }
 0x9a4   :  { %2719 = vmatmul.msk.f32.vlgmr.msrb.gmra.mxu0 %vm147_vm1, %v3542_v26 }
 0xa07   :  { %v872_v29 = vpop.f32.mrf.mxu2 }
 0xa08   :  { %v875_v31 = vadd.f32 %v872_v29, %v3398_v8 }
 0xa0a   :  { %2889 = vtanh.f32 %v875_v31  ;;  %v2722_v58 = vmul.f32 -1.442695, %v875_v31 }
 0xa10   :  { %v2890_v54 = vpop.eup %2889 }
 0xa11   :  { %935 = vrot.lane.b32.xlu2 %v2890_v54, %s3083_s2 }
 0xa21   :  { %v846_v55 = vpop.f32.mrf.mxu0 }
 0xa22   :  { %v849_v56 = vadd.f32 %v846_v55, %v221_v42 }
 0xa24   :  { %2891 = vtanh.f32 %v849_v56  ;;  %v2721_v21 = vmul.f32 -1.442695, %v849_v56 }
 0xa25   :  { %2893 = vpow2.f32 %v2722_v58 }
 0xa2a   :  { %v2892_v57 = vpop.eup %2891 }
 0xa2b   :  { %898 = vrot.lane.b32.xlu1 %v2892_v57, %s3083_s2  ;;  %v2894_v59 = vpop.eup %2893 }
 0xa2c   :  { %v916_v62 = vadd.f32 1.0, %v2894_v59 }
 0xa2e   :  { %2895 = vrcp.f32 %v916_v62  ;;  %v928_v37 = vand.u32 2147483648, %v916_v62  ;;  %vm922_vm5 = vweird.f32 %v916_v62  ;;  %v926_v45 = vand.u32 2147483647, %v916_v62 }
 0xa2f   :  { %2897 = vpow2.f32 %v2721_v21 }
 0xa30   :  { %v929_v25 = vor.u32 1.1754944e-38, %v928_v37  ;;  %vm927_vm7 = vcmp.eq.f32.partialorder %v926_v45, 8.507059e+37 }
 0xa34   :  { %v2896_v8 = vpop.eup %2895 }
 0xa35   :  { %v918_v12 = vmul.f32 %v2896_v8, %v916_v62  ;;  %vm923_vm4 = vweird.f32 %v2896_v8  ;;  %v2898_v10 = vpop.eup %2897  ;;  %v205_v62 = vadd.f32 %v3441_v48, %v3370_v40 }
 0xa36   :  { %vm924_vm6 = vmor %vm922_vm5, %vm923_vm4  ;;  %v879_v14 = vadd.f32 1.0, %v2898_v10 }
 0xa37   :  { %v919_v63 = vsub.f32 1.0, %v918_v12 }
 0xa38   :  { %2899 = vrcp.f32 %v879_v14  ;;  %v891_v32 = vand.u32 2147483648, %v879_v14  ;;  %vm885_vm9 = vweird.f32 %v879_v14  ;;  %v889_v17 = vand.u32 2147483647, %v879_v14 }
 0xa39   :  { %v920_v41 = vmul.f32 %v2896_v8, %v919_v63 }
 0xa3a   :  { %v892_v61 = vor.u32 1.1754944e-38, %v891_v32  ;;  %vm890_vm11 = vcmp.eq.f32.partialorder %v889_v17, 8.507059e+37 }
 0xa3b   :  { %v921_v2 = vadd.f32 %v2896_v8, %v920_v41 }
 0xa3d   :  { %v925_v3 = vsel %vm924_vm6, %v2896_v8, %v921_v2  ;;  %v222_v8 = vadd.f32 %v3385_v50, %v205_v62 }
 0xa3e   :  { %v930_v6 = vsel %vm927_vm7, %v929_v25, %v925_v3  ;;  %v2900_v16 = vpop.eup %2899 }
 0xa3f   :  { %v881_v20 = vmul.f32 %v2900_v16, %v879_v14  ;;  %vm886_vm8 = vweird.f32 %v2900_v16  ;;  %v933_v18 = vmul.f32 %v930_v6, %v3527_v33 }
 0xa40   :  { %vm887_vm10 = vmor %vm885_vm9, %vm886_vm8 }
 0xa41   :  { %v882_v22 = vsub.f32 1.0, %v881_v20 }
 0xa43   :  { %v883_v28 = vmul.f32 %v2900_v16, %v882_v22 }
 0xa45   :  { %v884_v30 = vadd.f32 %v2900_v16, %v883_v28 }
 0xa47   :  { %v888_v39 = vsel %vm887_vm10, %v2900_v16, %v884_v30 }
 0xa48   :  { %v893_v11 = vsel %vm890_vm11, %v892_v61, %v888_v39 }
 0xa49   :  { %v896_v24 = vmul.f32 %v893_v11, %v3531_v15 }
 0xa6b   :  { %v936_v5 = vpop.permute.xlu2 %935 }
 0xa6c   :  { %v938_v9 = vmul.f32 %v936_v5, %v930_v6 }
 0xa6e   :  { %940 = vrot.lane.b32.xlu0 %v938_v9, %s3084_s7 }
 0xa9d   :  { %v899_v34 = vpop.permute.xlu1 %898 }
 0xa9e   :  { %v901_v13 = vmul.f32 %v899_v34, %v893_v11 }
 0xaa0   :  { %903 = vrot.lane.b32.xlu0 %v901_v13, %s3084_s7 }
 0xae0   :  { %v941_v52 = vpop.permute.xlu0 %940 }
 0xae1   :  { %v3555_v23 = vadd.f32 %v941_v52, %v933_v18 }
 0xae3   :  { %2901 = vtanh.f32 %v3555_v23 }
 0xae9   :  { %v2902_v53 = vpop.eup %2901 }
 0xaea   :  { %946 = vrot.lane.b32.xlu2 %v2902_v53, %s3083_s2 }
 0xb12   :  { %v904_v29 = vpop.permute.xlu0 %903 }
 0xb13   :  { %v3560_v31 = vadd.f32 %v904_v29, %v896_v24 }
 0xb15   :  { %2903 = vtanh.f32 %v3560_v31 }
 0xb1b   :  { %v2904_v54 = vpop.eup %2903 }
 0xb1c   :  { %909 = vrot.lane.b32.xlu2 %v2904_v54, %s3083_s2 }
 0xb44   :  { %v947_v47 = vpop.permute.xlu2 %946 }
 0xb45   :  { %v949_v33 = vmul.f32 %v947_v47, %v930_v6 }
 0xb47   :  { %977 = vrot.lane.b32.xlu1 %v949_v33, %s3084_s7 }
 0xb76   :  { %v910_v42 = vpop.permute.xlu2 %909 }
 0xb77   :  { %v912_v55 = vmul.f32 %v910_v42, %v893_v11 }
 0xb79   :  { %951 = vrot.lane.b32.xlu0 %v912_v55, %s3084_s7 }
 0xbb9   :  { %v3566_v56 = vpop.permute.xlu1 %977 }
 0xbba   :  { %2724 = vmatmul.msk.f32.vlgmr.msra.gmra.mxu3 %vm147_vm1, %v3566_v56 }
 0xbeb   :  { %v3570_v15 = vpop.permute.xlu0 %951 }
 0xbec   :  { %2723 = vmatmul.msk.f32.vlgmr.msra.gmra.mxu1 %vm147_vm1, %v3570_v15 }
 0xc3d   :  { %v998_v57 = vpop.f32.mrf.mxu3 }
 0xc3e   :  { %v1001_v58 = vadd.f32 %v998_v57, %v3396_v4 }
 0xc40   :  { %2905 = vtanh.f32 %v1001_v58  ;;  %v2726_v2 = vmul.f32 -1.442695, %v1001_v58 }
 0xc46   :  { %v2906_v59 = vpop.eup %2905 }
 0xc47   :  { %1061 = vrot.lane.b32.xlu1 %v2906_v59, %s3083_s2 }
 0xc69   :  { %v972_v12 = vpop.f32.mrf.mxu1 }
 0xc6a   :  { %v975_v63 = vadd.f32 %v972_v12, %v222_v8  ;;  %v1330_v8 = vld [vmem:[%s4170_s8 + $0x10] sm:$0xff]  ;;  %v1329_v12 = vld [vmem:[%s4170_s8 + $0x8] sm:$0xff] }
 0xc6c   :  { %2907 = vtanh.f32 %v975_v63  ;;  %v2725_v21 = vmul.f32 -1.442695, %v975_v63  ;;  %v1328_v63 = vld [vmem:[%s4170_s8] sm:$0xff] }
 0xc6d   :  { %2909 = vpow2.f32 %v2726_v2 }
 0xc72   :  { %v2908_v41 = vpop.eup %2907 }
 0xc73   :  { %1024 = vrot.lane.b32.xlu0 %v2908_v41, %s3083_s2  ;;  %v2910_v37 = vpop.eup %2909 }
 0xc74   :  { %v1042_v45 = vadd.f32 1.0, %v2910_v37 }
 0xc76   :  { %2911 = vrcp.f32 %v1042_v45  ;;  %v1054_v40 = vand.u32 2147483648, %v1042_v45  ;;  %vm1048_vm13 = vweird.f32 %v1042_v45  ;;  %v1052_v50 = vand.u32 2147483647, %v1042_v45 }
 0xc77   :  { %2913 = vpow2.f32 %v2725_v21 }
 0xc78   :  { %v1055_v9 = vor.u32 1.1754944e-38, %v1054_v40  ;;  %vm1053_vm15 = vcmp.eq.f32.partialorder %v1052_v50, 8.507059e+37 }
 0xc7c   :  { %v2912_v4 = vpop.eup %2911 }
 0xc7d   :  { %v1044_v3 = vmul.f32 %v2912_v4, %v1042_v45  ;;  %vm1049_vm12 = vweird.f32 %v2912_v4  ;;  %v2914_v20 = vpop.eup %2913 }
 0xc7e   :  { %vm1050_vm14 = vmor %vm1048_vm13, %vm1049_vm12  ;;  %v1005_v22 = vadd.f32 1.0, %v2914_v20 }
 0xc7f   :  { %v1045_v25 = vsub.f32 1.0, %v1044_v3  ;;  %v208_v3 = vadd.f32 %v3443_v49, %v3374_v43 }
 0xc80   :  { %2915 = vrcp.f32 %v1005_v22  ;;  %v1017_v61 = vand.u32 2147483648, %v1005_v22  ;;  %vm1011_vm2 = vweird.f32 %v1005_v22  ;;  %v1015_v34 = vand.u32 2147483647, %v1005_v22 }
 0xc81   :  { %v1046_v5 = vmul.f32 %v2912_v4, %v1045_v25  ;;  %v3633_v25 = vld [vmem:[%s4168_s4] ss:$0 sm:$0xff] }
 0xc82   :  { %v1018_v13 = vor.u32 1.1754944e-38, %v1017_v61  ;;  %vm1016_vm4 = vcmp.eq.f32.partialorder %v1015_v34, 8.507059e+37 }
 0xc83   :  { %v1047_v6 = vadd.f32 %v2912_v4, %v1046_v5  ;;  %v223_v5 = vadd.f32 %v3633_v25, %v208_v3 }
 0xc85   :  { %v1051_v48 = vsel %vm1050_vm14, %v2912_v4, %v1047_v6 }
 0xc86   :  { %v1056_v14 = vsel %vm1053_vm15, %v1055_v9, %v1051_v48  ;;  %v2916_v28 = vpop.eup %2915 }
 0xc87   :  { %v1007_v30 = vmul.f32 %v2916_v28, %v1005_v22  ;;  %vm1012_vm0 = vweird.f32 %v2916_v28  ;;  %v1059_v24 = vmul.f32 %v1056_v14, %v3555_v23 }
 0xc88   :  { %vm1013_vm3 = vmor %vm1011_vm2, %vm1012_vm0 }
 0xc89   :  { %v1008_v32 = vsub.f32 1.0, %v1007_v30 }
 0xc8b   :  { %v1009_v17 = vmul.f32 %v2916_v28, %v1008_v32 }
 0xc8d   :  { %v1010_v39 = vadd.f32 %v2916_v28, %v1009_v17 }
 0xc8f   :  { %v1014_v11 = vsel %vm1013_vm3, %v2916_v28, %v1010_v39 }
 0xc90   :  { %v1019_v52 = vsel %vm1016_vm4, %v1018_v13, %v1014_v11 }
 0xc91   :  { %v1022_v33 = vmul.f32 %v1019_v52, %v3560_v31  ;;  %v1331_v31 = vld [vmem:[%s4170_s8 + $0x18] sm:$0xff] }
 0xc92   :  { %1407 = vmatpush.msrb.mxu2 %v1331_v31 }
 0xc94   :  { %1408 = vmatpush.msrb.mxu2 %v1330_v8 }
 0xc96   :  { %1409 = vmatpush.msrb.mxu2 %v1329_v12 }
 0xc98   :  { %1410 = vmatpush.msrb.mxu2 %v1328_v63 }
 0xcb9   :  { %v1062_v10 = vpop.permute.xlu1 %1061 }
 0xcba   :  { %v1064_v16 = vmul.f32 %v1062_v10, %v1056_v14 }
 0xcbc   :  { %1066 = vrot.lane.b32.xlu2 %v1064_v16, %s3084_s7 }
 0xce5   :  { %v1025_v18 = vpop.permute.xlu0 %1024 }
 0xce6   :  { %v1027_v53 = vmul.f32 %v1025_v18, %v1019_v52 }
 0xce8   :  { %1029 = vrot.lane.b32.xlu2 %v1027_v53, %s3084_s7 }
 0xd16   :  { %v1067_v29 = vpop.permute.xlu2 %1066 }
 0xd17   :  { %v3583_v54 = vadd.f32 %v1067_v29, %v1059_v24 }
 0xd19   :  { %2917 = vtanh.f32 %v3583_v54 }
 0xd1f   :  { %v2918_v47 = vpop.eup %2917 }
 0xd20   :  { %1072 = vrot.lane.b32.xlu1 %v2918_v47, %s3083_s2 }
 0xd42   :  { %v1030_v42 = vpop.permute.xlu2 %1029 }
 0xd43   :  { %v3588_v55 = vadd.f32 %v1030_v42, %v1022_v33 }
 0xd45   :  { %2919 = vtanh.f32 %v3588_v55 }
 0xd4b   :  { %v2920_v57 = vpop.eup %2919 }
 0xd4c   :  { %1035 = vrot.lane.b32.xlu1 %v2920_v57, %s3083_s2 }
 0xd92   :  { %v1073_v58 = vpop.permute.xlu1 %1072 }
 0xd93   :  { %v1075_v23 = vmul.f32 %v1073_v58, %v1056_v14 }
 0xd95   :  { %1103 = vrot.lane.b32.xlu0 %v1075_v23, %s3084_s7 }
 0xdbe   :  { %v1036_v59 = vpop.permute.xlu1 %1035 }
 0xdbf   :  { %v1038_v62 = vmul.f32 %v1036_v59, %v1019_v52 }
 0xdc1   :  { %1077 = vrot.lane.b32.xlu2 %v1038_v62, %s3084_s7 }
 0xe07   :  { %v3606_v41 = vpop.permute.xlu0 %1103 }
 0xe08   :  { %2728 = vmatmul.msk.f32.vlgmr.msra.gmra.mxu2 %vm147_vm1, %v3606_v41 }
 0xe10   :  { %2743 = vmatmul.msk.f32.vlgmr.msrb.gmra.mxu2 %vm147_vm1, %v3419_v35 }
 0xe18   :  { %2744 = vmatmul.msk.f32.gmra.mxu2 %vm147_vm1, %v3473_v7 }
 0xe1b   :  { %v3614_v2 = vpop.permute.xlu2 %1077 }
 0xe1c   :  { %2727 = vmatmul.msk.f32.vlgmr.msra.gmra.mxu0 %vm147_vm1, %v3614_v2 }
 0xe20   :  { %2745 = vmatmul.msk.f32.gmra.mxu2 %vm147_vm1, %v3502_v1 }
 0xe28   :  { %2746 = vmatmul.msk.f32.gmra.mxu2 %vm147_vm1, %v3542_v26 }
 0xe30   :  { %2747 = vmatmul.msk.f32.gmra.mxu2 %vm147_vm1, %v3570_v15 }
 0xe38   :  { %2748 = vmatmul.msk.f32.gmra.mxu2 %vm147_vm1, %v3614_v2 }
 0xe8b   :  { %v1124_v37 = vpop.f32.mrf.mxu2 }
 0xe8c   :  { %v1127_v45 = vadd.f32 %v1124_v37, %v3394_v0 }
 0xe8e   :  { %2921 = vtanh.f32 %v1127_v45  ;;  %v2730_v0 = vmul.f32 -1.442695, %v1127_v45 }
 0xe94   :  { %v2922_v4 = vpop.eup %2921 }
 0xe95   :  { %1187 = vrot.lane.b32.xlu0 %v2922_v4, %s3083_s2 }
 0xe99   :  { %v1098_v6 = vpop.f32.mrf.mxu0 }
 0xe9a   :  { %v1101_v40 = vadd.f32 %v1098_v6, %v223_v5  ;;  %v1338_v5 = vld [vmem:[%s4171_s11 + $0x10] sm:$0xff]  ;;  %v1337_v6 = vld [vmem:[%s4171_s11 + $0x8] sm:$0xff] }
 0xe9c   :  { %2923 = vtanh.f32 %v1101_v40  ;;  %v2729_v48 = vmul.f32 -1.442695, %v1101_v40  ;;  %v1336_v40 = vld [vmem:[%s4171_s11] sm:$0xff] }
 0xe9d   :  { %2925 = vpow2.f32 %v2730_v0 }
 0xe9e   :  { %2927 = vpow2.f32 %v2729_v48  ;;  %v211_v48 = vadd.f32 %v3445_v51, %v3378_v46 }
 0xea2   :  { %v2924_v50 = vpop.eup %2923 }
 0xea3   :  { %1150 = vrot.lane.b32.xlu2 %v2924_v50, %s3083_s2  ;;  %v2926_v9 = vpop.eup %2925 }
 0xea4   :  { %v1168_v43 = vadd.f32 1.0, %v2926_v9  ;;  %v2928_v49 = vpop.eup %2927 }
 0xea5   :  { %v1131_v21 = vadd.f32 1.0, %v2928_v49 }
 0xea6   :  { %2929 = vrcp.f32 %v1168_v43  ;;  %v1180_v17 = vand.u32 2147483648, %v1168_v43  ;;  %vm1174_vm6 = vweird.f32 %v1168_v43  ;;  %v1178_v39 = vand.u32 2147483647, %v1168_v43 }
 0xea7   :  { %2931 = vrcp.f32 %v1131_v21  ;;  %v1143_v24 = vand.u32 2147483648, %v1131_v21  ;;  %vm1137_vm10 = vweird.f32 %v1131_v21  ;;  %v1141_v29 = vand.u32 2147483647, %v1131_v21 }
 0xea8   :  { %v1181_v11 = vor.u32 1.1754944e-38, %v1180_v17  ;;  %vm1179_vm8 = vcmp.eq.f32.partialorder %v1178_v39, 8.507059e+37 }
 0xea9   :  { %v1144_v42 = vor.u32 1.1754944e-38, %v1143_v24  ;;  %vm1142_vm12 = vcmp.eq.f32.partialorder %v1141_v29, 8.507059e+37 }
 0xeac   :  { %v2930_v10 = vpop.eup %2929 }
 0xead   :  { %v1170_v14 = vmul.f32 %v2930_v10, %v1168_v43  ;;  %v2932_v20 = vpop.eup %2931  ;;  %vm1175_vm5 = vweird.f32 %v2930_v10 }
 0xeae   :  { %v1133_v22 = vmul.f32 %v2932_v20, %v1131_v21  ;;  %vm1176_vm7 = vmor %vm1174_vm6, %vm1175_vm5  ;;  %vm1138_vm9 = vweird.f32 %v2932_v20 }
 0xeaf   :  { %v1171_v16 = vsub.f32 1.0, %v1170_v14  ;;  %vm1139_vm11 = vmor %vm1137_vm10, %vm1138_vm9 }
 0xeb0   :  { %v1134_v30 = vsub.f32 1.0, %v1133_v22 }
 0xeb1   :  { %v1172_v28 = vmul.f32 %v2930_v10, %v1171_v16 }
 0xeb2   :  { %v1135_v61 = vmul.f32 %v2932_v20, %v1134_v30 }
 0xeb3   :  { %v1173_v32 = vadd.f32 %v2930_v10, %v1172_v28 }
 0xeb4   :  { %v1136_v52 = vadd.f32 %v2932_v20, %v1135_v61 }
 0xeb5   :  { %v1177_v34 = vsel %vm1176_vm7, %v2930_v10, %v1173_v32 }
 0xeb6   :  { %v1182_v18 = vsel %vm1179_vm8, %v1181_v11, %v1177_v34  ;;  %v1140_v47 = vsel %vm1139_vm11, %v2932_v20, %v1136_v52 }
 0xeb7   :  { %v1145_v57 = vsel %vm1142_vm12, %v1144_v42, %v1140_v47  ;;  %v1185_v23 = vmul.f32 %v1182_v18, %v3583_v54 }
 0xeb8   :  { %v1148_v31 = vmul.f32 %v1145_v57, %v3588_v55  ;;  %v1339_v55 = vld [vmem:[%s4171_s11 + $0x18] sm:$0xff] }
 0xeb9   :  { %1501 = vmatpush.msra.mxu3 %v1339_v55  ;;  %v1341_v55 = vld [vmem:[%s4171_s11 + $0x28] sm:$0xff] }
 0xebb   :  { %1502 = vmatpush.msra.mxu3 %v1338_v5  ;;  %v1333_v5 = vld [vmem:[%s4170_s8 + $0x28] sm:$0xff] }
 0xebd   :  { %1503 = vmatpush.msra.mxu3 %v1337_v6  ;;  %v1340_v6 = vld [vmem:[%s4171_s11 + $0x20] sm:$0xff] }
 0xebf   :  { %1504 = vmatpush.msra.mxu3 %v1336_v40  ;;  %v1332_v40 = vld [vmem:[%s4170_s8 + $0x20] sm:$0xff] }
 0xefd   :  { %v1151_v33 = vpop.permute.xlu2 %1150 }
 0xefe   :  { %v1153_v58 = vmul.f32 %v1151_v33, %v1145_v57 }
 0xf07   :  { %v1188_v13 = vpop.permute.xlu0 %1187 }
 0xf08   :  { %v1190_v53 = vmul.f32 %v1188_v13, %v1182_v18 }
 0xf0a   :  { %1192 = vrot.lane.b32.xlu1 %v1190_v53, %s3084_s7 }
 0xf12   :  { %1155 = vrot.lane.b32.xlu1 %v1153_v58, %s3084_s7 }
 0xf7c   :  { %v1193_v59 = vpop.permute.xlu1 %1192 }
 0xf7d   :  { %v3640_v62 = vadd.f32 %v1193_v59, %v1185_v23 }
 0xf7f   :  { %2933 = vtanh.f32 %v3640_v62 }
 0xf84   :  { %v1156_v8 = vpop.permute.xlu1 %1155 }
 0xf85   :  { %v2934_v12 = vpop.eup %2933  ;;  %v3644_v63 = vadd.f32 %v1156_v8, %v1148_v31 }
 0xf86   :  { %1198 = vrot.lane.b32.xlu0 %v2934_v12, %s3083_s2 }
 0xf87   :  { %2935 = vtanh.f32 %v3644_v63 }
 0xf8d   :  { %v2936_v37 = vpop.eup %2935 }
 0xf8e   :  { %1161 = vrot.lane.b32.xlu0 %v2936_v37, %s3083_s2 }
 0xff8   :  { %v1199_v45 = vpop.permute.xlu0 %1198 }
 0xff9   :  { %v1201_v54 = vmul.f32 %v1199_v45, %v1182_v18 }
 0xffb   :  { %1229 = vrot.lane.b32.xlu2 %v1201_v54, %s3084_s7  ;;  %v3697_v54 = vld [vmem:[%s4172_s12 + $0x18] sm:$0xff] }
 0xffc   :  { %1583 = vmatpush.msra.mxu2 %v3697_v54 }
0x1000   :  { %v1162_v4 = vpop.permute.xlu0 %1161 }
0x1001   :  { %v1164_v3 = vmul.f32 %v1162_v4, %v1145_v57  ;;  %v1335_v4 = vld [vmem:[%s4170_s8 + $0x38] sm:$0xff] }
0x1002   :  { %1361 = vmatpush.msrb.mxu0 %v1335_v4 }
0x1003   :  { %1203 = vrot.lane.b32.xlu1 %v1164_v3, %s3084_s7  ;;  %v1334_v3 = vld [vmem:[%s4170_s8 + $0x30] sm:$0xff] }
0x1004   :  { %1362 = vmatpush.msrb.mxu0 %v1334_v3 }
0x1006   :  { %1363 = vmatpush.msrb.mxu0 %v1333_v5 }
0x1008   :  { %1364 = vmatpush.msrb.mxu0 %v1332_v40 }
0x1055   :  { %v3663_v50 = vpop.permute.xlu2 %1229 }
0x1056   :  { %2732 = vmatmul.msk.f32.vlgmr.msrb.gmra.mxu3 %vm147_vm1, %v3663_v50 }
0x1057   :  { %1709 = vmatpush.msrb.mxu3 %v3697_v54 }
0x105e   :  { %2759 = vmatmul.msk.f32.vlgmr.msra.gmra.mxu3 %vm147_vm1, %v3419_v35 }
0x1066   :  { %2760 = vmatmul.msk.f32.gmra.mxu3 %vm147_vm1, %v3473_v7 }
0x106e   :  { %2761 = vmatmul.msk.f32.gmra.mxu3 %vm147_vm1, %v3502_v1 }
0x1075   :  { %v1204_v0 = vpop.permute.xlu1 %1203 }
0x1076   :  { %2731 = vmatmul.msk.f32.vlgmr.msrb.gmra.mxu1 %vm147_vm1, %v1204_v0  ;;  %2749 = vmatmul.msk.f32.gmra.mxu2 %vm147_vm1, %v1204_v0 }
0x1077   :  { %2762 = vmatmul.msk.f32.gmra.mxu3 %vm147_vm1, %v3542_v26  ;;  %v224_v26 = vadd.f32 %v3633_v25, %v211_v48  ;;  %v3730_v48 = vld [vmem:[%s4172_s12 + $0x10] sm:$0xff] }
0x1078   :  { %1584 = vmatpush.msra.mxu2 %v3730_v48  ;;  %1710 = vmatpush.msrb.mxu3 %v3730_v48 }
0x107f   :  { %2763 = vmatmul.msk.f32.gmra.mxu3 %vm147_vm1, %v3570_v15 }
0x1087   :  { %2764 = vmatmul.msk.f32.gmra.mxu3 %vm147_vm1, %v3614_v2 }
0x108f   :  { %2765 = vmatmul.msk.f32.gmra.mxu3 %vm147_vm1, %v1204_v0 }
0x10d9   :  { %v1250_v35 = vpop.f32.mrf.mxu3 }
0x10da   :  { %v1253_v7 = vadd.f32 %v1250_v35, %v3391_v60 }
0x10dc   :  { %2937 = vtanh.f32 %v1253_v7  ;;  %v2734_v2 = vmul.f32 -1.442695, %v1253_v7 }
0x10e2   :  { %v2938_v1 = vpop.eup %2937 }
0x10e3   :  { %1313 = vrot.lane.b32.xlu2 %v2938_v1, %s3083_s2 }
0x10f3   :  { %v1224_v9 = vpop.f32.mrf.mxu1 }
0x10f4   :  { %v1227_v43 = vadd.f32 %v1224_v9, %v224_v26  ;;  %v3737_v26 = vld [vmem:[%s4172_s12 + $0x8] sm:$0xff] }
0x10f5   :  { %1585 = vmatpush.msra.mxu2 %v3737_v26  ;;  %1711 = vmatpush.msrb.mxu3 %v3737_v26 }
0x10f6   :  { %2939 = vtanh.f32 %v1227_v43  ;;  %v2733_v17 = vmul.f32 -1.442695, %v1227_v43  ;;  %v3746_v43 = vld [vmem:[%s4172_s12] sm:$0xff] }
0x10f7   :  { %2941 = vpow2.f32 %v2734_v2  ;;  %1586 = vmatpush.msra.mxu2 %v3746_v43  ;;  %1712 = vmatpush.msrb.mxu3 %v3746_v43  ;;  %v3785_v2 = vld [vmem:[%s4175_s9 + $0x10] sm:$0xff] }
0x10f9   :  { %1835 = vmatpush.msrb.mxu2 %v3697_v54  ;;  %1961 = vmatpush.msra.mxu3 %v3697_v54 }
0x10fb   :  { %1836 = vmatpush.msrb.mxu2 %v3730_v48  ;;  %1962 = vmatpush.msra.mxu3 %v3730_v48 }
0x10fc   :  { %v2940_v15 = vpop.eup %2939 }
0x10fd   :  { %1276 = vrot.lane.b32.xlu1 %v2940_v15, %s3083_s2  ;;  %v2942_v49 = vpop.eup %2941  ;;  %1837 = vmatpush.msrb.mxu2 %v3737_v26 }
0x10fe   :  { %v1294_v21 = vadd.f32 1.0, %v2942_v49  ;;  %1963 = vmatpush.msra.mxu3 %v3737_v26 }
0x10ff   :  { %1838 = vmatpush.msrb.mxu2 %v3746_v43 }
0x1100   :  { %2943 = vrcp.f32 %v1294_v21  ;;  %v1306_v46 = vand.u32 2147483648, %v1294_v21  ;;  %vm1300_vm14 = vweird.f32 %v1294_v21  ;;  %v1304_v51 = vand.u32 2147483647, %v1294_v21  ;;  %1964 = vmatpush.msra.mxu3 %v3746_v43 }
0x1101   :  { %2945 = vpow2.f32 %v2733_v17 }
0x1102   :  { %v1307_v22 = vor.u32 1.1754944e-38, %v1306_v46  ;;  %vm1305_vm0 = vcmp.eq.f32.partialorder %v1304_v51, 8.507059e+37 }
0x1106   :  { %v2944_v60 = vpop.eup %2943 }
0x1107   :  { %v1296_v10 = vmul.f32 %v2944_v60, %v1294_v21  ;;  %vm1301_vm13 = vweird.f32 %v2944_v60  ;;  %v2946_v39 = vpop.eup %2945  ;;  %v2822_v21 = vld [vmem:[%s4173_s13] ss:$0 sm:$0xff] }
0x1108   :  { %vm1302_vm15 = vmor %vm1300_vm14, %vm1301_vm13  ;;  %v1257_v61 = vadd.f32 1.0, %v2946_v39 }
0x1109   :  { %v1297_v14 = vsub.f32 1.0, %v1296_v10 }
0x110a   :  { %2947 = vrcp.f32 %v1257_v61  ;;  %v1269_v53 = vand.u32 2147483648, %v1257_v61  ;;  %vm1263_vm3 = vweird.f32 %v1257_v61  ;;  %v1267_v24 = vand.u32 2147483647, %v1257_v61 }
0x110b   :  { %v1298_v16 = vmul.f32 %v2944_v60, %v1297_v14 }
0x110c   :  { %v1270_v47 = vor.u32 1.1754944e-38, %v1269_v53  ;;  %vm1268_vm5 = vcmp.eq.f32.partialorder %v1267_v24, 8.507059e+37 }
0x110d   :  { %v1299_v20 = vadd.f32 %v2944_v60, %v1298_v16 }
0x110f   :  { %v1303_v25 = vsel %vm1302_vm15, %v2944_v60, %v1299_v20 }
0x1110   :  { %v1308_v30 = vsel %vm1305_vm0, %v1307_v22, %v1303_v25  ;;  %v2948_v34 = vpop.eup %2947  ;;  %v2823_v25 = vld [vmem:[%s4174_s10] ss:$0 sm:$0xff] }
0x1111   :  { %v1259_v11 = vmul.f32 %v2948_v34, %v1257_v61  ;;  %vm1264_vm2 = vweird.f32 %v2948_v34  ;;  %v1311_v58 = vmul.f32 %v1308_v30, %v3640_v62  ;;  %v1343_v62 = vld [vmem:[%s4171_s11 + $0x38] sm:$0xff] }
0x1112   :  { %vm1265_vm4 = vmor %vm1263_vm3, %vm1264_vm2  ;;  %1460 = vmatpush.msra.mxu1 %v1343_v62 }
0x1113   :  { %v1260_v13 = vsub.f32 1.0, %v1259_v11 }
0x1115   :  { %v1261_v18 = vmul.f32 %v2948_v34, %v1260_v13 }
0x1117   :  { %v1262_v52 = vadd.f32 %v2948_v34, %v1261_v18 }
0x1119   :  { %v1266_v29 = vsel %vm1265_vm4, %v2948_v34, %v1262_v52 }
0x111a   :  { %v1271_v42 = vsel %vm1268_vm5, %v1270_v47, %v1266_v29 }
0x111b   :  { %v1274_v8 = vmul.f32 %v1271_v42, %v3644_v63  ;;  %v1342_v63 = vld [vmem:[%s4171_s11 + $0x30] sm:$0xff] }
0x111c   :  { %1461 = vmatpush.msra.mxu1 %v1342_v63 }
0x111e   :  { %1462 = vmatpush.msra.mxu1 %v1341_v55 }
0x1120   :  { %1463 = vmatpush.msra.mxu1 %v1340_v6 }
0x113d   :  { %v1314_v28 = vpop.permute.xlu2 %1313 }
0x113e   :  { %v1316_v32 = vmul.f32 %v1314_v28, %v1308_v30 }
0x1140   :  { %1318 = vrot.lane.b32.xlu0 %v1316_v32, %s3084_s7 }
0x116f   :  { %v1277_v33 = vpop.permute.xlu1 %1276 }
0x1170   :  { %v1279_v57 = vmul.f32 %v1277_v33, %v1271_v42 }
0x1172   :  { %1281 = vrot.lane.b32.xlu2 %v1279_v57, %s3084_s7 }
0x11b2   :  { %v1319_v23 = vpop.permute.xlu0 %1318 }
0x11b3   :  { %v1321_v59 = vadd.f32 %v1319_v23, %v1311_v58 }
0x11b5   :  { %2949 = vtanh.f32 %v1321_v59 }
0x11bb   :  { %v2950_v31 = vpop.eup %2949 }
0x11bc   :  { %1324 = vrot.lane.b32.xlu0 %v2950_v31, %s3083_s2 }
0x11cc   :  { %v1282_v12 = vpop.permute.xlu2 %1281 }
0x11cd   :  { %v1284_v37 = vadd.f32 %v1282_v12, %v1274_v8 }
0x11cf   :  { %2951 = vtanh.f32 %v1284_v37 }
0x11d5   :  { %v2952_v45 = vpop.eup %2951 }
0x11d6   :  { %1287 = vrot.lane.b32.xlu2 %v2952_v45, %s3083_s2 }
0x122e   :  { %v1325_v0 = vpop.permute.xlu0 %1324 }
0x122f   :  { %v1327_v35 = vmul.f32 %v1325_v0, %v1308_v30 }
0x1230   :  { %v1288_v7 = vpop.permute.xlu2 %1287 }
0x1231   :  { %v1290_v1 = vmul.f32 %v1288_v7, %v1271_v42  ;;  %1345 = vrot.lane.b32.xlu1 %v1327_v35, %s3084_s7 }
0x1233   :  { %1391 = vrot.lane.b32.xlu0 %v1290_v1, %s3084_s7 }
0x12a3   :  { %v1346_v9 = vpop.permute.xlu1 %1345 }
0x12a4   :  { %2735 = vmatmul.msk.f32.vlgmr.msrb.gmra.mxu0 %vm147_vm1, %v1346_v9  ;;  %2751 = vmatmul.msk.f32.vlgmr.msra.gmra.mxu1 %vm147_vm1, %v1346_v9 }
0x12a5   :  { %v1392_v15 = vpop.permute.xlu0 %1391 }
0x12a6   :  { %2750 = vmatmul.msk.f32.gmra.mxu2 %vm147_vm1, %v1392_v15  ;;  %2766 = vmatmul.msk.f32.gmra.mxu3 %vm147_vm1, %v1392_v15 }
0x12ac   :  { %2736 = vmatmul.msk.f32.gmra.mxu0 %vm147_vm1, %v3663_v50  ;;  %2752 = vmatmul.msk.f32.gmra.mxu1 %vm147_vm1, %v3663_v50  ;;  %v3780_v50 = vld [vmem:[%s4175_s9 + $0x18] sm:$0xff] }
0x12ad   :  { %1562 = vmatpush.msra.mxu0 %v3780_v50  ;;  %1683 = vmatpush.msrb.mxu1 %v3780_v50 }
0x12ae   :  { %1587 = vmatmul.f32.vlgmr.msra.gmra.mxu2 %v3082_v27 }
0x12af   :  { %2087 = vmatpush.msra.mxu2 %v3697_v54  ;;  %1563 = vmatpush.msra.mxu0 %v3785_v2 }
0x12b0   :  { %1684 = vmatpush.msrb.mxu1 %v3785_v2 }
0x12b1   :  { %2088 = vmatpush.msra.mxu2 %v3730_v48 }
0x12b3   :  { %2089 = vmatpush.msra.mxu2 %v3737_v26 }
0x12b4   :  { %2737 = vmatmul.msk.f32.gmra.mxu0 %vm147_vm1, %v3606_v41  ;;  %2753 = vmatmul.msk.f32.gmra.mxu1 %vm147_vm1, %v3606_v41  ;;  %v3792_v41 = vld [vmem:[%s4175_s9 + $0x8] sm:$0xff] }
0x12b5   :  { %2090 = vmatpush.msra.mxu2 %v3746_v43  ;;  %1564 = vmatpush.msra.mxu0 %v3792_v41 }
0x12b6   :  { %1685 = vmatpush.msrb.mxu1 %v3792_v41 }
0x12bc   :  { %2738 = vmatmul.msk.f32.gmra.mxu0 %vm147_vm1, %v3566_v56  ;;  %2754 = vmatmul.msk.f32.gmra.mxu1 %vm147_vm1, %v3566_v56  ;;  %v3799_v56 = vld [vmem:[%s4175_s9] sm:$0xff] }
0x12bd   :  { %1565 = vmatpush.msra.mxu0 %v3799_v56  ;;  %1686 = vmatpush.msrb.mxu1 %v3799_v56 }
0x12bf   :  { %1809 = vmatpush.msrb.mxu0 %v3780_v50  ;;  %1935 = vmatpush.msra.mxu1 %v3780_v50 }
0x12c1   :  { %1810 = vmatpush.msrb.mxu0 %v3785_v2  ;;  %1936 = vmatpush.msra.mxu1 %v3785_v2 }
0x12c3   :  { %1811 = vmatpush.msrb.mxu0 %v3792_v41  ;;  %1937 = vmatpush.msra.mxu1 %v3792_v41 }
0x12c4   :  { %2739 = vmatmul.msk.f32.gmra.mxu0 %vm147_vm1, %v3538_v44  ;;  %2755 = vmatmul.msk.f32.gmra.mxu1 %vm147_vm1, %v3538_v44  ;;  %v1506_v44 = vpop.f32.mrf.mxu3 }
0x12c5   :  { %1812 = vmatpush.msrb.mxu0 %v3799_v56  ;;  %1938 = vmatpush.msra.mxu1 %v3799_v56 }
0x12cc   :  { %2740 = vmatmul.msk.f32.gmra.mxu0 %vm147_vm1, %v3510_v36  ;;  %2756 = vmatmul.msk.f32.gmra.mxu1 %vm147_vm1, %v3510_v36  ;;  %v3834_v36 = vpop.f32.mrf.mxu2  ;;  %v1509_v49 = vpop.f32.mrf.mxu3 }
0x12d4   :  { %2741 = vmatmul.msk.f32.gmra.mxu0 %vm147_vm1, %v3466_v19  ;;  %2757 = vmatmul.msk.f32.gmra.mxu1 %vm147_vm1, %v3466_v19  ;;  %v1415_v19 = vpop.f32.mrf.mxu2  ;;  %v1512_v20 = vpop.f32.mrf.mxu3 }
0x12dc   :  { %2742 = vmatmul.msk.f32.gmra.mxu0 %vm147_vm1, %v3427_v38  ;;  %2758 = vmatmul.msk.f32.gmra.mxu1 %vm147_vm1, %v3427_v38  ;;  %v1418_v14 = vpop.f32.mrf.mxu2  ;;  %v1515_v11 = vpop.f32.mrf.mxu3 }
0x12e4   :  { %1566 = vmatmul.f32.vlgmr.msra.gmra.mxu0 %v3082_v27  ;;  %v1421_v32 = vpop.f32.mrf.mxu2  ;;  %v1518_v57 = vpop.f32.mrf.mxu3 }
0x12e5   :  { %2061 = vmatpush.msra.mxu0 %v3780_v50 }
0x12e7   :  { %2062 = vmatpush.msra.mxu0 %v3785_v2 }
0x12e9   :  { %2063 = vmatpush.msra.mxu0 %v3792_v41 }
0x12eb   :  { %2064 = vmatpush.msra.mxu0 %v3799_v56 }
0x12ec   :  { %v1424_v53 = vpop.f32.mrf.mxu2  ;;  %v1521_v45 = vpop.f32.mrf.mxu3 }
0x12f4   :  { %v1427_v8 = vpop.f32.mrf.mxu2  ;;  %v1524_v0 = vpop.f32.mrf.mxu3 }
0x12fc   :  { %v1430_v55 = vpop.f32.mrf.mxu2 }
0x1321   :  { %v1366_v38 = vpop.f32.mrf.mxu0  ;;  %v1465_v60 = vpop.f32.mrf.mxu1 }
0x1322   :  { %v1507_v27 = vadd.f32 %v1506_v44, %v1465_v60 }
0x1324   :  { %v3839_v10 = vadd.f32 %v2822_v21, %v1507_v27 }
0x1329   :  { %v1369_v16 = vpop.f32.mrf.mxu0  ;;  %v1468_v51 = vpop.f32.mrf.mxu1 }
0x132a   :  { %v1416_v46 = vadd.f32 %v1415_v19, %v1369_v16  ;;  %v1510_v22 = vadd.f32 %v1509_v49, %v1468_v51  ;;  %v1433_v9 = vpop.f32.mrf.mxu2  ;;  %v1527_v49 = vpop.f32.mrf.mxu3  ;;  %v1413_v51 = vadd.f32 %v3834_v36, %v1366_v38 }
0x132c   :  { %v3844_v28 = vadd.f32 %v2823_v25, %v1416_v46  ;;  %v3846_v30 = vadd.f32 %v2822_v21, %v1510_v22 }
0x1331   :  { %v1372_v17 = vpop.f32.mrf.mxu0  ;;  %v1471_v61 = vpop.f32.mrf.mxu1 }
0x1332   :  { %v1419_v39 = vadd.f32 %v1418_v14, %v1372_v17  ;;  %v1513_v34 = vadd.f32 %v1512_v20, %v1471_v61  ;;  %v1588_v16 = vpop.f32.mrf.mxu2  ;;  %v1440_v17 = vadd.f32 %v2823_v25, %v1413_v51 }
0x1334   :  { %v3848_v13 = vadd.f32 %v2823_v25, %v1419_v39  ;;  %v3850_v18 = vadd.f32 %v2822_v21, %v1513_v34 }
0x1339   :  { %v1375_v52 = vpop.f32.mrf.mxu0  ;;  %v1474_v29 = vpop.f32.mrf.mxu1 }
0x133a   :  { %v1422_v24 = vadd.f32 %v1421_v32, %v1375_v52  ;;  %v1516_v47 = vadd.f32 %v1515_v11, %v1474_v29 }
0x133c   :  { %v3852_v33 = vadd.f32 %v2823_v25, %v1422_v24  ;;  %v3854_v42 = vadd.f32 %v2822_v21, %v1516_v47 }
0x1341   :  { %v1378_v58 = vpop.f32.mrf.mxu0  ;;  %v1477_v59 = vpop.f32.mrf.mxu1 }
0x1342   :  { %v1425_v23 = vadd.f32 %v1424_v53, %v1378_v58  ;;  %v1519_v31 = vadd.f32 %v1518_v57, %v1477_v59 }
0x1344   :  { %v3856_v12 = vadd.f32 %v2823_v25, %v1425_v23  ;;  %v3858_v37 = vadd.f32 %v2822_v21, %v1519_v31 }
0x1349   :  { %v1381_v62 = vpop.f32.mrf.mxu0  ;;  %v1480_v63 = vpop.f32.mrf.mxu1 }
0x134a   :  { %v1428_v4 = vadd.f32 %v1427_v8, %v1381_v62  ;;  %v1522_v3 = vadd.f32 %v1521_v45, %v1480_v63 }
0x134c   :  { %v3860_v5 = vadd.f32 %v2823_v25, %v1428_v4  ;;  %v3862_v6 = vadd.f32 %v2822_v21, %v1522_v3 }
0x1351   :  { %v1384_v40 = vpop.f32.mrf.mxu0  ;;  %v1483_v7 = vpop.f32.mrf.mxu1 }
0x1352   :  { %v1431_v35 = vadd.f32 %v1430_v55, %v1384_v40  ;;  %v1525_v1 = vadd.f32 %v1524_v0, %v1483_v7 }
0x1354   :  { %v3864_v15 = vadd.f32 %v2823_v25, %v1431_v35  ;;  %v3866_v44 = vadd.f32 %v2822_v21, %v1525_v1 }
0x1359   :  { %v1387_v19 = vpop.f32.mrf.mxu0  ;;  %v1486_v27 = vpop.f32.mrf.mxu1 }
0x135a   :  { %v1434_v60 = vadd.f32 %v1433_v9, %v1387_v19  ;;  %v1528_v14 = vadd.f32 %v1527_v49, %v1486_v27 }
0x135c   :  { %v3868_v20 = vadd.f32 %v2823_v25, %v1434_v60  ;;  %v1541_v46 = vadd.f32 %v2822_v21, %v1528_v14 }
0x135e   :  { %v1591_v22 = vadd.f32 %v1588_v16, %v1541_v46 }
0x1360   :  { %2953 = vtanh.f32 %v1591_v22  ;;  %v2768_v11 = vmul.f32 -1.442695, %v1591_v22 }
0x1361   :  { %v1567_v32 = vpop.f32.mrf.mxu0 }
0x1362   :  { %v1570_v39 = vadd.f32 %v1567_v32, %v1440_v17 }
0x1364   :  { %2955 = vtanh.f32 %v1570_v39  ;;  %v2767_v8 = vmul.f32 -1.442695, %v1570_v39 }
0x1365   :  { %2957 = vpow2.f32 %v2768_v11 }
0x1366   :  { %v2954_v61 = vpop.eup %2953 }
0x1367   :  { %1651 = vrot.lane.b32.xlu1 %v2954_v61, %s3083_s2 }
0x136a   :  { %v2956_v34 = vpop.eup %2955 }
0x136b   :  { %v2958_v52 = vpop.eup %2957 }
0x136c   :  { %v1632_v53 = vadd.f32 1.0, %v2958_v52 }
0x136e   :  { %2959 = vrcp.f32 %v1632_v53  ;;  %v1644_v25 = vand.u32 2147483648, %v1632_v53  ;;  %vm1638_vm7 = vweird.f32 %v1632_v53  ;;  %v1642_v47 = vand.u32 2147483647, %v1632_v53 }
0x136f   :  { %1614 = vrot.lane.b32.xlu1 %v2956_v34, %s3083_s2  ;;  %2961 = vpow2.f32 %v2767_v8 }
0x1370   :  { %v1645_v58 = vor.u32 1.1754944e-38, %v1644_v25  ;;  %vm1643_vm9 = vcmp.eq.f32.partialorder %v1642_v47, 8.507059e+37 }
0x1374   :  { %v2960_v21 = vpop.eup %2959 }
0x1375   :  { %v1634_v24 = vmul.f32 %v2960_v21, %v1632_v53  ;;  %vm1639_vm6 = vweird.f32 %v2960_v21  ;;  %v2962_v45 = vpop.eup %2961 }
0x1376   :  { %vm1640_vm8 = vmor %vm1638_vm7, %vm1639_vm6  ;;  %v1595_v62 = vadd.f32 1.0, %v2962_v45 }
0x1377   :  { %v1635_v36 = vsub.f32 1.0, %v1634_v24 }
0x1378   :  { %2963 = vrcp.f32 %v1595_v62  ;;  %v1607_v9 = vand.u32 2147483648, %v1595_v62  ;;  %vm1601_vm11 = vweird.f32 %v1595_v62  ;;  %v1605_v19 = vand.u32 2147483647, %v1595_v62 }
0x1379   :  { %v1636_v38 = vmul.f32 %v2960_v21, %v1635_v36 }
0x137a   :  { %v1608_v60 = vor.u32 1.1754944e-38, %v1607_v9  ;;  %vm1606_vm13 = vcmp.eq.f32.partialorder %v1605_v19, 8.507059e+37 }
0x137b   :  { %v1637_v29 = vadd.f32 %v2960_v21, %v1636_v38 }
0x137d   :  { %v1641_v57 = vsel %vm1640_vm8, %v2960_v21, %v1637_v29 }
0x137e   :  { %v1646_v59 = vsel %vm1643_vm9, %v1645_v58, %v1641_v57  ;;  %v2964_v4 = vpop.eup %2963 }
0x137f   :  { %v1597_v63 = vmul.f32 %v2964_v4, %v1595_v62  ;;  %v1649_v3 = vmul.f32 0.0, %v1646_v59  ;;  %vm1602_vm10 = vweird.f32 %v2964_v4 }
0x1380   :  { %vm1603_vm12 = vmor %vm1601_vm11, %vm1602_vm10 }
0x1381   :  { %v1598_v55 = vsub.f32 1.0, %v1597_v63 }
0x1383   :  { %v1599_v35 = vmul.f32 %v2964_v4, %v1598_v55 }
0x1385   :  { %v1600_v7 = vadd.f32 %v2964_v4, %v1599_v35 }
0x1387   :  { %v1604_v49 = vsel %vm1603_vm12, %v2964_v4, %v1600_v7 }
0x1388   :  { %v1609_v14 = vsel %vm1606_vm13, %v1608_v60, %v1604_v49 }
0x1389   :  { %v1612_v22 = vmul.f32 0.0, %v1609_v14 }
0x13d9   :  { %v1652_v23 = vpop.permute.xlu1 %1651 }
0x13da   :  { %v1654_v31 = vmul.f32 %v1652_v23, %v1646_v59 }
0x13dc   :  { %1656 = vrot.lane.b32.xlu2 %v1654_v31, %s3084_s7 }
0x13e1   :  { %v1615_v27 = vpop.permute.xlu1 %1614 }
0x13e2   :  { %v1617_v16 = vmul.f32 %v1615_v27, %v1609_v14 }
0x1436   :  { %v1657_v40 = vpop.permute.xlu2 %1656 }
0x1437   :  { %v3874_v0 = vadd.f32 %v1657_v40, %v1649_v3 }
0x1439   :  { %2965 = vtanh.f32 %v3874_v0 }
0x143f   :  { %v2966_v1 = vpop.eup %2965 }
0x1440   :  { %1662 = vrot.lane.b32.xlu0 %v2966_v1, %s3083_s2 }
0x1448   :  { %1619 = vrot.lane.b32.xlu0 %v1617_v16, %s3084_s7 }
0x14b2   :  { %v1663_v46 = vpop.permute.xlu0 %1662 }
0x14b3   :  { %v1665_v51 = vmul.f32 %v1663_v46, %v1646_v59 }
0x14b5   :  { %1693 = vrot.lane.b32.xlu2 %v1665_v51, %s3084_s7 }
0x14ba   :  { %v1620_v32 = vpop.permute.xlu0 %1619 }
0x14bb   :  { %v3880_v17 = vadd.f32 %v1620_v32, %v1612_v22 }
0x14bd   :  { %2967 = vtanh.f32 %v3880_v17 }
0x14c3   :  { %v2968_v39 = vpop.eup %2967 }
0x14c4   :  { %1625 = vrot.lane.b32.xlu1 %v2968_v39, %s3083_s2 }
0x150f   :  { %v3884_v61 = vpop.permute.xlu2 %1693 }
0x1510   :  { %2770 = vmatmul.msk.f32.vlgmr.msrb.gmra.mxu3 %vm147_vm1, %v3884_v61 }
0x1511   :  { %2213 = vmatpush.msrb.mxu3 %v3697_v54 }
0x1513   :  { %2214 = vmatpush.msrb.mxu3 %v3730_v48 }
0x1515   :  { %2215 = vmatpush.msrb.mxu3 %v3737_v26 }
0x1517   :  { %2216 = vmatpush.msrb.mxu3 %v3746_v43 }
0x1536   :  { %v1626_v34 = vpop.permute.xlu1 %1625 }
0x1537   :  { %v1628_v11 = vmul.f32 %v1626_v34, %v1609_v14 }
0x1539   :  { %1667 = vrot.lane.b32.xlu2 %v1628_v11, %s3084_s7 }
0x1593   :  { %v1714_v52 = vpop.f32.mrf.mxu3  ;;  %v3893_v53 = vpop.permute.xlu2 %1667 }
0x1594   :  { %v1717_v21 = vadd.f32 %v1714_v52, %v3866_v44  ;;  %2769 = vmatmul.msk.f32.vlgmr.msrb.gmra.mxu1 %vm147_vm1, %v3893_v53 }
0x1595   :  { %2187 = vmatpush.msrb.mxu1 %v3780_v50 }
0x1596   :  { %2969 = vtanh.f32 %v1717_v21  ;;  %v2772_v36 = vmul.f32 -1.442695, %v1717_v21 }
0x1597   :  { %2188 = vmatpush.msrb.mxu1 %v3785_v2 }
0x1598   :  { %2971 = vpow2.f32 %v2772_v36 }
0x1599   :  { %2189 = vmatpush.msrb.mxu1 %v3792_v41 }
0x159b   :  { %2190 = vmatpush.msrb.mxu1 %v3799_v56 }
0x159c   :  { %v2970_v24 = vpop.eup %2969 }
0x159d   :  { %1777 = vrot.lane.b32.xlu0 %v2970_v24, %s3083_s2 }
0x159e   :  { %v2972_v38 = vpop.eup %2971 }
0x159f   :  { %v1758_v29 = vadd.f32 1.0, %v2972_v38 }
0x15a1   :  { %2973 = vrcp.f32 %v1758_v29  ;;  %v1770_v23 = vand.u32 2147483648, %v1758_v29  ;;  %vm1764_vm15 = vweird.f32 %v1758_v29  ;;  %v1768_v59 = vand.u32 2147483647, %v1758_v29 }
0x15a3   :  { %v1771_v8 = vor.u32 1.1754944e-38, %v1770_v23  ;;  %vm1769_vm2 = vcmp.eq.f32.partialorder %v1768_v59, 8.507059e+37 }
0x15a7   :  { %v2974_v44 = vpop.eup %2973 }
0x15a8   :  { %v1760_v25 = vmul.f32 %v2974_v44, %v1758_v29  ;;  %vm1765_vm14 = vweird.f32 %v2974_v44 }
0x15a9   :  { %vm1766_vm0 = vmor %vm1764_vm15, %vm1765_vm14 }
0x15aa   :  { %v1761_v47 = vsub.f32 1.0, %v1760_v25 }
0x15ac   :  { %v1762_v57 = vmul.f32 %v2974_v44, %v1761_v47 }
0x15ae   :  { %v1763_v58 = vadd.f32 %v2974_v44, %v1762_v57 }
0x15b0   :  { %v1767_v31 = vsel %vm1766_vm0, %v2974_v44, %v1763_v58 }
0x15b1   :  { %v1772_v45 = vsel %vm1769_vm2, %v1771_v8, %v1767_v31 }
0x15b2   :  { %v1775_v32 = vmul.f32 %v1772_v45, %v3874_v0 }
0x160f   :  { %v1778_v62 = vpop.permute.xlu0 %1777 }
0x1610   :  { %v1780_v4 = vmul.f32 %v1778_v62, %v1772_v45 }
0x1611   :  { %v1688_v63 = vpop.f32.mrf.mxu1 }
0x1612   :  { %v1691_v3 = vadd.f32 %v1688_v63, %v3844_v28  ;;  %1782 = vrot.lane.b32.xlu1 %v1780_v4, %s3084_s7 }
0x1614   :  { %2975 = vtanh.f32 %v1691_v3  ;;  %v2771_v40 = vmul.f32 -1.442695, %v1691_v3 }
0x1616   :  { %2977 = vpow2.f32 %v2771_v40 }
0x161a   :  { %v2976_v55 = vpop.eup %2975 }
0x161b   :  { %1740 = vrot.lane.b32.xlu2 %v2976_v55, %s3083_s2 }
0x161c   :  { %v2978_v35 = vpop.eup %2977 }
0x161d   :  { %v1721_v7 = vadd.f32 1.0, %v2978_v35 }
0x161f   :  { %2979 = vrcp.f32 %v1721_v7  ;;  %v1733_v27 = vand.u32 2147483648, %v1721_v7  ;;  %vm1727_vm4 = vweird.f32 %v1721_v7  ;;  %v1731_v28 = vand.u32 2147483647, %v1721_v7 }
0x1621   :  { %v1734_v16 = vor.u32 1.1754944e-38, %v1733_v27  ;;  %vm1732_vm6 = vcmp.eq.f32.partialorder %v1731_v28, 8.507059e+37 }
0x1625   :  { %v2980_v1 = vpop.eup %2979 }
0x1626   :  { %v1723_v9 = vmul.f32 %v2980_v1, %v1721_v7  ;;  %vm1728_vm3 = vweird.f32 %v2980_v1 }
0x1627   :  { %vm1729_vm5 = vmor %vm1727_vm4, %vm1728_vm3 }
0x1628   :  { %v1724_v19 = vsub.f32 1.0, %v1723_v9 }
0x162a   :  { %v1725_v49 = vmul.f32 %v2980_v1, %v1724_v19 }
0x162c   :  { %v1726_v60 = vadd.f32 %v2980_v1, %v1725_v49 }
0x162e   :  { %v1730_v14 = vsel %vm1729_vm5, %v2980_v1, %v1726_v60 }
0x162f   :  { %v1735_v51 = vsel %vm1732_vm6, %v1734_v16, %v1730_v14 }
0x1630   :  { %v1738_v52 = vmul.f32 %v1735_v51, %v3880_v17 }
0x1675   :  { %v1741_v46 = vpop.permute.xlu2 %1740 }
0x1676   :  { %v1743_v22 = vmul.f32 %v1741_v46, %v1735_v51 }
0x1678   :  { %1745 = vrot.lane.b32.xlu1 %v1743_v22, %s3084_s7 }
0x1684   :  { %v1783_v39 = vpop.permute.xlu1 %1782 }
0x1685   :  { %v3908_v34 = vadd.f32 %v1783_v39, %v1775_v32 }
0x1687   :  { %2981 = vtanh.f32 %v3908_v34 }
0x168d   :  { %v2982_v11 = vpop.eup %2981 }
0x168e   :  { %1788 = vrot.lane.b32.xlu0 %v2982_v11, %s3083_s2 }
0x16ea   :  { %v1746_v21 = vpop.permute.xlu1 %1745 }
0x16eb   :  { %v3913_v24 = vadd.f32 %v1746_v21, %v1738_v52 }
0x16ed   :  { %2983 = vtanh.f32 %v3913_v24 }
0x16f3   :  { %v2984_v36 = vpop.eup %2983 }
0x16f4   :  { %1751 = vrot.lane.b32.xlu0 %v2984_v36, %s3083_s2 }
0x1700   :  { %v1789_v38 = vpop.permute.xlu0 %1788 }
0x1701   :  { %v1791_v0 = vmul.f32 %v1789_v38, %v1772_v45 }
0x1703   :  { %1819 = vrot.lane.b32.xlu2 %v1791_v0, %s3084_s7 }
0x175d   :  { %v3918_v29 = vpop.permute.xlu2 %1819 }
0x175e   :  { %2774 = vmatmul.msk.f32.vlgmr.msrb.gmra.mxu2 %vm147_vm1, %v3918_v29 }
0x175f   :  { %2339 = vmatpush.msrb.mxu2 %v3697_v54 }
0x1761   :  { %2340 = vmatpush.msrb.mxu2 %v3730_v48 }
0x1763   :  { %2341 = vmatpush.msrb.mxu2 %v3737_v26 }
0x1765   :  { %2342 = vmatpush.msrb.mxu2 %v3746_v43 }
0x1766   :  { %v1752_v17 = vpop.permute.xlu0 %1751 }
0x1767   :  { %v1754_v44 = vmul.f32 %v1752_v17, %v1735_v51 }
0x1769   :  { %1793 = vrot.lane.b32.xlu1 %v1754_v44, %s3084_s7 }
0x17db   :  { %v3927_v25 = vpop.permute.xlu1 %1793 }
0x17dc   :  { %2773 = vmatmul.msk.f32.vlgmr.msrb.gmra.mxu0 %vm147_vm1, %v3927_v25 }
0x17dd   :  { %2313 = vmatpush.msrb.mxu0 %v3780_v50 }
0x17df   :  { %2314 = vmatpush.msrb.mxu0 %v3785_v2 }
0x17e1   :  { %v1840_v47 = vpop.f32.mrf.mxu2  ;;  %2315 = vmatpush.msrb.mxu0 %v3792_v41 }
0x17e2   :  { %v1843_v57 = vadd.f32 %v1840_v47, %v3862_v6 }
0x17e3   :  { %2316 = vmatpush.msrb.mxu0 %v3799_v56 }
0x17e4   :  { %2985 = vtanh.f32 %v1843_v57  ;;  %v2776_v23 = vmul.f32 -1.442695, %v1843_v57 }
0x17e6   :  { %2987 = vpow2.f32 %v2776_v23 }
0x17ea   :  { %v2986_v58 = vpop.eup %2985 }
0x17eb   :  { %1903 = vrot.lane.b32.xlu2 %v2986_v58, %s3083_s2 }
0x17ec   :  { %v2988_v59 = vpop.eup %2987 }
0x17ed   :  { %v1884_v31 = vadd.f32 1.0, %v2988_v59 }
0x17ef   :  { %2989 = vrcp.f32 %v1884_v31  ;;  %v1896_v3 = vand.u32 2147483648, %v1884_v31  ;;  %vm1890_vm8 = vweird.f32 %v1884_v31  ;;  %v1894_v6 = vand.u32 2147483647, %v1884_v31 }
0x17f1   :  { %v1897_v40 = vor.u32 1.1754944e-38, %v1896_v3  ;;  %vm1895_vm10 = vcmp.eq.f32.partialorder %v1894_v6, 8.507059e+37 }
0x17f5   :  { %v2990_v8 = vpop.eup %2989 }
0x17f6   :  { %v1886_v45 = vmul.f32 %v2990_v8, %v1884_v31  ;;  %vm1891_vm7 = vweird.f32 %v2990_v8 }
0x17f7   :  { %vm1892_vm9 = vmor %vm1890_vm8, %vm1891_vm7 }
0x17f8   :  { %v1887_v62 = vsub.f32 1.0, %v1886_v45 }
0x17fa   :  { %v1888_v4 = vmul.f32 %v2990_v8, %v1887_v62 }
0x17fc   :  { %v1889_v63 = vadd.f32 %v2990_v8, %v1888_v4 }
0x17fe   :  { %v1893_v55 = vsel %vm1892_vm9, %v2990_v8, %v1889_v63 }
0x17ff   :  { %v1898_v7 = vsel %vm1895_vm10, %v1897_v40, %v1893_v55 }
0x1800   :  { %v1901_v14 = vmul.f32 %v1898_v7, %v3908_v34 }
0x1845   :  { %v1904_v35 = vpop.permute.xlu2 %1903 }
0x1846   :  { %v1906_v1 = vmul.f32 %v1904_v35, %v1898_v7 }
0x1848   :  { %1908 = vrot.lane.b32.xlu0 %v1906_v1, %s3084_s7 }
0x1859   :  { %v1814_v9 = vpop.f32.mrf.mxu0 }
0x185a   :  { %v1817_v19 = vadd.f32 %v1814_v9, %v3848_v13 }
0x185c   :  { %2991 = vtanh.f32 %v1817_v19  ;;  %v2775_v60 = vmul.f32 -1.442695, %v1817_v19 }
0x185e   :  { %2993 = vpow2.f32 %v2775_v60 }
0x1862   :  { %v2992_v49 = vpop.eup %2991 }
0x1863   :  { %1866 = vrot.lane.b32.xlu1 %v2992_v49, %s3083_s2 }
0x1864   :  { %v2994_v27 = vpop.eup %2993 }
0x1865   :  { %v1847_v28 = vadd.f32 1.0, %v2994_v27 }
0x1867   :  { %2995 = vrcp.f32 %v1847_v28  ;;  %v1859_v52 = vand.u32 2147483648, %v1847_v28  ;;  %vm1853_vm12 = vweird.f32 %v1847_v28  ;;  %v1857_v21 = vand.u32 2147483647, %v1847_v28 }
0x1869   :  { %v1860_v34 = vor.u32 1.1754944e-38, %v1859_v52  ;;  %vm1858_vm14 = vcmp.eq.f32.partialorder %v1857_v21, 8.507059e+37 }
0x186d   :  { %v2996_v51 = vpop.eup %2995 }
0x186e   :  { %v1849_v22 = vmul.f32 %v2996_v51, %v1847_v28  ;;  %vm1854_vm11 = vweird.f32 %v2996_v51 }
0x186f   :  { %vm1855_vm13 = vmor %vm1853_vm12, %vm1854_vm11 }
0x1870   :  { %v1850_v13 = vsub.f32 1.0, %v1849_v22 }
0x1872   :  { %v1851_v39 = vmul.f32 %v2996_v51, %v1850_v13 }
0x1874   :  { %v1852_v11 = vadd.f32 %v2996_v51, %v1851_v39 }
0x1876   :  { %v1856_v36 = vsel %vm1855_vm13, %v2996_v51, %v1852_v11 }
0x1877   :  { %v1861_v0 = vsel %vm1858_vm14, %v1860_v34, %v1856_v36 }
0x1878   :  { %v1864_v57 = vmul.f32 %v1861_v0, %v3913_v24 }
0x18ba   :  { %v1909_v16 = vpop.permute.xlu0 %1908 }
0x18bb   :  { %v3941_v46 = vadd.f32 %v1909_v16, %v1901_v14 }
0x18bd   :  { %2997 = vtanh.f32 %v3941_v46 }
0x18c3   :  { %v2998_v32 = vpop.eup %2997 }
0x18c4   :  { %1914 = vrot.lane.b32.xlu2 %v2998_v32, %s3083_s2 }
0x18d5   :  { %v1867_v38 = vpop.permute.xlu1 %1866 }
0x18d6   :  { %v1869_v17 = vmul.f32 %v1867_v38, %v1861_v0 }
0x18d8   :  { %1871 = vrot.lane.b32.xlu0 %v1869_v17, %s3084_s7 }
0x191e   :  { %v1915_v44 = vpop.permute.xlu2 %1914 }
0x191f   :  { %v1917_v47 = vmul.f32 %v1915_v44, %v1898_v7 }
0x1921   :  { %1945 = vrot.lane.b32.xlu1 %v1917_v47, %s3084_s7 }
0x194a   :  { %v1872_v58 = vpop.permute.xlu0 %1871 }
0x194b   :  { %v3948_v23 = vadd.f32 %v1872_v58, %v1864_v57 }
0x194d   :  { %2999 = vtanh.f32 %v3948_v23 }
0x1953   :  { %v3000_v59 = vpop.eup %2999 }
0x1954   :  { %1877 = vrot.lane.b32.xlu2 %v3000_v59, %s3083_s2 }
0x1993   :  { %v3952_v31 = vpop.permute.xlu1 %1945 }
0x1994   :  { %2778 = vmatmul.msk.f32.vlgmr.msra.gmra.mxu3 %vm147_vm1, %v3952_v31 }
0x1995   :  { %2465 = vmatpush.msra.mxu3 %v3697_v54 }
0x1997   :  { %2466 = vmatpush.msra.mxu3 %v3730_v48 }
0x1999   :  { %2467 = vmatpush.msra.mxu3 %v3737_v26 }
0x199b   :  { %2468 = vmatpush.msra.mxu3 %v3746_v43 }
0x19ae   :  { %v1878_v24 = vpop.permute.xlu2 %1877 }
0x19af   :  { %v1880_v8 = vmul.f32 %v1878_v24, %v1861_v0 }
0x19b1   :  { %1919 = vrot.lane.b32.xlu0 %v1880_v8, %s3084_s7 }
0x1a17   :  { %v1966_v45 = vpop.f32.mrf.mxu3 }
0x1a18   :  { %v1969_v62 = vadd.f32 %v1966_v45, %v3858_v37 }
0x1a1a   :  { %3001 = vtanh.f32 %v1969_v62  ;;  %v2780_v54 = vmul.f32 -1.442695, %v1969_v62 }
0x1a1c   :  { %3003 = vpow2.f32 %v2780_v54 }
0x1a20   :  { %v3002_v4 = vpop.eup %3001 }
0x1a21   :  { %2029 = vrot.lane.b32.xlu1 %v3002_v4, %s3083_s2 }
0x1a22   :  { %v3004_v48 = vpop.eup %3003 }
0x1a23   :  { %v3963_v63 = vpop.permute.xlu0 %1919  ;;  %v2010_v26 = vadd.f32 1.0, %v3004_v48 }
0x1a24   :  { %2777 = vmatmul.msk.f32.vlgmr.msra.gmra.mxu1 %vm147_vm1, %v3963_v63 }
0x1a25   :  { %2439 = vmatpush.msra.mxu1 %v3780_v50  ;;  %3005 = vrcp.f32 %v2010_v26  ;;  %v2022_v40 = vand.u32 2147483648, %v2010_v26  ;;  %vm2016_vm0 = vweird.f32 %v2010_v26  ;;  %v2020_v50 = vand.u32 2147483647, %v2010_v26 }
0x1a27   :  { %2440 = vmatpush.msra.mxu1 %v3785_v2  ;;  %v2023_v35 = vor.u32 1.1754944e-38, %v2022_v40  ;;  %vm2021_vm3 = vcmp.eq.f32.partialorder %v2020_v50, 8.507059e+37 }
0x1a29   :  { %2441 = vmatpush.msra.mxu1 %v3792_v41 }
0x1a2b   :  { %2442 = vmatpush.msra.mxu1 %v3799_v56  ;;  %v3006_v43 = vpop.eup %3005 }
0x1a2c   :  { %v2012_v37 = vmul.f32 %v3006_v43, %v2010_v26  ;;  %vm2017_vm15 = vweird.f32 %v3006_v43 }
0x1a2d   :  { %vm2018_vm2 = vmor %vm2016_vm0, %vm2017_vm15 }
0x1a2e   :  { %v2013_v3 = vsub.f32 1.0, %v2012_v37 }
0x1a30   :  { %v2014_v6 = vmul.f32 %v3006_v43, %v2013_v3 }
0x1a32   :  { %v2015_v55 = vadd.f32 %v3006_v43, %v2014_v6 }
0x1a34   :  { %v2019_v2 = vsel %vm2018_vm2, %v3006_v43, %v2015_v55 }
0x1a35   :  { %v2024_v56 = vsel %vm2021_vm3, %v2023_v35, %v2019_v2 }
0x1a36   :  { %v2027_v49 = vmul.f32 %v2024_v56, %v3941_v46 }
0x1a93   :  { %v2030_v41 = vpop.permute.xlu1 %2029 }
0x1a94   :  { %v2032_v7 = vmul.f32 %v2030_v41, %v2024_v56 }
0x1a96   :  { %2034 = vrot.lane.b32.xlu2 %v2032_v7, %s3084_s7 }
0x1aa1   :  { %v1940_v1 = vpop.f32.mrf.mxu1 }
0x1aa2   :  { %v1943_v9 = vadd.f32 %v1940_v1, %v3852_v33 }
0x1aa4   :  { %3007 = vtanh.f32 %v1943_v9  ;;  %v2779_v60 = vmul.f32 -1.442695, %v1943_v9 }
0x1aaa   :  { %v3008_v19 = vpop.eup %3007 }
0x1aab   :  { %1992 = vrot.lane.b32.xlu0 %v3008_v19, %s3083_s2 }
0x1af0   :  { %v2035_v27 = vpop.permute.xlu2 %2034 }
0x1af1   :  { %v3975_v28 = vadd.f32 %v2035_v27, %v2027_v49 }
0x1af3   :  { %3009 = vtanh.f32 %v3975_v28 }
0x1af4   :  { %3011 = vpow2.f32 %v2779_v60 }
0x1af9   :  { %v3010_v14 = vpop.eup %3009 }
0x1afa   :  { %v3012_v16 = vpop.eup %3011  ;;  %2040 = vrot.lane.b32.xlu1 %v3010_v14, %s3083_s2 }
0x1afb   :  { %v1973_v51 = vadd.f32 1.0, %v3012_v16 }
0x1afd   :  { %3013 = vrcp.f32 %v1973_v51  ;;  %v1985_v46 = vand.u32 2147483648, %v1973_v51  ;;  %vm1979_vm5 = vweird.f32 %v1973_v51  ;;  %v1983_v11 = vand.u32 2147483647, %v1973_v51 }
0x1aff   :  { %v1986_v21 = vor.u32 1.1754944e-38, %v1985_v46  ;;  %vm1984_vm7 = vcmp.eq.f32.partialorder %v1983_v11, 8.507059e+37 }
0x1b03   :  { %v3014_v33 = vpop.eup %3013 }
0x1b04   :  { %v1975_v22 = vmul.f32 %v3014_v33, %v1973_v51  ;;  %vm1980_vm4 = vweird.f32 %v3014_v33 }
0x1b05   :  { %vm1981_vm6 = vmor %vm1979_vm5, %vm1980_vm4 }
0x1b06   :  { %v1976_v32 = vsub.f32 1.0, %v1975_v22 }
0x1b08   :  { %v1977_v13 = vmul.f32 %v3014_v33, %v1976_v32 }
0x1b0a   :  { %v1978_v39 = vadd.f32 %v3014_v33, %v1977_v13 }
0x1b0c   :  { %v1982_v52 = vsel %vm1981_vm6, %v3014_v33, %v1978_v39 }
0x1b0d   :  { %v1987_v34 = vsel %vm1984_vm7, %v1986_v21, %v1982_v52 }
0x1b0e   :  { %v1990_v44 = vmul.f32 %v1987_v34, %v3948_v23 }
0x1b1d   :  { %v1993_v36 = vpop.permute.xlu0 %1992 }
0x1b1e   :  { %v1995_v38 = vmul.f32 %v1993_v36, %v1987_v34 }
0x1b20   :  { %1997 = vrot.lane.b32.xlu2 %v1995_v38, %s3084_s7 }
0x1b6c   :  { %v2041_v0 = vpop.permute.xlu1 %2040 }
0x1b6d   :  { %v2043_v17 = vmul.f32 %v2041_v0, %v2024_v56 }
0x1b6f   :  { %2071 = vrot.lane.b32.xlu0 %v2043_v17, %s3084_s7 }
0x1b7a   :  { %v1998_v47 = vpop.permute.xlu2 %1997 }
0x1b7b   :  { %v3982_v57 = vadd.f32 %v1998_v47, %v1990_v44 }
0x1b7d   :  { %3015 = vtanh.f32 %v3982_v57 }
0x1b83   :  { %v3016_v58 = vpop.eup %3015 }
0x1b84   :  { %2003 = vrot.lane.b32.xlu1 %v3016_v58, %s3083_s2 }
0x1be1   :  { %v3986_v59 = vpop.permute.xlu0 %2071 }
0x1be2   :  { %2782 = vmatmul.msk.f32.vlgmr.msra.gmra.mxu2 %vm147_vm1, %v3986_v59 }
0x1bf6   :  { %v2004_v24 = vpop.permute.xlu1 %2003 }
0x1bf7   :  { %v2006_v8 = vmul.f32 %v2004_v24, %v1987_v34 }
0x1bf9   :  { %2045 = vrot.lane.b32.xlu2 %v2006_v8, %s3084_s7 }
0x1c53   :  { %v3991_v45 = vpop.permute.xlu2 %2045 }
0x1c54   :  { %2781 = vmatmul.msk.f32.vlgmr.msra.gmra.mxu0 %vm147_vm1, %v3991_v45 }
0x1c65   :  { %v2092_v23 = vpop.f32.mrf.mxu2 }
0x1c66   :  { %v2095_v62 = vadd.f32 %v2092_v23, %v3854_v42 }
0x1c68   :  { %3017 = vtanh.f32 %v2095_v62  ;;  %v2784_v54 = vmul.f32 -1.442695, %v2095_v62 }
0x1c6a   :  { %3019 = vpow2.f32 %v2784_v54 }
0x1c6e   :  { %v3018_v4 = vpop.eup %3017 }
0x1c6f   :  { %2155 = vrot.lane.b32.xlu0 %v3018_v4, %s3083_s2 }
0x1c70   :  { %v3020_v48 = vpop.eup %3019 }
0x1c71   :  { %v2136_v26 = vadd.f32 1.0, %v3020_v48 }
0x1c73   :  { %3021 = vrcp.f32 %v2136_v26  ;;  %v2148_v42 = vand.u32 2147483648, %v2136_v26  ;;  %vm2142_vm9 = vweird.f32 %v2136_v26  ;;  %v2146_v35 = vand.u32 2147483647, %v2136_v26 }
0x1c75   :  { %v2149_v56 = vor.u32 1.1754944e-38, %v2148_v42  ;;  %vm2147_vm11 = vcmp.eq.f32.partialorder %v2146_v35, 8.507059e+37 }
0x1c79   :  { %v3022_v43 = vpop.eup %3021 }
0x1c7a   :  { %v2138_v37 = vmul.f32 %v3022_v43, %v2136_v26  ;;  %vm2143_vm8 = vweird.f32 %v3022_v43 }
0x1c7b   :  { %vm2144_vm10 = vmor %vm2142_vm9, %vm2143_vm8 }
0x1c7c   :  { %v2139_v55 = vsub.f32 1.0, %v2138_v37 }
0x1c7e   :  { %v2140_v40 = vmul.f32 %v3022_v43, %v2139_v55 }
0x1c80   :  { %v2141_v2 = vadd.f32 %v3022_v43, %v2140_v40 }
0x1c82   :  { %v2145_v41 = vsel %vm2144_vm10, %v3022_v43, %v2141_v2 }
0x1c83   :  { %v2150_v1 = vsel %vm2147_vm11, %v2149_v56, %v2145_v41 }
0x1c84   :  { %v2153_v52 = vmul.f32 %v2150_v1, %v3975_v28 }
0x1cd1   :  { %v2066_v3 = vpop.f32.mrf.mxu0 }
0x1cd2   :  { %v2069_v6 = vadd.f32 %v2066_v3, %v3856_v12 }
0x1cd4   :  { %3023 = vtanh.f32 %v2069_v6  ;;  %v2783_v12 = vmul.f32 -1.442695, %v2069_v6 }
0x1cd6   :  { %3025 = vpow2.f32 %v2783_v12 }
0x1cda   :  { %v3024_v50 = vpop.eup %3023 }
0x1cdb   :  { %2118 = vrot.lane.b32.xlu2 %v3024_v50, %s3083_s2 }
0x1cdc   :  { %v3026_v19 = vpop.eup %3025 }
0x1cdd   :  { %v2099_v49 = vadd.f32 1.0, %v3026_v19 }
0x1cdf   :  { %3027 = vrcp.f32 %v2099_v49  ;;  %v2111_v33 = vand.u32 2147483648, %v2099_v49  ;;  %vm2105_vm13 = vweird.f32 %v2099_v49  ;;  %v2109_v22 = vand.u32 2147483647, %v2099_v49 }
0x1ce1   :  { %v2156_v7 = vpop.permute.xlu0 %2155  ;;  %v2112_v13 = vor.u32 1.1754944e-38, %v2111_v33  ;;  %vm2110_vm15 = vcmp.eq.f32.partialorder %v2109_v22, 8.507059e+37 }
0x1ce2   :  { %v2158_v9 = vmul.f32 %v2156_v7, %v2150_v1 }
0x1ce4   :  { %2160 = vrot.lane.b32.xlu1 %v2158_v9, %s3084_s7 }
0x1ce5   :  { %v3028_v60 = vpop.eup %3027 }
0x1ce6   :  { %v2101_v27 = vmul.f32 %v3028_v60, %v2099_v49  ;;  %vm2106_vm12 = vweird.f32 %v3028_v60 }
0x1ce7   :  { %vm2107_vm14 = vmor %vm2105_vm13, %vm2106_vm12 }
0x1ce8   :  { %v2102_v14 = vsub.f32 1.0, %v2101_v27 }
0x1cea   :  { %v2103_v16 = vmul.f32 %v3028_v60, %v2102_v14 }
0x1cec   :  { %v2104_v51 = vadd.f32 %v3028_v60, %v2103_v16 }
0x1cee   :  { %v2108_v32 = vsel %vm2107_vm14, %v3028_v60, %v2104_v51 }
0x1cef   :  { %v2113_v46 = vsel %vm2110_vm15, %v2112_v13, %v2108_v32 }
0x1cf0   :  { %v2116_v38 = vmul.f32 %v2113_v46, %v3982_v57 }
0x1d35   :  { %v2119_v39 = vpop.permute.xlu2 %2118 }
0x1d36   :  { %v2121_v11 = vmul.f32 %v2119_v39, %v2113_v46 }
0x1d38   :  { %2123 = vrot.lane.b32.xlu1 %v2121_v11, %s3084_s7 }
0x1d56   :  { %v2161_v21 = vpop.permute.xlu1 %2160 }
0x1d57   :  { %v2163_v36 = vadd.f32 %v2161_v21, %v2153_v52 }
0x1d59   :  { %3029 = vtanh.f32 %v2163_v36 }
0x1d5f   :  { %v3030_v34 = vpop.eup %3029 }
0x1d60   :  { %2166 = vrot.lane.b32.xlu0 %v3030_v34, %s3083_s2 }
0x1daa   :  { %v2124_v0 = vpop.permute.xlu1 %2123 }
0x1dab   :  { %v4004_v17 = vadd.f32 %v2124_v0, %v2116_v38 }
0x1dad   :  { %3031 = vtanh.f32 %v4004_v17 }
0x1db3   :  { %v3032_v44 = vpop.eup %3031 }
0x1db4   :  { %2129 = vrot.lane.b32.xlu0 %v3032_v44, %s3083_s2 }
0x1dd2   :  { %v2167_v47 = vpop.permute.xlu0 %2166 }
0x1dd3   :  { %v2169_v58 = vmul.f32 %v2167_v47, %v2150_v1 }
0x1dd5   :  { %2197 = vrot.lane.b32.xlu2 %v2169_v58, %s3084_s7  ;;  %v2551_v58 = vld [vmem:[%s4176_s14 + $0x18] sm:$0xff] }
0x1dd6   :  { %2619 = vmatpush.msra.mxu2 %v2551_v58 }
0x1e26   :  { %v2130_v28 = vpop.permute.xlu0 %2129 }
0x1e27   :  { %v2132_v24 = vmul.f32 %v2130_v28, %v2113_v46  ;;  %v2550_v28 = vld [vmem:[%s4176_s14 + $0x10] sm:$0xff] }
0x1e28   :  { %2620 = vmatpush.msra.mxu2 %v2550_v28 }
0x1e29   :  { %2171 = vrot.lane.b32.xlu1 %v2132_v24, %s3084_s7  ;;  %v2548_v24 = vld [vmem:[%s4176_s14] sm:$0xff] }
0x1e2f   :  { %v4010_v8 = vpop.permute.xlu2 %2197 }
0x1e30   :  { %2786 = vmatmul.msk.f32.vlgmr.msrb.gmra.mxu3 %vm147_vm1, %v4010_v8 }
0x1e9b   :  { %v4014_v57 = vpop.permute.xlu1 %2171 }
0x1e9c   :  { %2785 = vmatmul.msk.f32.vlgmr.msrb.gmra.mxu1 %vm147_vm1, %v4014_v57 }
0x1eb3   :  { %v2218_v23 = vpop.f32.mrf.mxu3 }
0x1eb4   :  { %v2221_v62 = vadd.f32 %v2218_v23, %v3850_v18 }
0x1eb6   :  { %3033 = vtanh.f32 %v2221_v62  ;;  %v2788_v54 = vmul.f32 -1.442695, %v2221_v62 }
0x1eb8   :  { %3035 = vpow2.f32 %v2788_v54 }
0x1ebc   :  { %v3034_v4 = vpop.eup %3033 }
0x1ebd   :  { %2281 = vrot.lane.b32.xlu2 %v3034_v4, %s3083_s2 }
0x1ebe   :  { %v3036_v48 = vpop.eup %3035 }
0x1ebf   :  { %v2262_v26 = vadd.f32 1.0, %v3036_v48 }
0x1ec1   :  { %3037 = vrcp.f32 %v2262_v26  ;;  %v2274_v40 = vand.u32 2147483648, %v2262_v26  ;;  %vm2268_vm2 = vweird.f32 %v2262_v26  ;;  %v2272_v50 = vand.u32 2147483647, %v2262_v26 }
0x1ec3   :  { %v2275_v2 = vor.u32 1.1754944e-38, %v2274_v40  ;;  %vm2273_vm4 = vcmp.eq.f32.partialorder %v2272_v50, 8.507059e+37 }
0x1ec7   :  { %v3038_v43 = vpop.eup %3037 }
0x1ec8   :  { %v2264_v37 = vmul.f32 %v3038_v43, %v2262_v26  ;;  %vm2269_vm0 = vweird.f32 %v3038_v43 }
0x1ec9   :  { %vm2270_vm3 = vmor %vm2268_vm2, %vm2269_vm0 }
0x1eca   :  { %v2265_v3 = vsub.f32 1.0, %v2264_v37 }
0x1ecc   :  { %v2266_v6 = vmul.f32 %v3038_v43, %v2265_v3 }
0x1ece   :  { %v2267_v55 = vadd.f32 %v3038_v43, %v2266_v6 }
0x1ed0   :  { %v2271_v18 = vsel %vm2270_vm3, %v3038_v43, %v2267_v55 }
0x1ed1   :  { %v2276_v35 = vsel %vm2273_vm4, %v2275_v2, %v2271_v18 }
0x1ed2   :  { %v2279_v16 = vmul.f32 %v2276_v35, %v2163_v36 }
0x1f17   :  { %v2282_v42 = vpop.permute.xlu2 %2281 }
0x1f18   :  { %v2284_v41 = vmul.f32 %v2282_v42, %v2276_v35 }
0x1f19   :  { %v2192_v56 = vpop.f32.mrf.mxu1 }
0x1f1a   :  { %v2195_v7 = vadd.f32 %v2192_v56, %v3860_v5  ;;  %2286 = vrot.lane.b32.xlu0 %v2284_v41, %s3084_s7 }
0x1f1c   :  { %3039 = vtanh.f32 %v2195_v7  ;;  %v2787_v9 = vmul.f32 -1.442695, %v2195_v7 }
0x1f1e   :  { %3041 = vpow2.f32 %v2787_v9 }
0x1f22   :  { %v3040_v1 = vpop.eup %3039 }
0x1f23   :  { %2244 = vrot.lane.b32.xlu1 %v3040_v1, %s3083_s2 }
0x1f24   :  { %v3042_v12 = vpop.eup %3041 }
0x1f25   :  { %v2225_v19 = vadd.f32 1.0, %v3042_v12 }
0x1f27   :  { %3043 = vrcp.f32 %v2225_v19  ;;  %v2237_v22 = vand.u32 2147483648, %v2225_v19  ;;  %vm2231_vm6 = vweird.f32 %v2225_v19  ;;  %v2235_v32 = vand.u32 2147483647, %v2225_v19 }
0x1f29   :  { %v2238_v39 = vor.u32 1.1754944e-38, %v2237_v22  ;;  %vm2236_vm8 = vcmp.eq.f32.partialorder %v2235_v32, 8.507059e+37 }
0x1f2d   :  { %v3044_v49 = vpop.eup %3043 }
0x1f2e   :  { %v2227_v60 = vmul.f32 %v3044_v49, %v2225_v19  ;;  %vm2232_vm5 = vweird.f32 %v3044_v49 }
0x1f2f   :  { %vm2233_vm7 = vmor %vm2231_vm6, %vm2232_vm5 }
0x1f30   :  { %v2228_v27 = vsub.f32 1.0, %v2227_v60 }
0x1f32   :  { %v2229_v14 = vmul.f32 %v3044_v49, %v2228_v27 }
0x1f34   :  { %v2230_v5 = vadd.f32 %v3044_v49, %v2229_v14 }
0x1f36   :  { %v2234_v13 = vsel %vm2233_vm7, %v3044_v49, %v2230_v5 }
0x1f37   :  { %v2239_v52 = vsel %vm2236_vm8, %v2238_v39, %v2234_v13 }
0x1f38   :  { %v2242_v38 = vmul.f32 %v2239_v52, %v4004_v17  ;;  %v2549_v17 = vld [vmem:[%s4176_s14 + $0x8] sm:$0xff] }
0x1f39   :  { %2621 = vmatpush.msra.mxu2 %v2549_v17 }
0x1f3b   :  { %2622 = vmatpush.msra.mxu2 %v2548_v24 }
0x1f8c   :  { %v2287_v51 = vpop.permute.xlu0 %2286 }
0x1f8d   :  { %v4023_v33 = vadd.f32 %v2287_v51, %v2279_v16 }
0x1f8f   :  { %3045 = vtanh.f32 %v4023_v33 }
0x1f95   :  { %v3046_v46 = vpop.eup %3045  ;;  %v2245_v11 = vpop.permute.xlu1 %2244 }
0x1f96   :  { %v2247_v21 = vmul.f32 %v2245_v11, %v2239_v52  ;;  %2292 = vrot.lane.b32.xlu2 %v3046_v46, %s3083_s2 }
0x1f98   :  { %2249 = vrot.lane.b32.xlu0 %v2247_v21, %s3084_s7 }
0x1ff0   :  { %v2293_v36 = vpop.permute.xlu2 %2292 }
0x1ff1   :  { %v2295_v34 = vmul.f32 %v2293_v36, %v2276_v35 }
0x1ff3   :  { %2323 = vrot.lane.b32.xlu1 %v2295_v34, %s3084_s7 }
0x200a   :  { %v2250_v0 = vpop.permute.xlu0 %2249 }
0x200b   :  { %v4030_v44 = vadd.f32 %v2250_v0, %v2242_v38 }
0x200d   :  { %3047 = vtanh.f32 %v4030_v44 }
0x2013   :  { %v3048_v47 = vpop.eup %3047 }
0x2014   :  { %2255 = vrot.lane.b32.xlu2 %v3048_v47, %s3083_s2 }
0x2065   :  { %v4046_v23 = vpop.permute.xlu1 %2323 }
0x2066   :  { %2790 = vmatmul.msk.f32.vlgmr.msrb.gmra.mxu2 %vm147_vm1, %v4046_v23 }
0x206e   :  { %2805 = vmatmul.msk.f32.vlgmr.msra.gmra.mxu2 %vm147_vm1, %v3893_v53  ;;  %v2256_v62 = vpop.permute.xlu2 %2255 }
0x206f   :  { %v2258_v4 = vmul.f32 %v2256_v62, %v2239_v52 }
0x2071   :  { %2297 = vrot.lane.b32.xlu0 %v2258_v4, %s3084_s7 }
0x2076   :  { %2806 = vmatmul.msk.f32.gmra.mxu2 %vm147_vm1, %v3927_v25 }
0x207e   :  { %2807 = vmatmul.msk.f32.gmra.mxu2 %vm147_vm1, %v3963_v63 }
0x2086   :  { %2808 = vmatmul.msk.f32.gmra.mxu2 %vm147_vm1, %v3991_v45 }
0x208e   :  { %2809 = vmatmul.msk.f32.gmra.mxu2 %vm147_vm1, %v4014_v57 }
0x20e3   :  { %v2298_v54 = vpop.permute.xlu0 %2297 }
0x20e4   :  { %2789 = vmatmul.msk.f32.vlgmr.msrb.gmra.mxu0 %vm147_vm1, %v2298_v54  ;;  %2810 = vmatmul.msk.f32.gmra.mxu2 %vm147_vm1, %v2298_v54 }
0x20e9   :  { %v2344_v53 = vpop.f32.mrf.mxu2 }
0x20ea   :  { %v2347_v48 = vadd.f32 %v2344_v53, %v3846_v30 }
0x20ec   :  { %3049 = vtanh.f32 %v2347_v48  ;;  %v2792_v25 = vmul.f32 -1.442695, %v2347_v48 }
0x20ee   :  { %3051 = vpow2.f32 %v2792_v25 }
0x20f2   :  { %v3050_v26 = vpop.eup %3049 }
0x20f3   :  { %2407 = vrot.lane.b32.xlu1 %v3050_v26, %s3083_s2 }
0x20f4   :  { %v3052_v63 = vpop.eup %3051 }
0x20f5   :  { %v2388_v43 = vadd.f32 1.0, %v3052_v63 }
0x20f7   :  { %3053 = vrcp.f32 %v2388_v43  ;;  %v2400_v55 = vand.u32 2147483648, %v2388_v43  ;;  %vm2394_vm10 = vweird.f32 %v2388_v43  ;;  %v2398_v40 = vand.u32 2147483647, %v2388_v43 }
0x20f9   :  { %v2401_v2 = vor.u32 1.1754944e-38, %v2400_v55  ;;  %vm2399_vm12 = vcmp.eq.f32.partialorder %v2398_v40, 8.507059e+37 }
0x20fd   :  { %v3054_v45 = vpop.eup %3053 }
0x20fe   :  { %v2390_v37 = vmul.f32 %v3054_v45, %v2388_v43  ;;  %vm2395_vm9 = vweird.f32 %v3054_v45 }
0x20ff   :  { %vm2396_vm11 = vmor %vm2394_vm10, %vm2395_vm9  ;;  %vm2660_vm10 = vcmask 64512  }
0x2100   :  { %v2391_v57 = vsub.f32 1.0, %v2390_v37 }
0x2102   :  { %v2392_v3 = vmul.f32 %v3054_v45, %v2391_v57 }
0x2104   :  { %v2393_v6 = vadd.f32 %v3054_v45, %v2392_v3 }
0x2106   :  { %v2397_v18 = vsel %vm2396_vm11, %v3054_v45, %v2393_v6 }
0x2107   :  { %v2402_v35 = vsel %vm2399_vm12, %v2401_v2, %v2397_v18 }
0x2108   :  { %v2405_v12 = vmul.f32 %v2402_v35, %v4023_v33 }
0x2161   :  { %v2318_v50 = vpop.f32.mrf.mxu0 }
0x2162   :  { %v2321_v30 = vadd.f32 %v2318_v50, %v3864_v15 }
0x2164   :  { %3055 = vtanh.f32 %v2321_v30  ;;  %v2791_v7 = vmul.f32 -1.442695, %v2321_v30 }
0x2165   :  { %v2408_v42 = vpop.permute.xlu1 %2407 }
0x2166   :  { %v2410_v41 = vmul.f32 %v2408_v42, %v2402_v35  ;;  %3057 = vpow2.f32 %v2791_v7 }
0x2168   :  { %2412 = vrot.lane.b32.xlu2 %v2410_v41, %s3084_s7 }
0x216a   :  { %v3056_v56 = vpop.eup %3055 }
0x216b   :  { %2370 = vrot.lane.b32.xlu0 %v3056_v56, %s3083_s2 }
0x216c   :  { %v3058_v1 = vpop.eup %3057 }
0x216d   :  { %v2351_v9 = vadd.f32 1.0, %v3058_v1 }
0x216f   :  { %3059 = vrcp.f32 %v2351_v9  ;;  %v2363_v5 = vand.u32 2147483648, %v2351_v9  ;;  %vm2357_vm14 = vweird.f32 %v2351_v9  ;;  %v2361_v22 = vand.u32 2147483647, %v2351_v9 }
0x2171   :  { %v2364_v33 = vor.u32 1.1754944e-38, %v2363_v5  ;;  %vm2362_vm0 = vcmp.eq.f32.partialorder %v2361_v22, 8.507059e+37 }
0x2175   :  { %v3060_v49 = vpop.eup %3059 }
0x2176   :  { %v2353_v60 = vmul.f32 %v3060_v49, %v2351_v9  ;;  %vm2358_vm13 = vweird.f32 %v3060_v49 }
0x2177   :  { %vm2359_vm15 = vmor %vm2357_vm14, %vm2358_vm13 }
0x2178   :  { %v2354_v14 = vsub.f32 1.0, %v2353_v60 }
0x217a   :  { %v2355_v16 = vmul.f32 %v3060_v49, %v2354_v14 }
0x217c   :  { %v2356_v51 = vadd.f32 %v3060_v49, %v2355_v16 }
0x217e   :  { %v2360_v32 = vsel %vm2359_vm15, %v3060_v49, %v2356_v51 }
0x217f   :  { %v2365_v39 = vsel %vm2362_vm0, %v2364_v33, %v2360_v32 }
0x2180   :  { %v2368_v11 = vmul.f32 %v2365_v39, %v4030_v44 }
0x21c2   :  { %v2413_v15 = vpop.permute.xlu2 %2412 }
0x21c3   :  { %v4069_v19 = vadd.f32 %v2413_v15, %v2405_v12 }
0x21c5   :  { %3061 = vtanh.f32 %v4069_v19 }
0x21cb   :  { %v3062_v27 = vpop.eup %3061 }
0x21cc   :  { %2418 = vrot.lane.b32.xlu1 %v3062_v27, %s3083_s2 }
0x21dd   :  { %v2371_v13 = vpop.permute.xlu0 %2370 }
0x21de   :  { %v2373_v46 = vmul.f32 %v2371_v13, %v2365_v39 }
0x21e0   :  { %2375 = vrot.lane.b32.xlu2 %v2373_v46, %s3084_s7  ;;  %v2554_v46 = vld [vmem:[%s4176_s14 + $0x30] sm:$0xff] }
0x223a   :  { %v2376_v52 = vpop.permute.xlu2 %2375 }
0x223b   :  { %v4075_v21 = vadd.f32 %v2376_v52, %v2368_v11  ;;  %v2553_v11 = vld [vmem:[%s4176_s14 + $0x28] sm:$0xff]  ;;  %v2552_v52 = vld [vmem:[%s4176_s14 + $0x20] sm:$0xff] }
0x223d   :  { %3063 = vtanh.f32 %v4075_v21 }
0x223e   :  { %v2419_v36 = vpop.permute.xlu1 %2418 }
0x223f   :  { %v2421_v34 = vmul.f32 %v2419_v36, %v2402_v35 }
0x2241   :  { %2449 = vrot.lane.b32.xlu0 %v2421_v34, %s3084_s7 }
0x2243   :  { %v3064_v38 = vpop.eup %3063 }
0x2244   :  { %2381 = vrot.lane.b32.xlu1 %v3064_v38, %s3083_s2 }
0x22b3   :  { %v4080_v0 = vpop.permute.xlu0 %2449 }
0x22b4   :  { %2794 = vmatmul.msk.f32.vlgmr.msra.gmra.mxu3 %vm147_vm1, %v4080_v0 }
0x22b6   :  { %v2382_v47 = vpop.permute.xlu1 %2381 }
0x22b7   :  { %v2384_v58 = vmul.f32 %v2382_v47, %v2365_v39 }
0x22b9   :  { %2423 = vrot.lane.b32.xlu2 %v2384_v58, %s3084_s7 }
0x2313   :  { %v2424_v44 = vpop.permute.xlu2 %2423 }
0x2314   :  { %2793 = vmatmul.msk.f32.vlgmr.msra.gmra.mxu1 %vm147_vm1, %v2424_v44  ;;  %2811 = vmatmul.msk.f32.gmra.mxu2 %vm147_vm1, %v2424_v44 }
0x2337   :  { %v2470_v28 = vpop.f32.mrf.mxu3 }
0x2338   :  { %v2473_v17 = vadd.f32 %v2470_v28, %v3839_v10 }
0x233a   :  { %3065 = vtanh.f32 %v2473_v17  ;;  %v2796_v62 = vmul.f32 -1.442695, %v2473_v17 }
0x233c   :  { %3067 = vpow2.f32 %v2796_v62 }
0x2340   :  { %v3066_v24 = vpop.eup %3065 }
0x2341   :  { %2533 = vrot.lane.b32.xlu0 %v3066_v24, %s3083_s2 }
0x2342   :  { %v3068_v4 = vpop.eup %3067 }
0x2343   :  { %v2514_v48 = vadd.f32 1.0, %v3068_v4 }
0x2345   :  { %v2526_v37 = vand.u32 2147483648, %v2514_v48  ;;  %vm2520_vm3 = vweird.f32 %v2514_v48  ;;  %v2524_v57 = vand.u32 2147483647, %v2514_v48 }
0x2347   :  { %v2527_v6 = vor.u32 1.1754944e-38, %v2526_v37  ;;  %vm2525_vm5 = vcmp.eq.f32.partialorder %v2524_v57, 8.507059e+37 }
0x2391   :  { %v2444_v54 = vpop.f32.mrf.mxu1 }
0x2392   :  { %v2447_v53 = vadd.f32 %v2444_v54, %v3868_v20 }
0x2394   :  { %3069 = vtanh.f32 %v2447_v53  ;;  %v2795_v50 = vmul.f32 -1.442695, %v2447_v53 }
0x2395   :  { %3071 = vrcp.f32 %v2514_v48 }
0x2396   :  { %3073 = vpow2.f32 %v2795_v50 }
0x239a   :  { %v3070_v26 = vpop.eup %3069 }
0x239b   :  { %2496 = vrot.lane.b32.xlu2 %v3070_v26, %s3083_s2  ;;  %v3072_v25 = vpop.eup %3071 }
0x239c   :  { %v2516_v63 = vmul.f32 %v3072_v25, %v2514_v48  ;;  %vm2521_vm2 = vweird.f32 %v3072_v25  ;;  %v3074_v30 = vpop.eup %3073 }
0x239d   :  { %vm2522_vm4 = vmor %vm2520_vm3, %vm2521_vm2  ;;  %v2477_v18 = vadd.f32 1.0, %v3074_v30 }
0x239e   :  { %v2517_v43 = vsub.f32 1.0, %v2516_v63 }
0x239f   :  { %3075 = vrcp.f32 %v2477_v18  ;;  %v2489_v7 = vand.u32 2147483648, %v2477_v18  ;;  %vm2483_vm7 = vweird.f32 %v2477_v18  ;;  %v2487_v1 = vand.u32 2147483647, %v2477_v18 }
0x23a0   :  { %v2518_v10 = vmul.f32 %v3072_v25, %v2517_v43 }
0x23a1   :  { %v2490_v12 = vor.u32 1.1754944e-38, %v2489_v7  ;;  %vm2488_vm9 = vcmp.eq.f32.partialorder %v2487_v1, 8.507059e+37 }
0x23a2   :  { %v2519_v45 = vadd.f32 %v3072_v25, %v2518_v10 }
0x23a4   :  { %v2523_v3 = vsel %vm2522_vm4, %v3072_v25, %v2519_v45 }
0x23a5   :  { %v2528_v55 = vsel %vm2525_vm5, %v2527_v6, %v2523_v3  ;;  %v3076_v2 = vpop.eup %3075 }
0x23a6   :  { %v2479_v42 = vmul.f32 %v3076_v2, %v2477_v18  ;;  %vm2484_vm6 = vweird.f32 %v3076_v2  ;;  %v2531_v27 = vmul.f32 %v2528_v55, %v4069_v19  ;;  %v2555_v19 = vld [vmem:[%s4176_s14 + $0x38] sm:$0xff] }
0x23a7   :  { %vm2485_vm8 = vmor %vm2483_vm7, %vm2484_vm6  ;;  %2573 = vmatpush.msra.mxu0 %v2555_v19 }
0x23a8   :  { %v2480_v35 = vsub.f32 1.0, %v2479_v42 }
0x23a9   :  { %2574 = vmatpush.msra.mxu0 %v2554_v46 }
0x23aa   :  { %v2481_v41 = vmul.f32 %v3076_v2, %v2480_v35 }
0x23ab   :  { %2575 = vmatpush.msra.mxu0 %v2553_v11 }
0x23ac   :  { %v2482_v56 = vadd.f32 %v3076_v2, %v2481_v41 }
0x23ad   :  { %2576 = vmatpush.msra.mxu0 %v2552_v52 }
0x23ae   :  { %v2486_v9 = vsel %vm2485_vm8, %v3076_v2, %v2482_v56 }
0x23af   :  { %v2491_v49 = vsel %vm2488_vm9, %v2490_v12, %v2486_v9 }
0x23b0   :  { %v2494_v5 = vmul.f32 %v2491_v49, %v4075_v21 }
0x23b3   :  { %v2534_v20 = vpop.permute.xlu0 %2533 }
0x23b4   :  { %v2536_v40 = vmul.f32 %v2534_v20, %v2528_v55 }
0x23b6   :  { %2538 = vrot.lane.b32.xlu1 %v2536_v40, %s3084_s7 }
0x23f5   :  { %v2497_v15 = vpop.permute.xlu2 %2496 }
0x23f6   :  { %v2499_v60 = vmul.f32 %v2497_v15, %v2491_v49 }
0x23f8   :  { %2501 = vrot.lane.b32.xlu1 %v2499_v60, %s3084_s7 }
0x2428   :  { %v2539_v14 = vpop.permute.xlu1 %2538 }
0x2429   :  { %v2541_v16 = vadd.f32 %v2539_v14, %v2531_v27 }
0x242b   :  { %3077 = vtanh.f32 %v2541_v16 }
0x2431   :  { %v3078_v51 = vpop.eup %3077 }
0x2432   :  { %2544 = vrot.lane.b32.xlu0 %v3078_v51, %s3083_s2 }
0x246a   :  { %v2502_v22 = vpop.permute.xlu1 %2501 }
0x246b   :  { %v2504_v32 = vadd.f32 %v2502_v22, %v2494_v5 }
0x246d   :  { %3079 = vtanh.f32 %v2504_v32 }
0x2473   :  { %v3080_v33 = vpop.eup %3079 }
0x2474   :  { %2507 = vrot.lane.b32.xlu0 %v3080_v33, %s3083_s2 }
0x24a4   :  { %v2545_v13 = vpop.permute.xlu0 %2544 }
0x24a5   :  { %v2547_v39 = vmul.f32 %v2545_v13, %v2528_v55 }
0x24a7   :  { %2557 = vrot.lane.b32.xlu2 %v2547_v39, %s3084_s7 }
0x24e6   :  { %v2508_v21 = vpop.permute.xlu0 %2507 }
0x24e7   :  { %v2510_v36 = vmul.f32 %v2508_v21, %v2491_v49 }
0x24e9   :  { %2603 = vrot.lane.b32.xlu1 %v2510_v36, %s3084_s7 }
0x2501   :  { %v2558_v34 = vpop.permute.xlu2 %2557 }
0x2502   :  { %2797 = vmatmul.msk.f32.vlgmr.msra.gmra.mxu0 %vm147_vm1, %v2558_v34 }
0x250a   :  { %2798 = vmatmul.msk.f32.gmra.mxu0 %vm147_vm1, %v4080_v0  ;;  %v2624_v0 = vpop.f32.mrf.mxu2 }
0x2512   :  { %2799 = vmatmul.msk.f32.gmra.mxu0 %vm147_vm1, %v4046_v23 }
0x251a   :  { %2800 = vmatmul.msk.f32.gmra.mxu0 %vm147_vm1, %v4010_v8  ;;  %v2824_v8 = vld [vmem:[%s4177_s15] ss:$0 sm:$0xff] }
0x2522   :  { %2801 = vmatmul.msk.f32.gmra.mxu0 %vm147_vm1, %v3986_v59  ;;  %v2627_v59 = vpop.f32.mrf.mxu2 }
0x252a   :  { %2802 = vmatmul.msk.f32.gmra.mxu0 %vm147_vm1, %v3952_v31  ;;  %v2630_v44 = vpop.f32.mrf.mxu2 }
0x2532   :  { %2803 = vmatmul.msk.f32.gmra.mxu0 %vm147_vm1, %v3918_v29  ;;  %v2633_v62 = vpop.f32.mrf.mxu2 }
0x253a   :  { %2804 = vmatmul.msk.f32.gmra.mxu0 %vm147_vm1, %v3884_v61  ;;  %v2636_v48 = vpop.f32.mrf.mxu2 }
0x2542   :  { %v2639_v43 = vpop.f32.mrf.mxu2 }
0x254a   :  { %v2642_v57 = vpop.f32.mrf.mxu2 }
0x255b   :  { %v2604_v38 = vpop.permute.xlu1 %2603 }
0x255c   :  { %2812 = vmatmul.msk.f32.gmra.mxu2 %vm147_vm1, %v2604_v38 }
0x257f   :  { %v2578_v23 = vpop.f32.mrf.mxu0 }
0x2580   :  { %v2625_v47 = vadd.f32 %v2624_v0, %v2578_v23 }
0x2582   :  { %v2652_v58 = vadd.f32 %v2824_v8, %v2625_v47 }
0x2584   :  { %2661 = vst.msk [vmem:[%s4178_s16] sm:$0xff] %vm2660_vm10, %v2652_v58 }
0x2587   :  { %v2581_v29 = vpop.f32.mrf.mxu0 }
0x2588   :  { %v2628_v61 = vadd.f32 %v2627_v59, %v2581_v29 }
0x258a   :  { %v2653_v31 = vadd.f32 %v2824_v8, %v2628_v61 }
0x258c   :  { %2662 = vst.msk [vmem:[%s4178_s16 + $0x8] sm:$0xff] %vm2660_vm10, %v2653_v31 }
0x258f   :  { %v2584_v28 = vpop.f32.mrf.mxu0 }
0x2590   :  { %v2631_v17 = vadd.f32 %v2630_v44, %v2584_v28 }
0x2592   :  { %v2654_v24 = vadd.f32 %v2824_v8, %v2631_v17 }
0x2594   :  { %2663 = vst.msk [vmem:[%s4178_s16 + $0x10] sm:$0xff] %vm2660_vm10, %v2654_v24 }
0x2597   :  { %v2587_v4 = vpop.f32.mrf.mxu0 }
0x2598   :  { %v2634_v54 = vadd.f32 %v2633_v62, %v2587_v4 }
0x259a   :  { %v2655_v53 = vadd.f32 %v2824_v8, %v2634_v54 }
0x259c   :  { %2664 = vst.msk [vmem:[%s4178_s16 + $0x18] sm:$0xff] %vm2660_vm10, %v2655_v53 }
0x259f   :  { %v2590_v26 = vpop.f32.mrf.mxu0 }
0x25a0   :  { %v2637_v25 = vadd.f32 %v2636_v48, %v2590_v26 }
0x25a2   :  { %v2656_v63 = vadd.f32 %v2824_v8, %v2637_v25 }
0x25a4   :  { %2665 = vst.msk [vmem:[%s4178_s16 + $0x20] sm:$0xff] %vm2660_vm10, %v2656_v63 }
0x25a7   :  { %v2593_v10 = vpop.f32.mrf.mxu0 }
0x25a8   :  { %v2640_v45 = vadd.f32 %v2639_v43, %v2593_v10 }
0x25aa   :  { %v2657_v37 = vadd.f32 %v2824_v8, %v2640_v45 }
0x25ac   :  { %2666 = vst.msk [vmem:[%s4178_s16 + $0x28] sm:$0xff] %vm2660_vm10, %v2657_v37 }
0x25af   :  { %v2596_v3 = vpop.f32.mrf.mxu0 }
0x25b0   :  { %v2643_v6 = vadd.f32 %v2642_v57, %v2596_v3 }
0x25b2   :  { %v2658_v20 = vadd.f32 %v2824_v8, %v2643_v6 }
0x25b4   :  { %2667 = vst.msk [vmem:[%s4178_s16 + $0x30] sm:$0xff] %vm2660_vm10, %v2658_v20 }
0x25b7   :  { %v2599_v55 = vpop.f32.mrf.mxu0 }
0x25df   :  { %v2645_v40 = vpop.f32.mrf.mxu2 }
0x25e0   :  { %v2646_v50 = vadd.f32 %v2645_v40, %v2599_v55 }
0x25e2   :  { %v2659_v30 = vadd.f32 %v2824_v8, %v2646_v50 }
0x25e4   :  { %2668 = vst.msk [vmem:[%s4178_s16 + $0x38] sm:$0xff] %vm2660_vm10, %v2659_v30 }

</bundles_post_ra>
